<compile_context>
chip_gen: v5e
topology: v5e:2x2
jax: 0.10.0
libtpu: 0.0.40
codegen_flags: <defaults>
</compile_context>

<pallas_src>
import jax
import jax.numpy as jnp
from jax.experimental import pallas as pl
from jax.experimental.pallas import tpu as pltpu


# ------------------------------- kernel ------------------------------------ #

def began_forward_kernel(z_ref,
                         gw1_ref, gb1_ref, gw2_ref, gb2_ref,
                         dw1_ref, db1_ref, dw2_ref, db2_ref,
                         out_ref):
    bf16 = jnp.bfloat16

    # Generator: Linear -> ReLU -> Linear  (latent space)
    z = z_ref[...].astype(bf16)                                      # in-kernel cast
    h = jnp.dot(z, gw1_ref[...], preferred_element_type=jnp.float32) + gb1_ref[...]
    h = jnp.maximum(h, 0.0)                                          # f32 elementwise
    latent = jnp.dot(h.astype(bf16), gw2_ref[...],
                     preferred_element_type=jnp.float32) + gb2_ref[...]

    # Decoder (AE critic's decoder used as data head): Linear -> ReLU -> Linear -> Sigmoid
    d = jnp.dot(latent.astype(bf16), dw1_ref[...],
                preferred_element_type=jnp.float32) + db1_ref[...]
    d = jnp.maximum(d, 0.0)
    out = jnp.dot(d.astype(bf16), dw2_ref[...],
                  preferred_element_type=jnp.float32) + db2_ref[...]
    out_ref[...] = jax.nn.sigmoid(out).astype(out_ref.dtype)         # f32 sigmoid


# ------------------------------ wrapper ------------------------------------ #

def _round_up(n, m):
    return ((n + m - 1) // m) * m


def _pad2(x, rows, cols):
    r, c = x.shape
    return jnp.pad(x, ((0, rows - r), (0, cols - c)))


def prepare_params(params):
    """One-time prep: pad hidden feature dims to multiples of 128 and cast
    weights to bf16.  Input z's feature dim and the output data_dim are left at
    their native widths (blocks equal to the full array dim are legal).
    Padded rows/cols are zero so they never leak into real columns."""
    gw1, gb1, gw2, gb2, dw1, db1, dw2, db2 = params
    noise_dim, g_hidden = gw1.shape
    latent_dim = gw2.shape[1]
    d_hidden = dw1.shape[1]
    data_dim = dw2.shape[1]

    Gh = _round_up(g_hidden, 128)
    Ld = _round_up(latent_dim, 128)
    Dh = _round_up(d_hidden, 128)

    bf16 = jnp.bfloat16
    gw1p = _pad2(gw1, noise_dim, Gh).astype(bf16)     # (noise_dim, Gh)
    gw2p = _pad2(gw2, Gh, Ld).astype(bf16)            # (Gh, Ld)
    dw1p = _pad2(dw1, Ld, Dh).astype(bf16)            # (Ld, Dh)
    dw2p = _pad2(dw2, Dh, data_dim).astype(bf16)      # (Dh, data_dim) — N unpadded
    gb1p = _pad2(gb1, 1, Gh)                          # biases stay f32, zero-padded
    gb2p = _pad2(gb2, 1, Ld)
    db1p = _pad2(db1, 1, Dh)
    db2p = db2                                        # (1, data_dim) — unpadded
    return (gw1p, gb1p, gw2p, gb2p, dw1p, db1p, dw2p, db2p)


def began_forward(z, prepared_params, *, batch_tile=1024, out_dtype=jnp.float32):
    """Fused BEGAN forward: generated_data = decoder(generator(z)).

    `prepared_params` must come from prepare_params(); weights are already
    padded + bf16 so the per-call path moves only z and the output over HBM.
    Set out_dtype=jnp.bfloat16 to halve the output stream if acceptable."""
    gw1p, gb1p, gw2p, gb2p, dw1p, db1p, dw2p, db2p = prepared_params
    B, noise_dim = z.shape
    data_dim = dw2p.shape[1]

    # Batch tiling: one step for small B (fixed per-step overhead dominates
    # otherwise); for large B, tiles of `batch_tile` rows so each TensorCore
    # gets several pipelined steps.
    if B <= batch_tile:
        TB = _round_up(B, 8)
        Bp = TB
    else:
        TB = _round_up(batch_tile, 8)
        Bp = _round_up(B, TB)
    grid = (Bp // TB,)

    zp = z if Bp == B else jnp.pad(z, ((0, Bp - B), (0, 0)))

    tile = lambda cols: pl.BlockSpec((TB, cols), lambda i: (i, 0))
    resident = lambda shape: pl.BlockSpec(shape, lambda i: (0, 0))

    out = pl.pallas_call(
        began_forward_kernel,
        out_shape=jax.ShapeDtypeStruct((Bp, data_dim), out_dtype),
        grid=grid,
        in_specs=[
            tile(noise_dim),
            resident(gw1p.shape), resident(gb1p.shape),
            resident(gw2p.shape), resident(gb2p.shape),
            resident(dw1p.shape), resident(db1p.shape),
            resident(dw2p.shape), resident(db2p.shape),
        ],
        out_specs=tile(data_dim),
        compiler_params=pltpu.CompilerParams(
            dimension_semantics=("parallel",)),
    )(zp, gw1p, gb1p, gw2p, gb2p, dw1p, db1p, dw2p, db2p)

    return out if Bp == B else out[:B]


# ----------------------------- params / ref --------------------------------- #

def init_params(key, noise_dim, g_hidden, latent_dim, d_hidden, data_dim):
    """Weights stored as (in, out) — the transpose of torch.nn.Linear's (out, in);
    biases as (1, out).  PyTorch-default U(-1/sqrt(fan_in), 1/sqrt(fan_in)) init."""
    ks = jax.random.split(key, 8)

    def linear(kw, kb, fan_in, fan_out):
        bound = 1.0 / jnp.sqrt(jnp.float32(fan_in))
        w = jax.random.uniform(kw, (fan_in, fan_out), jnp.float32, -bound, bound)
        b = jax.random.uniform(kb, (1, fan_out), jnp.float32, -bound, bound)
        return w, b

    gw1, gb1 = linear(ks[0], ks[1], noise_dim, g_hidden)
    gw2, gb2 = linear(ks[2], ks[3], g_hidden, latent_dim)
    dw1, db1 = linear(ks[4], ks[5], latent_dim, d_hidden)
    dw2, db2 = linear(ks[6], ks[7], d_hidden, data_dim)
    return (gw1, gb1, gw2, gb2, dw1, db1, dw2, db2)


def began_forward_ref(z, params):
    """Pure-JAX reference with the same bf16-operand / f32-accumulate recipe."""
    gw1, gb1, gw2, gb2, dw1, db1, dw2, db2 = params
    bf16 = jnp.bfloat16
    h = jnp.dot(z.astype(bf16), gw1.astype(bf16),
                preferred_element_type=jnp.float32) + gb1
    h = jnp.maximum(h, 0.0)
    latent = jnp.dot(h.astype(bf16), gw2.astype(bf16),
                     preferred_element_type=jnp.float32) + gb2
    d = jnp.dot(latent.astype(bf16), dw1.astype(bf16),
                preferred_element_type=jnp.float32) + db1
    d = jnp.maximum(d, 0.0)
    out = jnp.dot(d.astype(bf16), dw2.astype(bf16),
                  preferred_element_type=jnp.float32) + db2
    return jax.nn.sigmoid(out)


# --------------------------------- main ------------------------------------- #

if __name__ == "__main__":
    # Shapes consistent with a tabular BEGAN forward.
    batch = 512
    noise_dim = 32     # gen_config[0]['input_dim']
    g_hidden = 64
    latent_dim = 32    # autoencoder latent size
    d_hidden = 64
    data_dim = 48      # tabular feature count

    key = jax.random.PRNGKey(0)
    k_z, k_p = jax.random.split(key)
    z = jax.random.normal(k_z, (batch, noise_dim), dtype=jnp.float32)
    params = init_params(k_p, noise_dim, g_hidden, latent_dim, d_hidden, data_dim)
    prepared = prepare_params(params)   # one-time weight pad/cast, off the call path

    # Main check: single-step grid (B <= batch_tile), no batch padding.
    out = began_forward(z, prepared)
    out = jax.block_until_ready(out)
    ref = began_forward_ref(z, params)
    assert out.shape == (batch, data_dim), out.shape
    assert jnp.allclose(out, ref, atol=2e-3, rtol=2e-3), (
        "mismatch vs reference: max abs diff = "
        f"{float(jnp.max(jnp.abs(out - ref)))}")

    # Secondary check: ragged batch exercising the padded, multi-step grid path.
    z2 = z[:300]
    out2 = jax.block_until_ready(began_forward(z2, prepared, batch_tile=128))
    ref2 = began_forward_ref(z2, params)
    assert out2.shape == (300, data_dim), out2.shape
    assert jnp.allclose(out2, ref2, atol=2e-3, rtol=2e-3), (
        "mismatch vs reference (ragged batch): max abs diff = "
        f"{float(jnp.max(jnp.abs(out2 - ref2)))}")

    print("KERNEL_OK")
</pallas_src>

<mosaic_0001>
module attributes {stable_mosaic.version = 11 : i64} {
  func.func @began_forward_kernel(%arg0: i32, %arg1: memref<512x32xf32, #tpu.memory_space<vmem>>, %arg2: memref<32x128xbf16, #tpu.memory_space<vmem>>, %arg3: memref<1x128xf32, #tpu.memory_space<vmem>>, %arg4: memref<128x128xbf16, #tpu.memory_space<vmem>>, %arg5: memref<1x128xf32, #tpu.memory_space<vmem>>, %arg6: memref<128x128xbf16, #tpu.memory_space<vmem>>, %arg7: memref<1x128xf32, #tpu.memory_space<vmem>>, %arg8: memref<128x48xbf16, #tpu.memory_space<vmem>>, %arg9: memref<1x48xf32, #tpu.memory_space<vmem>>, %arg10: memref<512x48xf32, #tpu.memory_space<vmem>>) attributes {dimension_semantics = [#tpu.dimension_semantics<parallel>], iteration_bounds = array<i64: 1>, scalar_prefetch = 0 : i64, scratch_operands = 0 : i64, tpu.core_type = #tpu.core_type<tc>, window_params = [{transform_indices = @transform_0, window_bounds = array<i64: 512, 32>}, {pipeline_mode = #tpu.pipeline_mode<synchronous>, transform_indices = @transform_1, window_bounds = array<i64: 32, 128>}, {pipeline_mode = #tpu.pipeline_mode<synchronous>, transform_indices = @transform_2, window_bounds = array<i64: 1, 128>}, {pipeline_mode = #tpu.pipeline_mode<synchronous>, transform_indices = @transform_3, window_bounds = array<i64: 128, 128>}, {pipeline_mode = #tpu.pipeline_mode<synchronous>, transform_indices = @transform_4, window_bounds = array<i64: 1, 128>}, {pipeline_mode = #tpu.pipeline_mode<synchronous>, transform_indices = @transform_5, window_bounds = array<i64: 128, 128>}, {pipeline_mode = #tpu.pipeline_mode<synchronous>, transform_indices = @transform_6, window_bounds = array<i64: 1, 128>}, {pipeline_mode = #tpu.pipeline_mode<synchronous>, transform_indices = @transform_7, window_bounds = array<i64: 128, 48>}, {pipeline_mode = #tpu.pipeline_mode<synchronous>, transform_indices = @transform_8, window_bounds = array<i64: 1, 48>}, {transform_indices = @transform_9, window_bounds = array<i64: 512, 48>}]} {
    %c0 = arith.constant 0 : index
    %c0_0 = arith.constant 0 : index
    %0 = vector.load %arg1[%c0, %c0_0] : memref<512x32xf32, #tpu.memory_space<vmem>>, vector<512x32xf32>
    %1 = arith.truncf %0 : vector<512x32xf32> to vector<512x32xbf16>
    %c0_1 = arith.constant 0 : index
    %c0_2 = arith.constant 0 : index
    %2 = vector.load %arg2[%c0_1, %c0_2] : memref<32x128xbf16, #tpu.memory_space<vmem>>, vector<32x128xbf16>
    %cst = arith.constant dense<0.000000e+00> : vector<512x128xf32>
    %3 = tpu.matmul %1, %2, %cst {dimension_numbers = #tpu.dot_dimension_numbers<[1], [0], [0], [1], [0, 0, 1, 1], [], []>} : vector<512x32xbf16>, vector<32x128xbf16>, vector<512x128xf32> -> vector<512x128xf32>
    %c0_3 = arith.constant 0 : index
    %c0_4 = arith.constant 0 : index
    %4 = vector.load %arg3[%c0_3, %c0_4] : memref<1x128xf32, #tpu.memory_space<vmem>>, vector<1x128xf32>
    %5 = vector.broadcast %4 : vector<1x128xf32> to vector<512x128xf32>
    %6 = arith.addf %3, %5 : vector<512x128xf32>
    %cst_5 = arith.constant 0.000000e+00 : f32
    %7 = vector.broadcast %cst_5 : f32 to vector<512x128xf32>
    %8 = arith.maximumf %6, %7 : vector<512x128xf32>
    %9 = arith.truncf %8 : vector<512x128xf32> to vector<512x128xbf16>
    %c0_6 = arith.constant 0 : index
    %c0_7 = arith.constant 0 : index
    %10 = vector.load %arg4[%c0_6, %c0_7] : memref<128x128xbf16, #tpu.memory_space<vmem>>, vector<128x128xbf16>
    %cst_8 = arith.constant dense<0.000000e+00> : vector<512x128xf32>
    %11 = tpu.matmul %9, %10, %cst_8 {dimension_numbers = #tpu.dot_dimension_numbers<[1], [0], [0], [1], [0, 0, 1, 1], [], []>} : vector<512x128xbf16>, vector<128x128xbf16>, vector<512x128xf32> -> vector<512x128xf32>
    %c0_9 = arith.constant 0 : index
    %c0_10 = arith.constant 0 : index
    %12 = vector.load %arg5[%c0_9, %c0_10] : memref<1x128xf32, #tpu.memory_space<vmem>>, vector<1x128xf32>
    %13 = vector.broadcast %12 : vector<1x128xf32> to vector<512x128xf32>
    %14 = arith.addf %11, %13 : vector<512x128xf32>
    %15 = arith.truncf %14 : vector<512x128xf32> to vector<512x128xbf16>
    %c0_11 = arith.constant 0 : index
    %c0_12 = arith.constant 0 : index
    %16 = vector.load %arg6[%c0_11, %c0_12] : memref<128x128xbf16, #tpu.memory_space<vmem>>, vector<128x128xbf16>
    %cst_13 = arith.constant dense<0.000000e+00> : vector<512x128xf32>
    %17 = tpu.matmul %15, %16, %cst_13 {dimension_numbers = #tpu.dot_dimension_numbers<[1], [0], [0], [1], [0, 0, 1, 1], [], []>} : vector<512x128xbf16>, vector<128x128xbf16>, vector<512x128xf32> -> vector<512x128xf32>
    %c0_14 = arith.constant 0 : index
    %c0_15 = arith.constant 0 : index
    %18 = vector.load %arg7[%c0_14, %c0_15] : memref<1x128xf32, #tpu.memory_space<vmem>>, vector<1x128xf32>
    %19 = vector.broadcast %18 : vector<1x128xf32> to vector<512x128xf32>
    %20 = arith.addf %17, %19 : vector<512x128xf32>
    %cst_16 = arith.constant 0.000000e+00 : f32
    %21 = vector.broadcast %cst_16 : f32 to vector<512x128xf32>
    %22 = arith.maximumf %20, %21 : vector<512x128xf32>
    %23 = arith.truncf %22 : vector<512x128xf32> to vector<512x128xbf16>
    %c0_17 = arith.constant 0 : index
    %c0_18 = arith.constant 0 : index
    %24 = vector.load %arg8[%c0_17, %c0_18] : memref<128x48xbf16, #tpu.memory_space<vmem>>, vector<128x48xbf16>
    %cst_19 = arith.constant dense<0.000000e+00> : vector<512x48xf32>
    %25 = tpu.matmul %23, %24, %cst_19 {dimension_numbers = #tpu.dot_dimension_numbers<[1], [0], [0], [1], [0, 0, 1, 1], [], []>} : vector<512x128xbf16>, vector<128x48xbf16>, vector<512x48xf32> -> vector<512x48xf32>
    %c0_20 = arith.constant 0 : index
    %c0_21 = arith.constant 0 : index
    %26 = vector.load %arg9[%c0_20, %c0_21] : memref<1x48xf32, #tpu.memory_space<vmem>>, vector<1x48xf32>
    %27 = vector.broadcast %26 : vector<1x48xf32> to vector<512x48xf32>
    %28 = arith.addf %25, %27 : vector<512x48xf32>
    %29 = arith.negf %28 : vector<512x48xf32>
    %30 = math.exp %29 : vector<512x48xf32>
    %cst_22 = arith.constant 1.000000e+00 : f32
    %31 = vector.broadcast %cst_22 : f32 to vector<512x48xf32>
    %32 = arith.addf %31, %30 : vector<512x48xf32>
    %33 = arith.divf %31, %32 : vector<512x48xf32>
    %c0_23 = arith.constant 0 : index
    %c0_24 = arith.constant 0 : index
    %34 = vector.load %arg10[%c0_23, %c0_24] : memref<512x48xf32, #tpu.memory_space<vmem>>, vector<512x48xf32>
    tpu.vector_store %arg10[%c0_23, %c0_24], %33 {strides = array<i32>} : memref<512x48xf32, #tpu.memory_space<vmem>>, vector<512x48xf32>,
    return
  }
  func.func @transform_0(%arg0: i32) -> (i32, i32) {
    %c0_i32 = arith.constant 0 : i32
    %c0_i32_0 = arith.constant 0 : i32
    return %arg0, %c0_i32 : i32, i32
  }
  func.func @transform_1(%arg0: i32) -> (i32, i32) {
    %c0_i32 = arith.constant 0 : i32
    %c0_i32_0 = arith.constant 0 : i32
    %c0_i32_1 = arith.constant 0 : i32
    return %c0_i32, %c0_i32_0 : i32, i32
  }
  func.func @transform_2(%arg0: i32) -> (i32, i32) {
    %c0_i32 = arith.constant 0 : i32
    %c0_i32_0 = arith.constant 0 : i32
    %c0_i32_1 = arith.constant 0 : i32
    return %c0_i32, %c0_i32_0 : i32, i32
  }
  func.func @transform_3(%arg0: i32) -> (i32, i32) {
    %c0_i32 = arith.constant 0 : i32
    %c0_i32_0 = arith.constant 0 : i32
    %c0_i32_1 = arith.constant 0 : i32
    return %c0_i32, %c0_i32_0 : i32, i32
  }
  func.func @transform_4(%arg0: i32) -> (i32, i32) {
    %c0_i32 = arith.constant 0 : i32
    %c0_i32_0 = arith.constant 0 : i32
    %c0_i32_1 = arith.constant 0 : i32
    return %c0_i32, %c0_i32_0 : i32, i32
  }
  func.func @transform_5(%arg0: i32) -> (i32, i32) {
    %c0_i32 = arith.constant 0 : i32
    %c0_i32_0 = arith.constant 0 : i32
    %c0_i32_1 = arith.constant 0 : i32
    return %c0_i32, %c0_i32_0 : i32, i32
  }
  func.func @transform_6(%arg0: i32) -> (i32, i32) {
    %c0_i32 = arith.constant 0 : i32
    %c0_i32_0 = arith.constant 0 : i32
    %c0_i32_1 = arith.constant 0 : i32
    return %c0_i32, %c0_i32_0 : i32, i32
  }
  func.func @transform_7(%arg0: i32) -> (i32, i32) {
    %c0_i32 = arith.constant 0 : i32
    %c0_i32_0 = arith.constant 0 : i32
    %c0_i32_1 = arith.constant 0 : i32
    return %c0_i32, %c0_i32_0 : i32, i32
  }
  func.func @transform_8(%arg0: i32) -> (i32, i32) {
    %c0_i32 = arith.constant 0 : i32
    %c0_i32_0 = arith.constant 0 : i32
    %c0_i32_1 = arith.constant 0 : i32
    return %c0_i32, %c0_i32_0 : i32, i32
  }
  func.func @transform_9(%arg0: i32) -> (i32, i32) {
    %c0_i32 = arith.constant 0 : i32
    %c0_i32_0 = arith.constant 0 : i32
    return %arg0, %c0_i32 : i32, i32
  }
}

</mosaic_0001>

<bundles_post_ra>
// kernel: tpu_custom_call.1
= control target key start
LH: loop header
LB: loop body
LE: loop exit
PB: predicated region body
PF: predicated region fallthrough
CT: control target
= control target key end

     0   :  { %vm149_vm0 = vcmask 261120   ;;  %vm2566_vm4 = vcmask 392192   ;;  %s4142_s1 = inlined_call_operand.vmem [shape: bf16[32,128], index: 1, kind: input, shape index: {}]   ;;  %s4143_s0 = inlined_call_operand.vmem [shape: f32[512,32], index: 0, kind: input, shape index: {}]   ;;  %s4144_s2 = inlined_call_operand.vmem [shape: f32[1,128], index: 2, kind: input, shape index: {}]   ;;  %s4145_s3 = inlined_call_operand.vmem [shape: bf16[128,128], index: 3, kind: input, shape index: {}]   ;;  %s4146_s4 = inlined_call_operand.vmem [shape: f32[1,128], index: 4, kind: input, shape index: {}]   ;;  %s4147_s5 = inlined_call_operand.vmem [shape: bf16[128,128], index: 5, kind: input, shape index: {}]   ;;  %s4148_s6 = inlined_call_operand.vmem [shape: f32[1,128], index: 6, kind: input, shape index: {}]   ;;  %s4149_s7 = inlined_call_operand.vmem [shape: bf16[128,48], index: 7, kind: input, shape index: {}]   ;;  %s4150_s8 = inlined_call_operand.vmem [shape: f32[1,48], index: 8, kind: input, shape index: {}]   ;;  %s4151_s9 = inlined_call_operand.vmem [shape: f32[512,48], index: 9, kind: output, shape index: {}]  }
   0x1   :  { %v2836_v0 = vld [vmem:[%s4142_s1 + $0x8] sm:$0xff]  ;;  %v2835_v1 = vld [vmem:[%s4142_s1] sm:$0xff]  ;;  %v35_v5 = vld [vmem:[%s4143_s0 + $0x10] sm:$0xff] }
   0x2   :  { %252 = vmatpush.bf16.msra.mxu0 %v2836_v0  ;;  %v33_v2 = vld [vmem:[%s4143_s0] sm:$0xff]  ;;  %v34_v3 = vld [vmem:[%s4143_s0 + $0x8] sm:$0xff]  ;;  %v36_v6 = vld [vmem:[%s4143_s0 + $0x18] sm:$0xff] }
   0x3   :  { %v97_v4 = vpack.c.bf16 %v34_v3, %v33_v2  ;;  %v98_v7 = vpack.c.bf16 %v36_v6, %v35_v5  ;;  %v37_v8 = vld [vmem:[%s4143_s0 + $0x20] sm:$0xff]  ;;  %v38_v9 = vld [vmem:[%s4143_s0 + $0x28] sm:$0xff]  ;;  %v39_v11 = vld [vmem:[%s4143_s0 + $0x30] sm:$0xff] }
   0x4   :  { %v99_v10 = vpack.c.bf16 %v38_v9, %v37_v8  ;;  %v40_v12 = vld [vmem:[%s4143_s0 + $0x38] sm:$0xff]  ;;  %v41_v14 = vld [vmem:[%s4143_s0 + $0x40] sm:$0xff]  ;;  %v42_v15 = vld [vmem:[%s4143_s0 + $0x48] sm:$0xff] }
   0x5   :  { %v100_v13 = vpack.c.bf16 %v40_v12, %v39_v11  ;;  %v101_v16 = vpack.c.bf16 %v42_v15, %v41_v14  ;;  %v2844_v17 = vld [vmem:[%s4145_s3 + $0x38] sm:$0xff]  ;;  %v43_v18 = vld [vmem:[%s4143_s0 + $0x50] sm:$0xff]  ;;  %v2842_v22 = vld [vmem:[%s4145_s3 + $0x28] sm:$0xff] }
   0x6   :  { %253 = vmatpush.bf16.msra.mxu0 %v2835_v1  ;;  %579 = vmatpush.bf16.msra.mxu1 %v2844_v17  ;;  %v44_v19 = vld [vmem:[%s4143_s0 + $0x58] sm:$0xff]  ;;  %v2843_v21 = vld [vmem:[%s4145_s3 + $0x30] sm:$0xff]  ;;  %v2841_v23 = vld [vmem:[%s4145_s3 + $0x20] sm:$0xff] }
   0x7   :  { %v102_v20 = vpack.c.bf16 %v44_v19, %v43_v18  ;;  %v45_v24 = vld [vmem:[%s4143_s0 + $0x60] sm:$0xff]  ;;  %v46_v25 = vld [vmem:[%s4143_s0 + $0x68] sm:$0xff]  ;;  %v2840_v26 = vld [vmem:[%s4145_s3 + $0x18] sm:$0xff] }
   0x8   :  { %v103_v27 = vpack.c.bf16 %v46_v25, %v45_v24  ;;  %v2839_v28 = vld [vmem:[%s4145_s3 + $0x10] sm:$0xff]  ;;  %v2838_v29 = vld [vmem:[%s4145_s3 + $0x8] sm:$0xff]  ;;  %v2837_v30 = vld [vmem:[%s4145_s3] sm:$0xff] }
   0x9   :  { %2643 = vmatmul.msk.bf16.vlgmr.msra.gmra.mxu0 %vm149_vm0, %v97_v4  ;;  %v47_v31 = vld [vmem:[%s4143_s0 + $0x70] sm:$0xff]  ;;  %v48_v32 = vld [vmem:[%s4143_s0 + $0x78] sm:$0xff]  ;;  %v49_v34 = vld [vmem:[%s4143_s0 + $0x80] sm:$0xff] }
   0xa   :  { %580 = vmatpush.bf16.msra.mxu1 %v2843_v21  ;;  %v104_v33 = vpack.c.bf16 %v48_v32, %v47_v31  ;;  %v50_v35 = vld [vmem:[%s4143_s0 + $0x88] sm:$0xff]  ;;  %v3274_v38 = vld [vmem:[%s4144_s2] ss:$0 sm:$0xff]  ;;  %v51_v44 = vld [vmem:[%s4143_s0 + $0x90] sm:$0xff] }
   0xb   :  { %v105_v36 = vpack.c.bf16 %v50_v35, %v49_v34  ;;  %v52_v45 = vld [vmem:[%s4143_s0 + $0x98] sm:$0xff]  ;;  %v53_v54 = vld [vmem:[%s4143_s0 + $0xa0] sm:$0xff]  ;;  %v54_v55 = vld [vmem:[%s4143_s0 + $0xa8] sm:$0xff] }
   0xc   :  { %v106_v47 = vpack.c.bf16 %v52_v45, %v51_v44  ;;  %v107_v57 = vpack.c.bf16 %v54_v55, %v53_v54  ;;  %v55_v0 = vld [vmem:[%s4143_s0 + $0xb0] sm:$0xff]  ;;  %v56_v1 = vld [vmem:[%s4143_s0 + $0xb8] sm:$0xff]  ;;  %v58_v11 = vld [vmem:[%s4143_s0 + $0xc8] sm:$0xff] }
   0xd   :  { %v108_v3 = vpack.c.bf16 %v56_v1, %v55_v0  ;;  %v60_v21 = vld [vmem:[%s4143_s0 + $0xd8] sm:$0xff]  ;;  %v2851_v31 = vld [vmem:[%s4147_s5 + $0x30] sm:$0xff]  ;;  %v61_v32 = vld [vmem:[%s4143_s0 + $0xe0] sm:$0xff] }
   0xe   :  { %581 = vmatpush.bf16.msra.mxu1 %v2842_v22 }
  0x12   :  { %582 = vmatpush.bf16.msra.mxu1 %v2841_v23 }
  0x16   :  { %583 = vmatpush.bf16.msra.mxu1 %v2840_v26 }
  0x19   :  { %2644 = vmatmul.msk.bf16.gmra.mxu0 %vm149_vm0, %v98_v7 }
  0x1a   :  { %584 = vmatpush.bf16.msra.mxu1 %v2839_v28 }
  0x1e   :  { %585 = vmatpush.bf16.msra.mxu1 %v2838_v29 }
  0x22   :  { %586 = vmatpush.bf16.msra.mxu1 %v2837_v30 }
  0x29   :  { %2645 = vmatmul.msk.bf16.gmra.mxu0 %vm149_vm0, %v99_v10  ;;  %v57_v10 = vld [vmem:[%s4143_s0 + $0xc0] sm:$0xff] }
  0x39   :  { %2646 = vmatmul.msk.bf16.gmra.mxu0 %vm149_vm0, %v100_v13  ;;  %v109_v13 = vpack.c.bf16 %v58_v11, %v57_v10  ;;  %v3384_v11 = vld [vmem:[%s4146_s4] ss:$0 sm:$0xff] }
  0x49   :  { %2647 = vmatmul.msk.bf16.gmra.mxu0 %vm149_vm0, %v101_v16 }
  0x59   :  { %2648 = vmatmul.msk.bf16.gmra.mxu0 %vm149_vm0, %v102_v20  ;;  %v59_v20 = vld [vmem:[%s4143_s0 + $0xd0] sm:$0xff] }
  0x5a   :  { %v110_v23 = vpack.c.bf16 %v60_v21, %v59_v20 }
  0x69   :  { %2649 = vmatmul.msk.bf16.gmra.mxu0 %vm149_vm0, %v103_v27  ;;  %v2852_v27 = vld [vmem:[%s4147_s5 + $0x38] sm:$0xff] }
  0x6a   :  { %848 = vmatpush.bf16.msra.mxu2 %v2852_v27 }
  0x6e   :  { %849 = vmatpush.bf16.msra.mxu2 %v2851_v31 }
  0x79   :  { %2650 = vmatmul.msk.bf16.gmra.mxu0 %vm149_vm0, %v104_v33  ;;  %v62_v33 = vld [vmem:[%s4143_s0 + $0xe8] sm:$0xff] }
  0x7a   :  { %v111_v35 = vpack.c.bf16 %v62_v33, %v61_v32 }
  0x86   :  { %v255_v37 = vpop.f32.mrf.mxu0 }
  0x87   :  { %v256_v39 = vadd.f32 %v3274_v38, %v255_v37  ;;  %v2850_v37 = vld [vmem:[%s4147_s5 + $0x28] sm:$0xff] }
  0x88   :  { %850 = vmatpush.bf16.msra.mxu2 %v2850_v37  ;;  %v71_v37 = vld [vmem:[%s4143_s0 + $0x130] sm:$0xff] }
  0x89   :  { %2651 = vmatmul.msk.bf16.gmra.mxu0 %vm149_vm0, %v105_v36  ;;  %v415_v42 = vmax.f32 %v256_v39, 0.0  ;;  %v2849_v39 = vld [vmem:[%s4147_s5 + $0x20] sm:$0xff] }
  0x8c   :  { %851 = vmatpush.bf16.msra.mxu2 %v2849_v39  ;;  %v72_v39 = vld [vmem:[%s4143_s0 + $0x138] sm:$0xff] }
  0x8e   :  { %v257_v40 = vpop.f32.mrf.mxu0 }
  0x8f   :  { %v258_v41 = vadd.f32 %v3274_v38, %v257_v40 }
  0x91   :  { %v416_v43 = vmax.f32 %v258_v41, 0.0 }
  0x93   :  { %v479_v46 = vpack.c.bf16 %v416_v43, %v415_v42  ;;  %v2848_v42 = vld [vmem:[%s4147_s5 + $0x18] sm:$0xff] }
  0x94   :  { %852 = vmatpush.bf16.msra.mxu2 %v2848_v42 }
  0x95   :  { %587 = vmatmul.bf16.vlgmr.msra.gmra.mxu1 %v479_v46  ;;  %v63_v46 = vld [vmem:[%s4143_s0 + $0xf0] sm:$0xff] }
  0x96   :  { %v260_v48 = vpop.f32.mrf.mxu0 }
  0x97   :  { %v261_v49 = vadd.f32 %v3274_v38, %v260_v48  ;;  %v2847_v48 = vld [vmem:[%s4147_s5 + $0x10] sm:$0xff] }
  0x98   :  { %853 = vmatpush.bf16.msra.mxu2 %v2847_v48 }
  0x99   :  { %2652 = vmatmul.msk.bf16.gmra.mxu0 %vm149_vm0, %v106_v47  ;;  %v417_v52 = vmax.f32 %v261_v49, 0.0  ;;  %v64_v47 = vld [vmem:[%s4143_s0 + $0xf8] sm:$0xff] }
  0x9e   :  { %v262_v50 = vpop.f32.mrf.mxu0 }
  0x9f   :  { %v263_v51 = vadd.f32 %v3274_v38, %v262_v50  ;;  %v112_v50 = vpack.c.bf16 %v64_v47, %v63_v46 }
  0xa1   :  { %v418_v53 = vmax.f32 %v263_v51, 0.0 }
  0xa3   :  { %v480_v56 = vpack.c.bf16 %v418_v53, %v417_v52  ;;  %v2846_v52 = vld [vmem:[%s4147_s5 + $0x8] sm:$0xff]  ;;  %v2845_v53 = vld [vmem:[%s4147_s5] sm:$0xff] }
  0xa4   :  { %854 = vmatpush.bf16.msra.mxu2 %v2846_v52 }
  0xa5   :  { %592 = vmatmul.bf16.gmra.mxu1 %v480_v56 }
  0xa6   :  { %v265_v58 = vpop.f32.mrf.mxu0 }
  0xa7   :  { %v266_v59 = vadd.f32 %v3274_v38, %v265_v58 }
  0xa8   :  { %855 = vmatpush.bf16.msra.mxu2 %v2845_v53  ;;  %v73_v53 = vld [vmem:[%s4143_s0 + $0x140] sm:$0xff] }
  0xa9   :  { %2653 = vmatmul.msk.bf16.gmra.mxu0 %vm149_vm0, %v107_v57  ;;  %v419_v62 = vmax.f32 %v266_v59, 0.0  ;;  %v65_v59 = vld [vmem:[%s4143_s0 + $0x100] sm:$0xff] }
  0xae   :  { %v267_v60 = vpop.f32.mrf.mxu0 }
  0xaf   :  { %v268_v61 = vadd.f32 %v3274_v38, %v267_v60  ;;  %v66_v60 = vld [vmem:[%s4143_s0 + $0x108] sm:$0xff] }
  0xb1   :  { %v420_v63 = vmax.f32 %v268_v61, 0.0 }
  0xb3   :  { %v481_v2 = vpack.c.bf16 %v420_v63, %v419_v62  ;;  %v113_v62 = vpack.c.bf16 %v66_v60, %v65_v59 }
  0xb5   :  { %597 = vmatmul.bf16.gmra.mxu1 %v481_v2 }
  0xb6   :  { %v270_v4 = vpop.f32.mrf.mxu0 }
  0xb7   :  { %v271_v5 = vadd.f32 %v3274_v38, %v270_v4 }
  0xb9   :  { %2654 = vmatmul.msk.bf16.gmra.mxu0 %vm149_vm0, %v108_v3  ;;  %v421_v8 = vmax.f32 %v271_v5, 0.0 }
  0xbe   :  { %v272_v6 = vpop.f32.mrf.mxu0 }
  0xbf   :  { %v273_v7 = vadd.f32 %v3274_v38, %v272_v6  ;;  %v67_v6 = vld [vmem:[%s4143_s0 + $0x110] sm:$0xff] }
  0xc1   :  { %v422_v9 = vmax.f32 %v273_v7, 0.0  ;;  %v68_v7 = vld [vmem:[%s4143_s0 + $0x118] sm:$0xff] }
  0xc3   :  { %v482_v12 = vpack.c.bf16 %v422_v9, %v421_v8  ;;  %v114_v9 = vpack.c.bf16 %v68_v7, %v67_v6 }
  0xc5   :  { %602 = vmatmul.bf16.gmra.mxu1 %v482_v12 }
  0xc6   :  { %v275_v14 = vpop.f32.mrf.mxu0 }
  0xc7   :  { %v276_v15 = vadd.f32 %v3274_v38, %v275_v14 }
  0xc9   :  { %2655 = vmatmul.msk.bf16.gmra.mxu0 %vm149_vm0, %v109_v13  ;;  %v423_v18 = vmax.f32 %v276_v15, 0.0 }
  0xce   :  { %v277_v16 = vpop.f32.mrf.mxu0 }
  0xcf   :  { %v278_v17 = vadd.f32 %v3274_v38, %v277_v16 }
  0xd1   :  { %v424_v19 = vmax.f32 %v278_v17, 0.0 }
  0xd3   :  { %v483_v22 = vpack.c.bf16 %v424_v19, %v423_v18 }
  0xd5   :  { %607 = vmatmul.bf16.gmra.mxu1 %v483_v22  ;;  %v69_v22 = vld [vmem:[%s4143_s0 + $0x120] sm:$0xff] }
  0xd6   :  { %v280_v24 = vpop.f32.mrf.mxu0 }
  0xd7   :  { %v281_v25 = vadd.f32 %v3274_v38, %v280_v24 }
  0xd9   :  { %2656 = vmatmul.msk.bf16.gmra.mxu0 %vm149_vm0, %v110_v23  ;;  %v425_v29 = vmax.f32 %v281_v25, 0.0  ;;  %v70_v23 = vld [vmem:[%s4143_s0 + $0x128] sm:$0xff] }
  0xda   :  { %v115_v25 = vpack.c.bf16 %v70_v23, %v69_v22 }
  0xde   :  { %v282_v26 = vpop.f32.mrf.mxu0 }
  0xdf   :  { %v283_v28 = vadd.f32 %v3274_v38, %v282_v26 }
  0xe1   :  { %v426_v30 = vmax.f32 %v283_v28, 0.0 }
  0xe3   :  { %v484_v34 = vpack.c.bf16 %v426_v30, %v425_v29 }
  0xe5   :  { %612 = vmatmul.bf16.gmra.mxu1 %v484_v34 }
  0xe6   :  { %v285_v36 = vpop.f32.mrf.mxu0 }
  0xe7   :  { %v286_v40 = vadd.f32 %v3274_v38, %v285_v36 }
  0xe9   :  { %2657 = vmatmul.msk.bf16.gmra.mxu0 %vm149_vm0, %v111_v35  ;;  %v427_v44 = vmax.f32 %v286_v40, 0.0 }
  0xee   :  { %v287_v41 = vpop.f32.mrf.mxu0 }
  0xef   :  { %v288_v43 = vadd.f32 %v3274_v38, %v287_v41  ;;  %v116_v41 = vpack.c.bf16 %v72_v39, %v71_v37  ;;  %v80_v37 = vld [vmem:[%s4143_s0 + $0x178] sm:$0xff] }
  0xf1   :  { %v428_v45 = vmax.f32 %v288_v43, 0.0 }
  0xf3   :  { %v485_v49 = vpack.c.bf16 %v428_v45, %v427_v44 }
  0xf5   :  { %617 = vmatmul.bf16.gmra.mxu1 %v485_v49 }
  0xf6   :  { %v290_v51 = vpop.f32.mrf.mxu0 }
  0xf7   :  { %v291_v54 = vadd.f32 %v3274_v38, %v290_v51 }
  0xf9   :  { %2658 = vmatmul.msk.bf16.gmra.mxu0 %vm149_vm0, %v112_v50  ;;  %v429_v57 = vmax.f32 %v291_v54, 0.0  ;;  %v74_v54 = vld [vmem:[%s4143_s0 + $0x148] sm:$0xff] }
  0xfe   :  { %v292_v55 = vpop.f32.mrf.mxu0 }
  0xff   :  { %v293_v56 = vadd.f32 %v3274_v38, %v292_v55 }
 0x101   :  { %v430_v58 = vmax.f32 %v293_v56, 0.0  ;;  %v117_v56 = vpack.c.bf16 %v74_v54, %v73_v53 }
 0x103   :  { %v486_v61 = vpack.c.bf16 %v430_v58, %v429_v57 }
 0x105   :  { %622 = vmatmul.bf16.gmra.mxu1 %v486_v61 }
 0x106   :  { %v295_v63 = vpop.f32.mrf.mxu0 }
 0x107   :  { %v296_v0 = vadd.f32 %v3274_v38, %v295_v63 }
 0x109   :  { %2659 = vmatmul.msk.bf16.gmra.mxu0 %vm149_vm0, %v113_v62  ;;  %v431_v3 = vmax.f32 %v296_v0, 0.0 }
 0x10e   :  { %v297_v1 = vpop.f32.mrf.mxu0 }
 0x10f   :  { %v298_v2 = vadd.f32 %v3274_v38, %v297_v1 }
 0x111   :  { %v432_v4 = vmax.f32 %v298_v2, 0.0 }
 0x112   :  { %v588_v5 = vpop.f32.mrf.mxu1 }
 0x113   :  { %v487_v8 = vpack.c.bf16 %v432_v4, %v431_v3  ;;  %v589_v13 = vadd.f32 %v3384_v11, %v588_v5  ;;  %v75_v4 = vld [vmem:[%s4143_s0 + $0x150] sm:$0xff]  ;;  %v76_v5 = vld [vmem:[%s4143_s0 + $0x158] sm:$0xff] }
 0x114   :  { %v118_v7 = vpack.c.bf16 %v76_v5, %v75_v4 }
 0x115   :  { %627 = vmatmul.bf16.gmra.mxu1 %v487_v8 }
 0x116   :  { %v300_v10 = vpop.f32.mrf.mxu0 }
 0x117   :  { %v301_v15 = vadd.f32 %v3274_v38, %v300_v10 }
 0x119   :  { %2660 = vmatmul.msk.bf16.gmra.mxu0 %vm149_vm0, %v114_v9  ;;  %v433_v19 = vmax.f32 %v301_v15, 0.0 }
 0x11a   :  { %v590_v12 = vpop.f32.mrf.mxu1 }
 0x11b   :  { %v591_v14 = vadd.f32 %v3384_v11, %v590_v12 }
 0x11d   :  { %v748_v16 = vpack.c.bf16 %v591_v14, %v589_v13 }
 0x11e   :  { %v302_v17 = vpop.f32.mrf.mxu0 }
 0x11f   :  { %v303_v18 = vadd.f32 %v3274_v38, %v302_v17  ;;  %856 = vmatmul.bf16.vlgmr.msra.gmra.mxu2 %v748_v16 }
 0x121   :  { %v434_v20 = vmax.f32 %v303_v18, 0.0 }
 0x122   :  { %v593_v21 = vpop.f32.mrf.mxu1 }
 0x123   :  { %v488_v24 = vpack.c.bf16 %v434_v20, %v433_v19  ;;  %v594_v28 = vadd.f32 %v3384_v11, %v593_v21  ;;  %v77_v20 = vld [vmem:[%s4143_s0 + $0x160] sm:$0xff]  ;;  %v78_v21 = vld [vmem:[%s4143_s0 + $0x168] sm:$0xff] }
 0x124   :  { %v119_v23 = vpack.c.bf16 %v78_v21, %v77_v20 }
 0x125   :  { %632 = vmatmul.bf16.gmra.mxu1 %v488_v24 }
 0x126   :  { %v305_v26 = vpop.f32.mrf.mxu0 }
 0x127   :  { %v306_v30 = vadd.f32 %v3274_v38, %v305_v26 }
 0x129   :  { %2661 = vmatmul.msk.bf16.gmra.mxu0 %vm149_vm0, %v115_v25  ;;  %v435_v34 = vmax.f32 %v306_v30, 0.0 }
 0x12a   :  { %v595_v27 = vpop.f32.mrf.mxu1 }
 0x12b   :  { %v596_v29 = vadd.f32 %v3384_v11, %v595_v27 }
 0x12d   :  { %v749_v31 = vpack.c.bf16 %v596_v29, %v594_v28 }
 0x12e   :  { %v307_v32 = vpop.f32.mrf.mxu0 }
 0x12f   :  { %v308_v33 = vadd.f32 %v3274_v38, %v307_v32  ;;  %861 = vmatmul.bf16.gmra.mxu2 %v749_v31  ;;  %v2860_v32 = vld [vmem:[%s4149_s7 + $0x38] sm:$0xff] }
 0x130   :  { %1181 = vmatpush.bf16.msra.mxu3 %v2860_v32 }
 0x131   :  { %v436_v35 = vmax.f32 %v308_v33, 0.0 }
 0x132   :  { %v598_v36 = vpop.f32.mrf.mxu1 }
 0x133   :  { %v489_v40 = vpack.c.bf16 %v436_v35, %v435_v34  ;;  %v599_v44 = vadd.f32 %v3384_v11, %v598_v36  ;;  %v79_v36 = vld [vmem:[%s4143_s0 + $0x170] sm:$0xff] }
 0x135   :  { %637 = vmatmul.bf16.gmra.mxu1 %v489_v40  ;;  %v2859_v40 = vld [vmem:[%s4149_s7 + $0x30] sm:$0xff] }
 0x136   :  { %v310_v42 = vpop.f32.mrf.mxu0  ;;  %1182 = vmatpush.bf16.msra.mxu3 %v2859_v40 }
 0x137   :  { %v311_v46 = vadd.f32 %v3274_v38, %v310_v42 }
 0x139   :  { %2662 = vmatmul.msk.bf16.gmra.mxu0 %vm149_vm0, %v116_v41  ;;  %v437_v50 = vmax.f32 %v311_v46, 0.0  ;;  %v120_v41 = vpack.c.bf16 %v80_v37, %v79_v36 }
 0x13a   :  { %v600_v43 = vpop.f32.mrf.mxu1 }
 0x13b   :  { %v601_v45 = vadd.f32 %v3384_v11, %v600_v43  ;;  %v2858_v43 = vld [vmem:[%s4149_s7 + $0x28] sm:$0xff] }
 0x13c   :  { %1183 = vmatpush.bf16.msra.mxu3 %v2858_v43 }
 0x13d   :  { %v750_v47 = vpack.c.bf16 %v601_v45, %v599_v44 }
 0x13e   :  { %v312_v48 = vpop.f32.mrf.mxu0 }
 0x13f   :  { %v313_v49 = vadd.f32 %v3274_v38, %v312_v48  ;;  %866 = vmatmul.bf16.gmra.mxu2 %v750_v47  ;;  %v2857_v47 = vld [vmem:[%s4149_s7 + $0x20] sm:$0xff] }
 0x140   :  { %1184 = vmatpush.bf16.msra.mxu3 %v2857_v47 }
 0x141   :  { %v438_v51 = vmax.f32 %v313_v49, 0.0 }
 0x142   :  { %v603_v52 = vpop.f32.mrf.mxu1 }
 0x143   :  { %v490_v55 = vpack.c.bf16 %v438_v51, %v437_v50  ;;  %v604_v59 = vadd.f32 %v3384_v11, %v603_v52  ;;  %v2856_v52 = vld [vmem:[%s4149_s7 + $0x18] sm:$0xff] }
 0x144   :  { %1185 = vmatpush.bf16.msra.mxu3 %v2856_v52  ;;  %v88_v52 = vld [vmem:[%s4143_s0 + $0x1b8] sm:$0xff] }
 0x145   :  { %642 = vmatmul.bf16.gmra.mxu1 %v490_v55 }
 0x146   :  { %v315_v57 = vpop.f32.mrf.mxu0 }
 0x147   :  { %v316_v61 = vadd.f32 %v3274_v38, %v315_v57  ;;  %v82_v57 = vld [vmem:[%s4143_s0 + $0x188] sm:$0xff] }
 0x149   :  { %2663 = vmatmul.msk.bf16.gmra.mxu0 %vm149_vm0, %v117_v56  ;;  %v439_v1 = vmax.f32 %v316_v61, 0.0  ;;  %v81_v56 = vld [vmem:[%s4143_s0 + $0x180] sm:$0xff] }
 0x14a   :  { %v605_v58 = vpop.f32.mrf.mxu1 }
 0x14b   :  { %v606_v60 = vadd.f32 %v3384_v11, %v605_v58 }
 0x14d   :  { %v751_v62 = vpack.c.bf16 %v606_v60, %v604_v59  ;;  %v2855_v59 = vld [vmem:[%s4149_s7 + $0x10] sm:$0xff]  ;;  %v121_v60 = vpack.c.bf16 %v82_v57, %v81_v56 }
 0x14e   :  { %v317_v63 = vpop.f32.mrf.mxu0  ;;  %1186 = vmatpush.bf16.msra.mxu3 %v2855_v59 }
 0x14f   :  { %v318_v0 = vadd.f32 %v3274_v38, %v317_v63  ;;  %871 = vmatmul.bf16.gmra.mxu2 %v751_v62  ;;  %v2854_v62 = vld [vmem:[%s4149_s7 + $0x8] sm:$0xff] }
 0x151   :  { %v440_v2 = vmax.f32 %v318_v0, 0.0 }
 0x152   :  { %v608_v3 = vpop.f32.mrf.mxu1  ;;  %1187 = vmatpush.bf16.msra.mxu3 %v2854_v62 }
 0x153   :  { %v491_v6 = vpack.c.bf16 %v440_v2, %v439_v1  ;;  %v609_v10 = vadd.f32 %v3384_v11, %v608_v3  ;;  %v2853_v2 = vld [vmem:[%s4149_s7] sm:$0xff] }
 0x155   :  { %647 = vmatmul.bf16.gmra.mxu1 %v491_v6 }
 0x156   :  { %v320_v8 = vpop.f32.mrf.mxu0  ;;  %1188 = vmatpush.bf16.msra.mxu3 %v2853_v2 }
 0x157   :  { %v321_v13 = vadd.f32 %v3274_v38, %v320_v8 }
 0x159   :  { %2664 = vmatmul.msk.bf16.gmra.mxu0 %vm149_vm0, %v118_v7  ;;  %v441_v17 = vmax.f32 %v321_v13, 0.0 }
 0x15a   :  { %v610_v9 = vpop.f32.mrf.mxu1 }
 0x15b   :  { %v611_v12 = vadd.f32 %v3384_v11, %v610_v9 }
 0x15d   :  { %v752_v14 = vpack.c.bf16 %v611_v12, %v609_v10  ;;  %v83_v10 = vld [vmem:[%s4143_s0 + $0x190] sm:$0xff]  ;;  %v84_v12 = vld [vmem:[%s4143_s0 + $0x198] sm:$0xff] }
 0x15e   :  { %v322_v15 = vpop.f32.mrf.mxu0 }
 0x15f   :  { %v323_v16 = vadd.f32 %v3274_v38, %v322_v15  ;;  %876 = vmatmul.bf16.gmra.mxu2 %v752_v14  ;;  %v122_v14 = vpack.c.bf16 %v84_v12, %v83_v10  ;;  %v90_v10 = vld [vmem:[%s4143_s0 + $0x1c8] sm:$0xff] }
 0x161   :  { %v442_v18 = vmax.f32 %v323_v16, 0.0 }
 0x162   :  { %v613_v19 = vpop.f32.mrf.mxu1 }
 0x163   :  { %v492_v22 = vpack.c.bf16 %v442_v18, %v441_v17  ;;  %v614_v26 = vadd.f32 %v3384_v11, %v613_v19 }
 0x165   :  { %652 = vmatmul.bf16.gmra.mxu1 %v492_v22 }
 0x166   :  { %v325_v24 = vpop.f32.mrf.mxu0 }
 0x167   :  { %v326_v28 = vadd.f32 %v3274_v38, %v325_v24 }
 0x169   :  { %2665 = vmatmul.msk.bf16.gmra.mxu0 %vm149_vm0, %v119_v23  ;;  %v443_v33 = vmax.f32 %v326_v28, 0.0  ;;  %v86_v28 = vld [vmem:[%s4143_s0 + $0x1a8] sm:$0xff] }
 0x16a   :  { %v615_v25 = vpop.f32.mrf.mxu1 }
 0x16b   :  { %v616_v27 = vadd.f32 %v3384_v11, %v615_v25 }
 0x16d   :  { %v753_v29 = vpack.c.bf16 %v616_v27, %v614_v26  ;;  %v85_v27 = vld [vmem:[%s4143_s0 + $0x1a0] sm:$0xff] }
 0x16e   :  { %v327_v30 = vpop.f32.mrf.mxu0 }
 0x16f   :  { %v328_v31 = vadd.f32 %v3274_v38, %v327_v30  ;;  %881 = vmatmul.bf16.gmra.mxu2 %v753_v29  ;;  %v3512_v30 = vld [vmem:[%s4148_s6] ss:$0 sm:$0xff] }
 0x171   :  { %v444_v34 = vmax.f32 %v328_v31, 0.0  ;;  %v123_v31 = vpack.c.bf16 %v86_v28, %v85_v27 }
 0x172   :  { %v618_v35 = vpop.f32.mrf.mxu1 }
 0x173   :  { %v493_v39 = vpack.c.bf16 %v444_v34, %v443_v33  ;;  %v619_v45 = vadd.f32 %v3384_v11, %v618_v35 }
 0x175   :  { %657 = vmatmul.bf16.gmra.mxu1 %v493_v39 }
 0x176   :  { %v330_v42 = vpop.f32.mrf.mxu0 }
 0x177   :  { %v331_v48 = vadd.f32 %v3274_v38, %v330_v42 }
 0x179   :  { %2666 = vmatmul.msk.bf16.gmra.mxu0 %vm149_vm0, %v120_v41  ;;  %v445_v53 = vmax.f32 %v331_v48, 0.0 }
 0x17a   :  { %v620_v44 = vpop.f32.mrf.mxu1 }
 0x17b   :  { %v621_v46 = vadd.f32 %v3384_v11, %v620_v44 }
 0x17d   :  { %v754_v49 = vpack.c.bf16 %v621_v46, %v619_v45 }
 0x17e   :  { %v332_v50 = vpop.f32.mrf.mxu0 }
 0x17f   :  { %v333_v51 = vadd.f32 %v3274_v38, %v332_v50  ;;  %886 = vmatmul.bf16.gmra.mxu2 %v754_v49 }
 0x181   :  { %v446_v54 = vmax.f32 %v333_v51, 0.0  ;;  %v87_v51 = vld [vmem:[%s4143_s0 + $0x1b0] sm:$0xff] }
 0x182   :  { %v623_v55 = vpop.f32.mrf.mxu1 }
 0x183   :  { %v494_v58 = vpack.c.bf16 %v446_v54, %v445_v53  ;;  %v624_v0 = vadd.f32 %v3384_v11, %v623_v55  ;;  %v124_v54 = vpack.c.bf16 %v88_v52, %v87_v51 }
 0x185   :  { %662 = vmatmul.bf16.gmra.mxu1 %v494_v58 }
 0x186   :  { %v335_v61 = vpop.f32.mrf.mxu0 }
 0x187   :  { %v336_v3 = vadd.f32 %v3274_v38, %v335_v61 }
 0x189   :  { %2667 = vmatmul.msk.bf16.gmra.mxu0 %vm149_vm0, %v121_v60  ;;  %v447_v7 = vmax.f32 %v336_v3, 0.0 }
 0x18a   :  { %v625_v63 = vpop.f32.mrf.mxu1 }
 0x18b   :  { %v626_v1 = vadd.f32 %v3384_v11, %v625_v63 }
 0x18d   :  { %v755_v4 = vpack.c.bf16 %v626_v1, %v624_v0 }
 0x18e   :  { %v337_v5 = vpop.f32.mrf.mxu0 }
 0x18f   :  { %v338_v6 = vadd.f32 %v3274_v38, %v337_v5  ;;  %891 = vmatmul.bf16.gmra.mxu2 %v755_v4 }
 0x191   :  { %v448_v8 = vmax.f32 %v338_v6, 0.0 }
 0x192   :  { %v628_v9 = vpop.f32.mrf.mxu1 }
 0x193   :  { %v495_v13 = vpack.c.bf16 %v448_v8, %v447_v7  ;;  %v629_v17 = vadd.f32 %v3384_v11, %v628_v9  ;;  %v89_v9 = vld [vmem:[%s4143_s0 + $0x1c0] sm:$0xff] }
 0x195   :  { %667 = vmatmul.bf16.gmra.mxu1 %v495_v13  ;;  %v125_v13 = vpack.c.bf16 %v90_v10, %v89_v9 }
 0x196   :  { %v340_v15 = vpop.f32.mrf.mxu0 }
 0x197   :  { %v341_v19 = vadd.f32 %v3274_v38, %v340_v15 }
 0x199   :  { %2668 = vmatmul.msk.bf16.gmra.mxu0 %vm149_vm0, %v122_v14  ;;  %v449_v23 = vmax.f32 %v341_v19, 0.0 }
 0x19a   :  { %v630_v16 = vpop.f32.mrf.mxu1 }
 0x19b   :  { %v631_v18 = vadd.f32 %v3384_v11, %v630_v16 }
 0x19d   :  { %v756_v20 = vpack.c.bf16 %v631_v18, %v629_v17 }
 0x19e   :  { %v342_v21 = vpop.f32.mrf.mxu0 }
 0x19f   :  { %v343_v22 = vadd.f32 %v3274_v38, %v342_v21  ;;  %896 = vmatmul.bf16.gmra.mxu2 %v756_v20 }
 0x1a1   :  { %v450_v24 = vmax.f32 %v343_v22, 0.0 }
 0x1a2   :  { %v633_v25 = vpop.f32.mrf.mxu1  ;;  %v857_v26 = vpop.f32.mrf.mxu2 }
 0x1a3   :  { %v496_v29 = vpack.c.bf16 %v450_v24, %v449_v23  ;;  %v858_v33 = vadd.f32 %v3512_v30, %v857_v26  ;;  %v634_v36 = vadd.f32 %v3384_v11, %v633_v25 }
 0x1a5   :  { %672 = vmatmul.bf16.gmra.mxu1 %v496_v29  ;;  %v1017_v40 = vmax.f32 %v858_v33, 0.0  ;;  %v91_v33 = vld [vmem:[%s4143_s0 + $0x1d0] sm:$0xff] }
 0x1a6   :  { %v345_v32 = vpop.f32.mrf.mxu0 }
 0x1a7   :  { %v346_v41 = vadd.f32 %v3274_v38, %v345_v32 }
 0x1a9   :  { %2669 = vmatmul.msk.bf16.gmra.mxu0 %vm149_vm0, %v123_v31  ;;  %v451_v47 = vmax.f32 %v346_v41, 0.0 }
 0x1aa   :  { %v635_v34 = vpop.f32.mrf.mxu1  ;;  %v859_v35 = vpop.f32.mrf.mxu2 }
 0x1ab   :  { %v636_v37 = vadd.f32 %v3384_v11, %v635_v34  ;;  %v860_v39 = vadd.f32 %v3512_v30, %v859_v35  ;;  %v92_v34 = vld [vmem:[%s4143_s0 + $0x1d8] sm:$0xff] }
 0x1ad   :  { %v1018_v42 = vmax.f32 %v860_v39, 0.0  ;;  %v757_v43 = vpack.c.bf16 %v636_v37, %v634_v36  ;;  %v126_v36 = vpack.c.bf16 %v92_v34, %v91_v33 }
 0x1ae   :  { %v347_v44 = vpop.f32.mrf.mxu0 }
 0x1af   :  { %v348_v45 = vadd.f32 %v3274_v38, %v347_v44  ;;  %901 = vmatmul.bf16.gmra.mxu2 %v757_v43  ;;  %v1081_v46 = vpack.c.bf16 %v1018_v42, %v1017_v40 }
 0x1b1   :  { %v452_v48 = vmax.f32 %v348_v45, 0.0  ;;  %1189 = vmatmul.bf16.vlgmr.msra.gmra.mxu3 %v1081_v46 }
 0x1b2   :  { %v638_v49 = vpop.f32.mrf.mxu1  ;;  %v862_v50 = vpop.f32.mrf.mxu2 }
 0x1b3   :  { %v497_v53 = vpack.c.bf16 %v452_v48, %v451_v47  ;;  %v863_v56 = vadd.f32 %v3512_v30, %v862_v50  ;;  %v639_v59 = vadd.f32 %v3384_v11, %v638_v49 }
 0x1b5   :  { %677 = vmatmul.bf16.gmra.mxu1 %v497_v53  ;;  %v1019_v62 = vmax.f32 %v863_v56, 0.0  ;;  %v93_v56 = vld [vmem:[%s4143_s0 + $0x1e0] sm:$0xff] }
 0x1b6   :  { %v350_v55 = vpop.f32.mrf.mxu0 }
 0x1b7   :  { %v351_v63 = vadd.f32 %v3274_v38, %v350_v55 }
 0x1b9   :  { %2670 = vmatmul.msk.bf16.gmra.mxu0 %vm149_vm0, %v124_v54  ;;  %v453_v5 = vmax.f32 %v351_v63, 0.0 }
 0x1ba   :  { %v640_v57 = vpop.f32.mrf.mxu1  ;;  %v864_v58 = vpop.f32.mrf.mxu2 }
 0x1bb   :  { %v641_v60 = vadd.f32 %v3384_v11, %v640_v57  ;;  %v865_v61 = vadd.f32 %v3512_v30, %v864_v58  ;;  %v94_v57 = vld [vmem:[%s4143_s0 + $0x1e8] sm:$0xff] }
 0x1bd   :  { %v1020_v0 = vmax.f32 %v865_v61, 0.0  ;;  %v758_v1 = vpack.c.bf16 %v641_v60, %v639_v59  ;;  %v127_v59 = vpack.c.bf16 %v94_v57, %v93_v56 }
 0x1be   :  { %v352_v2 = vpop.f32.mrf.mxu0 }
 0x1bf   :  { %v353_v3 = vadd.f32 %v3274_v38, %v352_v2  ;;  %906 = vmatmul.bf16.gmra.mxu2 %v758_v1  ;;  %v1082_v4 = vpack.c.bf16 %v1020_v0, %v1019_v62 }
 0x1c1   :  { %v454_v6 = vmax.f32 %v353_v3, 0.0  ;;  %1194 = vmatmul.bf16.gmra.mxu3 %v1082_v4 }
 0x1c2   :  { %v643_v7 = vpop.f32.mrf.mxu1  ;;  %v867_v8 = vpop.f32.mrf.mxu2 }
 0x1c3   :  { %v498_v12 = vpack.c.bf16 %v454_v6, %v453_v5  ;;  %v868_v15 = vadd.f32 %v3512_v30, %v867_v8  ;;  %v644_v18 = vadd.f32 %v3384_v11, %v643_v7 }
 0x1c5   :  { %682 = vmatmul.bf16.gmra.mxu1 %v498_v12  ;;  %v1021_v21 = vmax.f32 %v868_v15, 0.0  ;;  %v95_v15 = vld [vmem:[%s4143_s0 + $0x1f0] sm:$0xff] }
 0x1c6   :  { %v355_v14 = vpop.f32.mrf.mxu0 }
 0x1c7   :  { %v356_v22 = vadd.f32 %v3274_v38, %v355_v14 }
 0x1c9   :  { %2671 = vmatmul.msk.bf16.gmra.mxu0 %vm149_vm0, %v125_v13  ;;  %v455_v28 = vmax.f32 %v356_v22, 0.0 }
 0x1ca   :  { %v645_v16 = vpop.f32.mrf.mxu1  ;;  %v869_v17 = vpop.f32.mrf.mxu2 }
 0x1cb   :  { %v646_v19 = vadd.f32 %v3384_v11, %v645_v16  ;;  %v870_v20 = vadd.f32 %v3512_v30, %v869_v17  ;;  %v96_v16 = vld [vmem:[%s4143_s0 + $0x1f8] sm:$0xff] }
 0x1cd   :  { %v1022_v23 = vmax.f32 %v870_v20, 0.0  ;;  %v759_v24 = vpack.c.bf16 %v646_v19, %v644_v18  ;;  %v128_v18 = vpack.c.bf16 %v96_v16, %v95_v15 }
 0x1ce   :  { %v357_v25 = vpop.f32.mrf.mxu0 }
 0x1cf   :  { %v358_v26 = vadd.f32 %v3274_v38, %v357_v25  ;;  %911 = vmatmul.bf16.gmra.mxu2 %v759_v24  ;;  %v1083_v27 = vpack.c.bf16 %v1022_v23, %v1021_v21 }
 0x1d1   :  { %v456_v29 = vmax.f32 %v358_v26, 0.0  ;;  %1199 = vmatmul.bf16.gmra.mxu3 %v1083_v27 }
 0x1d2   :  { %v648_v31 = vpop.f32.mrf.mxu1  ;;  %v872_v32 = vpop.f32.mrf.mxu2 }
 0x1d3   :  { %v499_v35 = vpack.c.bf16 %v456_v29, %v455_v28  ;;  %v873_v39 = vadd.f32 %v3512_v30, %v872_v32  ;;  %v649_v42 = vadd.f32 %v3384_v11, %v648_v31 }
 0x1d5   :  { %687 = vmatmul.bf16.gmra.mxu1 %v499_v35  ;;  %v1023_v45 = vmax.f32 %v873_v39, 0.0 }
 0x1d6   :  { %v360_v37 = vpop.f32.mrf.mxu0 }
 0x1d7   :  { %v361_v46 = vadd.f32 %v3274_v38, %v360_v37 }
 0x1d9   :  { %2672 = vmatmul.msk.bf16.gmra.mxu0 %vm149_vm0, %v126_v36  ;;  %v457_v52 = vmax.f32 %v361_v46, 0.0 }
 0x1da   :  { %v650_v40 = vpop.f32.mrf.mxu1  ;;  %v874_v41 = vpop.f32.mrf.mxu2 }
 0x1db   :  { %v651_v43 = vadd.f32 %v3384_v11, %v650_v40  ;;  %v875_v44 = vadd.f32 %v3512_v30, %v874_v41 }
 0x1dd   :  { %v760_v47 = vpack.c.bf16 %v651_v43, %v649_v42  ;;  %v1024_v48 = vmax.f32 %v875_v44, 0.0 }
 0x1de   :  { %v362_v49 = vpop.f32.mrf.mxu0 }
 0x1df   :  { %v363_v50 = vadd.f32 %v3274_v38, %v362_v49  ;;  %916 = vmatmul.bf16.gmra.mxu2 %v760_v47  ;;  %v1084_v51 = vpack.c.bf16 %v1024_v48, %v1023_v45 }
 0x1e1   :  { %v458_v53 = vmax.f32 %v363_v50, 0.0  ;;  %1204 = vmatmul.bf16.gmra.mxu3 %v1084_v51 }
 0x1e2   :  { %v653_v54 = vpop.f32.mrf.mxu1  ;;  %v877_v55 = vpop.f32.mrf.mxu2 }
 0x1e3   :  { %v500_v58 = vpack.c.bf16 %v458_v53, %v457_v52  ;;  %v878_v61 = vadd.f32 %v3512_v30, %v877_v55  ;;  %v654_v0 = vadd.f32 %v3384_v11, %v653_v54 }
 0x1e5   :  { %692 = vmatmul.bf16.gmra.mxu1 %v500_v58  ;;  %v1025_v3 = vmax.f32 %v878_v61, 0.0 }
 0x1e6   :  { %v365_v60 = vpop.f32.mrf.mxu0 }
 0x1e7   :  { %v366_v4 = vadd.f32 %v3274_v38, %v365_v60 }
 0x1e9   :  { %2673 = vmatmul.msk.bf16.gmra.mxu0 %vm149_vm0, %v127_v59  ;;  %v459_v10 = vmax.f32 %v366_v4, 0.0 }
 0x1ea   :  { %v655_v62 = vpop.f32.mrf.mxu1  ;;  %v879_v63 = vpop.f32.mrf.mxu2 }
 0x1eb   :  { %v656_v1 = vadd.f32 %v3384_v11, %v655_v62  ;;  %v880_v2 = vadd.f32 %v3512_v30, %v879_v63 }
 0x1ed   :  { %v761_v5 = vpack.c.bf16 %v656_v1, %v654_v0  ;;  %v1026_v6 = vmax.f32 %v880_v2, 0.0 }
 0x1ee   :  { %v367_v7 = vpop.f32.mrf.mxu0 }
 0x1ef   :  { %v368_v8 = vadd.f32 %v3274_v38, %v367_v7  ;;  %921 = vmatmul.bf16.gmra.mxu2 %v761_v5  ;;  %v1085_v9 = vpack.c.bf16 %v1026_v6, %v1025_v3 }
 0x1f1   :  { %v460_v12 = vmax.f32 %v368_v8, 0.0  ;;  %1209 = vmatmul.bf16.gmra.mxu3 %v1085_v9 }
 0x1f2   :  { %v658_v13 = vpop.f32.mrf.mxu1  ;;  %v882_v14 = vpop.f32.mrf.mxu2 }
 0x1f3   :  { %v501_v17 = vpack.c.bf16 %v460_v12, %v459_v10  ;;  %v883_v20 = vadd.f32 %v3512_v30, %v882_v14  ;;  %v659_v23 = vadd.f32 %v3384_v11, %v658_v13 }
 0x1f5   :  { %697 = vmatmul.bf16.gmra.mxu1 %v501_v17  ;;  %v1027_v26 = vmax.f32 %v883_v20, 0.0 }
 0x1f6   :  { %v370_v19 = vpop.f32.mrf.mxu0 }
 0x1f7   :  { %v371_v27 = vadd.f32 %v3274_v38, %v370_v19 }
 0x1f9   :  { %2674 = vmatmul.msk.bf16.gmra.mxu0 %vm149_vm0, %v128_v18  ;;  %v461_v34 = vmax.f32 %v371_v27, 0.0 }
 0x1fa   :  { %v660_v21 = vpop.f32.mrf.mxu1  ;;  %v884_v22 = vpop.f32.mrf.mxu2 }
 0x1fb   :  { %v661_v24 = vadd.f32 %v3384_v11, %v660_v21  ;;  %v885_v25 = vadd.f32 %v3512_v30, %v884_v22  ;;  %v3605_v22 = vld [vmem:[%s4144_s2] ss:$0 sm:$0xff] }
 0x1fd   :  { %v762_v28 = vpack.c.bf16 %v661_v24, %v659_v23  ;;  %v1028_v29 = vmax.f32 %v885_v25, 0.0 }
 0x1fe   :  { %v372_v31 = vpop.f32.mrf.mxu0 }
 0x1ff   :  { %v373_v32 = vadd.f32 %v3274_v38, %v372_v31  ;;  %926 = vmatmul.bf16.gmra.mxu2 %v762_v28  ;;  %v1086_v33 = vpack.c.bf16 %v1028_v29, %v1027_v26 }
 0x201   :  { %v462_v35 = vmax.f32 %v373_v32, 0.0  ;;  %1214 = vmatmul.bf16.gmra.mxu3 %v1086_v33  ;;  %v3612_v32 = vld [vmem:[%s4150_s8] ss:$0 sm:$0xff] }
 0x202   :  { %v663_v36 = vpop.f32.mrf.mxu1  ;;  %v887_v37 = vpop.f32.mrf.mxu2 }
 0x203   :  { %v502_v39 = vpack.c.bf16 %v462_v35, %v461_v34  ;;  %v888_v41 = vadd.f32 %v3512_v30, %v887_v37  ;;  %v664_v44 = vadd.f32 %v3384_v11, %v663_v36 }
 0x205   :  { %702 = vmatmul.bf16.gmra.mxu1 %v502_v39  ;;  %v1029_v47 = vmax.f32 %v888_v41, 0.0 }
 0x206   :  { %v375_v40 = vpop.f32.mrf.mxu0 }
 0x207   :  { %v376_v48 = vadd.f32 %v3274_v38, %v375_v40 }
 0x209   :  { %v463_v54 = vmax.f32 %v376_v48, 0.0 }
 0x20a   :  { %v665_v42 = vpop.f32.mrf.mxu1  ;;  %v889_v43 = vpop.f32.mrf.mxu2 }
 0x20b   :  { %v666_v45 = vadd.f32 %v3384_v11, %v665_v42  ;;  %v890_v46 = vadd.f32 %v3512_v30, %v889_v43 }
 0x20d   :  { %v763_v49 = vpack.c.bf16 %v666_v45, %v664_v44  ;;  %v1030_v50 = vmax.f32 %v890_v46, 0.0 }
 0x20e   :  { %v377_v51 = vpop.f32.mrf.mxu0 }
 0x20f   :  { %v378_v52 = vadd.f32 %v3274_v38, %v377_v51  ;;  %931 = vmatmul.bf16.gmra.mxu2 %v763_v49  ;;  %v1087_v53 = vpack.c.bf16 %v1030_v50, %v1029_v47 }
 0x211   :  { %v464_v55 = vmax.f32 %v378_v52, 0.0  ;;  %1219 = vmatmul.bf16.gmra.mxu3 %v1087_v53 }
 0x212   :  { %v668_v56 = vpop.f32.mrf.mxu1  ;;  %v892_v57 = vpop.f32.mrf.mxu2 }
 0x213   :  { %v503_v58 = vpack.c.bf16 %v464_v55, %v463_v54  ;;  %v893_v60 = vadd.f32 %v3512_v30, %v892_v57  ;;  %v669_v63 = vadd.f32 %v3384_v11, %v668_v56 }
 0x215   :  { %707 = vmatmul.bf16.gmra.mxu1 %v503_v58  ;;  %v1031_v2 = vmax.f32 %v893_v60, 0.0 }
 0x216   :  { %v380_v59 = vpop.f32.mrf.mxu0 }
 0x217   :  { %v381_v3 = vadd.f32 %v3274_v38, %v380_v59 }
 0x219   :  { %v465_v9 = vmax.f32 %v381_v3, 0.0 }
 0x21a   :  { %v670_v61 = vpop.f32.mrf.mxu1  ;;  %v894_v62 = vpop.f32.mrf.mxu2 }
 0x21b   :  { %v671_v0 = vadd.f32 %v3384_v11, %v670_v61  ;;  %v895_v1 = vadd.f32 %v3512_v30, %v894_v62 }
 0x21d   :  { %v764_v4 = vpack.c.bf16 %v671_v0, %v669_v63  ;;  %v1032_v5 = vmax.f32 %v895_v1, 0.0 }
 0x21e   :  { %v382_v6 = vpop.f32.mrf.mxu0 }
 0x21f   :  { %v383_v7 = vadd.f32 %v3274_v38, %v382_v6  ;;  %936 = vmatmul.bf16.gmra.mxu2 %v764_v4  ;;  %v1088_v8 = vpack.c.bf16 %v1032_v5, %v1031_v2 }
 0x221   :  { %v466_v10 = vmax.f32 %v383_v7, 0.0  ;;  %1224 = vmatmul.bf16.gmra.mxu3 %v1088_v8 }
 0x222   :  { %v673_v12 = vpop.f32.mrf.mxu1  ;;  %v897_v13 = vpop.f32.mrf.mxu2 }
 0x223   :  { %v504_v14 = vpack.c.bf16 %v466_v10, %v465_v9  ;;  %v898_v16 = vadd.f32 %v3512_v30, %v897_v13  ;;  %v674_v19 = vadd.f32 %v3384_v11, %v673_v12 }
 0x225   :  { %712 = vmatmul.bf16.gmra.mxu1 %v504_v14  ;;  %v1033_v21 = vmax.f32 %v898_v16, 0.0 }
 0x226   :  { %v385_v15 = vpop.f32.mrf.mxu0 }
 0x227   :  { %v386_v23 = vadd.f32 %v3605_v22, %v385_v15 }
 0x229   :  { %v467_v29 = vmax.f32 %v386_v23, 0.0 }
 0x22a   :  { %v675_v17 = vpop.f32.mrf.mxu1  ;;  %v899_v18 = vpop.f32.mrf.mxu2 }
 0x22b   :  { %v676_v20 = vadd.f32 %v3384_v11, %v675_v17  ;;  %v900_v38 = vadd.f32 %v3512_v30, %v899_v18 }
 0x22d   :  { %v765_v24 = vpack.c.bf16 %v676_v20, %v674_v19  ;;  %v1034_v25 = vmax.f32 %v900_v38, 0.0 }
 0x22e   :  { %v387_v26 = vpop.f32.mrf.mxu0 }
 0x22f   :  { %v388_v27 = vadd.f32 %v3605_v22, %v387_v26  ;;  %941 = vmatmul.bf16.gmra.mxu2 %v765_v24  ;;  %v1089_v28 = vpack.c.bf16 %v1034_v25, %v1033_v21 }
 0x231   :  { %v468_v31 = vmax.f32 %v388_v27, 0.0  ;;  %1229 = vmatmul.bf16.gmra.mxu3 %v1089_v28 }
 0x232   :  { %v678_v33 = vpop.f32.mrf.mxu1  ;;  %v902_v34 = vpop.f32.mrf.mxu2 }
 0x233   :  { %v505_v35 = vpack.c.bf16 %v468_v31, %v467_v29  ;;  %v903_v41 = vadd.f32 %v3512_v30, %v902_v34  ;;  %v679_v44 = vadd.f32 %v3384_v11, %v678_v33 }
 0x234   :  { %v1190_v36 = vpop.f32.mrf.mxu3 }
 0x235   :  { %v1191_v37 = vadd.f32 %v3612_v32, %v1190_v36  ;;  %717 = vmatmul.bf16.gmra.mxu1 %v505_v35  ;;  %v1035_v47 = vmax.f32 %v903_v41, 0.0 }
 0x236   :  { %v390_v39 = vpop.f32.mrf.mxu0 }
 0x237   :  { %v2771_v40 = vmul.f32 -1.442695, %v1191_v37  ;;  %v391_v49 = vadd.f32 %v3605_v22, %v390_v39 }
 0x239   :  { %2865 = vpow2.f32 %v2771_v40  ;;  %v469_v59 = vmax.f32 %v391_v49, 0.0 }
 0x23a   :  { %v680_v42 = vpop.f32.mrf.mxu1  ;;  %v904_v43 = vpop.f32.mrf.mxu2 }
 0x23b   :  { %v681_v45 = vadd.f32 %v3384_v11, %v680_v42  ;;  %v905_v46 = vadd.f32 %v3512_v30, %v904_v43 }
 0x23c   :  { %v1192_v48 = vpop.f32.mrf.mxu3 }
 0x23d   :  { %v766_v50 = vpack.c.bf16 %v681_v45, %v679_v44  ;;  %v1036_v51 = vmax.f32 %v905_v46, 0.0  ;;  %v1193_v52 = vadd.f32 %v3612_v32, %v1192_v48 }
 0x23e   :  { %v392_v53 = vpop.f32.mrf.mxu0 }
 0x23f   :  { %v2866_v54 = vpop.eup %2865  ;;  %v2772_v55 = vmul.f32 -1.442695, %v1193_v52  ;;  %v393_v56 = vadd.f32 %v3605_v22, %v392_v53  ;;  %946 = vmatmul.bf16.gmra.mxu2 %v766_v50  ;;  %v1090_v57 = vpack.c.bf16 %v1036_v51, %v1035_v47 }
 0x240   :  { %v1542_v58 = vadd.f32 1.0, %v2866_v54 }
 0x241   :  { %2867 = vpow2.f32 %v2772_v55  ;;  %v470_v60 = vmax.f32 %v393_v56, 0.0  ;;  %1234 = vmatmul.bf16.gmra.mxu3 %v1090_v57 }
 0x242   :  { %2869 = vrcp.f32 %v1542_v58  ;;  %v683_v61 = vpop.f32.mrf.mxu1  ;;  %v907_v62 = vpop.f32.mrf.mxu2  ;;  %v1615_v16 = vand.u32 2147483647, %v1542_v58  ;;  %v1617_v17 = vand.u32 2147483648, %v1542_v58  ;;  %vm1611_vm2 = vweird.f32 %v1542_v58 }
 0x243   :  { %v506_v63 = vpack.c.bf16 %v470_v60, %v469_v59  ;;  %v908_v7 = vadd.f32 %v3512_v30, %v907_v62  ;;  %v684_v13 = vadd.f32 %v3384_v11, %v683_v61 }
 0x244   :  { %v1195_v0 = vpop.f32.mrf.mxu3  ;;  %v1618_v33 = vor.u32 1.1754944e-38, %v1617_v17  ;;  %vm1616_vm5 = vcmp.eq.f32.partialorder %v1615_v16, 8.507059e+37 }
 0x245   :  { %v1196_v1 = vadd.f32 %v3612_v32, %v1195_v0  ;;  %722 = vmatmul.bf16.gmra.mxu1 %v506_v63  ;;  %v1037_v18 = vmax.f32 %v908_v7, 0.0  ;;  %v3658_v0 = vld [vmem:[%s4146_s4] ss:$0 sm:$0xff] }
 0x246   :  { %v395_v2 = vpop.f32.mrf.mxu0 }
 0x247   :  { %v2868_v3 = vpop.eup %2867  ;;  %v2773_v4 = vmul.f32 -1.442695, %v1196_v1  ;;  %v396_v24 = vadd.f32 %v3605_v22, %v395_v2 }
 0x248   :  { %v2870_v5 = vpop.eup %2869  ;;  %v3623_v6 = vadd.f32 1.0, %v2868_v3 }
 0x249   :  { %v1607_v8 = vmul.f32 %v2870_v5, %v1542_v58  ;;  %2871 = vpow2.f32 %v2773_v4  ;;  %vm1612_vm1 = vweird.f32 %v2870_v5  ;;  %v471_v42 = vmax.f32 %v396_v24, 0.0 }
 0x24a   :  { %2873 = vrcp.f32 %v3623_v6  ;;  %v685_v9 = vpop.f32.mrf.mxu1  ;;  %v909_v10 = vpop.f32.mrf.mxu2  ;;  %vm1613_vm3 = vmor %vm1611_vm2, %vm1612_vm1  ;;  %v1630_v44 = vand.u32 2147483647, %v3623_v6  ;;  %v1632_v45 = vand.u32 2147483648, %v3623_v6  ;;  %vm1626_vm7 = vweird.f32 %v3623_v6 }
 0x24b   :  { %v1608_v12 = vsub.f32 1.0, %v1607_v8  ;;  %v686_v14 = vadd.f32 %v3384_v11, %v685_v9  ;;  %v910_v15 = vadd.f32 %v3512_v30, %v909_v10 }
 0x24c   :  { %v1197_v19 = vpop.f32.mrf.mxu3  ;;  %v1633_v55 = vor.u32 1.1754944e-38, %v1632_v45  ;;  %vm1631_vm9 = vcmp.eq.f32.partialorder %v1630_v44, 8.507059e+37 }
 0x24d   :  { %v1609_v20 = vmul.f32 %v2870_v5, %v1608_v12  ;;  %v767_v38 = vpack.c.bf16 %v686_v14, %v684_v13  ;;  %v1038_v21 = vmax.f32 %v910_v15, 0.0  ;;  %v1198_v23 = vadd.f32 %v3612_v32, %v1197_v19 }
 0x24e   :  { %v397_v25 = vpop.f32.mrf.mxu0 }
 0x24f   :  { %v2872_v26 = vpop.eup %2871  ;;  %v1610_v27 = vadd.f32 %v2870_v5, %v1609_v20  ;;  %v2774_v28 = vmul.f32 -1.442695, %v1198_v23  ;;  %v398_v11 = vadd.f32 %v3605_v22, %v397_v25  ;;  %951 = vmatmul.bf16.gmra.mxu2 %v767_v38  ;;  %v1091_v29 = vpack.c.bf16 %v1038_v21, %v1037_v18 }
 0x250   :  { %v2874_v31 = vpop.eup %2873  ;;  %v3634_v34 = vadd.f32 1.0, %v2872_v26 }
 0x251   :  { %v1614_v35 = vsel %vm1613_vm3, %v2870_v5, %v1610_v27  ;;  %v1622_v36 = vmul.f32 %v2874_v31, %v3623_v6  ;;  %2875 = vpow2.f32 %v2774_v28  ;;  %1239 = vmatmul.bf16.gmra.mxu3 %v1091_v29  ;;  %v472_v43 = vmax.f32 %v398_v11, 0.0 }
 0x252   :  { %v1619_v37 = vsel %vm1616_vm5, %v1618_v33, %v1614_v35  ;;  %2877 = vrcp.f32 %v3634_v34  ;;  %v688_v39 = vpop.f32.mrf.mxu1  ;;  %v912_v40 = vpop.f32.mrf.mxu2  ;;  %vm1627_vm6 = vweird.f32 %v2874_v31  ;;  %v1645_v3 = vand.u32 2147483647, %v3634_v34 }
 0x253   :  { %2567 = vst.msk [vmem:[%s4151_s9] sm:$0xff] %vm2566_vm4, %v1619_v37  ;;  %v1623_v41 = vsub.f32 1.0, %v1622_v36  ;;  %v507_v48 = vpack.c.bf16 %v472_v43, %v471_v42  ;;  %vm1628_vm8 = vmor %vm1626_vm7, %vm1627_vm6  ;;  %v913_v60 = vadd.f32 %v3512_v30, %v912_v40  ;;  %v689_v1 = vadd.f32 %v3658_v0, %v688_v39 }
 0x254   :  { %v1200_v46 = vpop.f32.mrf.mxu3  ;;  %v1647_v4 = vand.u32 2147483648, %v3634_v34  ;;  %vm1641_vm11 = vweird.f32 %v3634_v34  ;;  %vm1646_vm13 = vcmp.eq.f32.partialorder %v1645_v3, 8.507059e+37 }
 0x255   :  { %v1624_v47 = vmul.f32 %v2874_v31, %v1623_v41  ;;  %v1201_v49 = vadd.f32 %v3612_v32, %v1200_v46  ;;  %727 = vmatmul.bf16.gmra.mxu1 %v507_v48  ;;  %v1039_v10 = vmax.f32 %v913_v60, 0.0 }
 0x256   :  { %v400_v50 = vpop.f32.mrf.mxu0  ;;  %v1648_v20 = vor.u32 1.1754944e-38, %v1647_v4 }
 0x257   :  { %v2876_v51 = vpop.eup %2875  ;;  %v1625_v52 = vadd.f32 %v2874_v31, %v1624_v47  ;;  %v2775_v53 = vmul.f32 -1.442695, %v1201_v49  ;;  %v401_v16 = vadd.f32 %v3605_v22, %v400_v50 }
 0x258   :  { %v2878_v54 = vpop.eup %2877  ;;  %v3646_v56 = vadd.f32 1.0, %v2876_v51 }
 0x259   :  { %v1629_v57 = vsel %vm1628_vm8, %v2874_v31, %v1625_v52  ;;  %v1637_v58 = vmul.f32 %v2878_v54, %v3634_v34  ;;  %2879 = vpow2.f32 %v2775_v53  ;;  %vm1642_vm10 = vweird.f32 %v2878_v54 }
 0x25a   :  { %v1634_v59 = vsel %vm1631_vm9, %v1633_v55, %v1629_v57  ;;  %2881 = vrcp.f32 %v3646_v56  ;;  %v690_v61 = vpop.f32.mrf.mxu1  ;;  %v914_v62 = vpop.f32.mrf.mxu2  ;;  %vm1643_vm12 = vmor %vm1641_vm11, %vm1642_vm10  ;;  %v473_v11 = vmax.f32 %v401_v16, 0.0  ;;  %v1660_v31 = vand.u32 2147483647, %v3646_v56 }
 0x25b   :  { %2568 = vst.msk [vmem:[%s4151_s9 + $0x8] sm:$0xff] %vm2566_vm4, %v1634_v59  ;;  %v1638_v63 = vsub.f32 1.0, %v1637_v58  ;;  %v691_v2 = vadd.f32 %v3658_v0, %v690_v61  ;;  %v915_v5 = vadd.f32 %v3512_v30, %v914_v62  ;;  %v1662_v33 = vand.u32 2147483648, %v3646_v56 }
 0x25c   :  { %v1202_v6 = vpop.f32.mrf.mxu3  ;;  %vm1656_vm15 = vweird.f32 %v3646_v56  ;;  %vm1661_vm1 = vcmp.eq.f32.partialorder %v1660_v31, 8.507059e+37 }
 0x25d   :  { %v1639_v7 = vmul.f32 %v2878_v54, %v1638_v63  ;;  %v768_v8 = vpack.c.bf16 %v691_v2, %v689_v1  ;;  %v1203_v9 = vadd.f32 %v3612_v32, %v1202_v6  ;;  %v1040_v12 = vmax.f32 %v915_v5, 0.0 }
 0x25e   :  { %v402_v13 = vpop.f32.mrf.mxu0  ;;  %v1663_v44 = vor.u32 1.1754944e-38, %v1662_v33 }
 0x25f   :  { %v2880_v14 = vpop.eup %2879  ;;  %v1640_v15 = vadd.f32 %v2878_v54, %v1639_v7  ;;  %v2776_v17 = vmul.f32 -1.442695, %v1203_v9  ;;  %v403_v18 = vadd.f32 %v3605_v22, %v402_v13  ;;  %956 = vmatmul.bf16.gmra.mxu2 %v768_v8  ;;  %v1092_v21 = vpack.c.bf16 %v1040_v12, %v1039_v10 }
 0x260   :  { %v2882_v19 = vpop.eup %2881  ;;  %v3669_v38 = vadd.f32 1.0, %v2880_v14 }
 0x261   :  { %v1644_v23 = vsel %vm1643_vm12, %v2878_v54, %v1640_v15  ;;  %v1652_v24 = vmul.f32 %v2882_v19, %v3646_v56  ;;  %2883 = vpow2.f32 %v2776_v17  ;;  %1244 = vmatmul.bf16.gmra.mxu3 %v1092_v21  ;;  %v474_v29 = vmax.f32 %v403_v18, 0.0 }
 0x262   :  { %v1649_v25 = vsel %vm1646_vm13, %v1648_v20, %v1644_v23  ;;  %2885 = vrcp.f32 %v3669_v38  ;;  %v693_v26 = vpop.f32.mrf.mxu1  ;;  %v917_v27 = vpop.f32.mrf.mxu2  ;;  %vm1657_vm14 = vweird.f32 %v2882_v19  ;;  %v1675_v55 = vand.u32 2147483647, %v3669_v38 }
 0x263   :  { %2569 = vst.msk [vmem:[%s4151_s9 + $0x10] sm:$0xff] %vm2566_vm4, %v1649_v25  ;;  %v1653_v28 = vsub.f32 1.0, %v1652_v24  ;;  %v508_v36 = vpack.c.bf16 %v474_v29, %v473_v11  ;;  %vm1658_vm0 = vmor %vm1656_vm15, %vm1657_vm14  ;;  %v918_v49 = vadd.f32 %v3512_v30, %v917_v27  ;;  %v694_v53 = vadd.f32 %v3658_v0, %v693_v26 }
 0x264   :  { %v1205_v34 = vpop.f32.mrf.mxu3  ;;  %v1677_v56 = vand.u32 2147483648, %v3669_v38  ;;  %vm1671_vm3 = vweird.f32 %v3669_v38  ;;  %vm1676_vm6 = vcmp.eq.f32.partialorder %v1675_v55, 8.507059e+37 }
 0x265   :  { %v1654_v35 = vmul.f32 %v2882_v19, %v1653_v28  ;;  %v1206_v37 = vadd.f32 %v3612_v32, %v1205_v34  ;;  %732 = vmatmul.bf16.gmra.mxu1 %v508_v36  ;;  %v1041_v62 = vmax.f32 %v918_v49, 0.0 }
 0x266   :  { %v405_v39 = vpop.f32.mrf.mxu0  ;;  %v1678_v8 = vor.u32 1.1754944e-38, %v1677_v56 }
 0x267   :  { %v2884_v40 = vpop.eup %2883  ;;  %v1655_v41 = vadd.f32 %v2882_v19, %v1654_v35  ;;  %v2777_v42 = vmul.f32 -1.442695, %v1206_v37  ;;  %v406_v4 = vadd.f32 %v3605_v22, %v405_v39 }
 0x268   :  { %v2886_v43 = vpop.eup %2885  ;;  %v3681_v45 = vadd.f32 1.0, %v2884_v40 }
 0x269   :  { %v1659_v46 = vsel %vm1658_vm0, %v2882_v19, %v1655_v41  ;;  %v1667_v47 = vmul.f32 %v2886_v43, %v3669_v38  ;;  %2887 = vpow2.f32 %v2777_v42  ;;  %vm1672_vm2 = vweird.f32 %v2886_v43 }
 0x26a   :  { %v1664_v48 = vsel %vm1661_vm1, %v1663_v44, %v1659_v46  ;;  %2889 = vrcp.f32 %v3681_v45  ;;  %v695_v50 = vpop.f32.mrf.mxu1  ;;  %v919_v51 = vpop.f32.mrf.mxu2  ;;  %vm1673_vm5 = vmor %vm1671_vm3, %vm1672_vm2  ;;  %v475_v18 = vmax.f32 %v406_v4, 0.0  ;;  %v1690_v20 = vand.u32 2147483647, %v3681_v45 }
 0x26b   :  { %2570 = vst.msk [vmem:[%s4151_s9 + $0x18] sm:$0xff] %vm2566_vm4, %v1664_v48  ;;  %v1668_v52 = vsub.f32 1.0, %v1667_v47  ;;  %v696_v54 = vadd.f32 %v3658_v0, %v695_v50  ;;  %v920_v57 = vadd.f32 %v3512_v30, %v919_v51  ;;  %v1692_v38 = vand.u32 2147483648, %v3681_v45 }
 0x26c   :  { %v1207_v58 = vpop.f32.mrf.mxu3  ;;  %vm1686_vm8 = vweird.f32 %v3681_v45  ;;  %vm1691_vm10 = vcmp.eq.f32.partialorder %v1690_v20, 8.507059e+37 }
 0x26d   :  { %v1669_v59 = vmul.f32 %v2886_v43, %v1668_v52  ;;  %v769_v60 = vpack.c.bf16 %v696_v54, %v694_v53  ;;  %v1208_v61 = vadd.f32 %v3612_v32, %v1207_v58  ;;  %v1042_v63 = vmax.f32 %v920_v57, 0.0 }
 0x26e   :  { %v407_v1 = vpop.f32.mrf.mxu0  ;;  %v1693_v31 = vor.u32 1.1754944e-38, %v1692_v38 }
 0x26f   :  { %v2888_v2 = vpop.eup %2887  ;;  %v1670_v3 = vadd.f32 %v2886_v43, %v1669_v59  ;;  %v2778_v5 = vmul.f32 -1.442695, %v1208_v61  ;;  %v408_v6 = vadd.f32 %v3605_v22, %v407_v1  ;;  %961 = vmatmul.bf16.gmra.mxu2 %v769_v60  ;;  %v1093_v10 = vpack.c.bf16 %v1042_v63, %v1041_v62 }
 0x270   :  { %v2890_v7 = vpop.eup %2889  ;;  %v3699_v9 = vadd.f32 1.0, %v2888_v2 }
 0x271   :  { %v1674_v12 = vsel %vm1673_vm5, %v2886_v43, %v1670_v3  ;;  %v1682_v13 = vmul.f32 %v2890_v7, %v3681_v45  ;;  %2891 = vpow2.f32 %v2778_v5  ;;  %1249 = vmatmul.bf16.gmra.mxu3 %v1093_v10  ;;  %v476_v19 = vmax.f32 %v408_v6, 0.0 }
 0x272   :  { %v1679_v14 = vsel %vm1676_vm6, %v1678_v8, %v1674_v12  ;;  %2893 = vrcp.f32 %v3699_v9  ;;  %v698_v15 = vpop.f32.mrf.mxu1  ;;  %v922_v16 = vpop.f32.mrf.mxu2  ;;  %vm1687_vm7 = vweird.f32 %v2890_v7  ;;  %v1705_v44 = vand.u32 2147483647, %v3699_v9 }
 0x273   :  { %2571 = vst.msk [vmem:[%s4151_s9 + $0x20] sm:$0xff] %vm2566_vm4, %v1679_v14  ;;  %v1683_v17 = vsub.f32 1.0, %v1682_v13  ;;  %v509_v24 = vpack.c.bf16 %v476_v19, %v475_v18  ;;  %vm1688_vm9 = vmor %vm1686_vm8, %vm1687_vm7  ;;  %v923_v37 = vadd.f32 %v3512_v30, %v922_v16  ;;  %v699_v42 = vadd.f32 %v3658_v0, %v698_v15  ;;  %v3744_v19 = vld [vmem:[%s4148_s6] ss:$0 sm:$0xff] }
 0x274   :  { %v1210_v21 = vpop.f32.mrf.mxu3  ;;  %v1707_v45 = vand.u32 2147483648, %v3699_v9  ;;  %vm1701_vm12 = vweird.f32 %v3699_v9  ;;  %vm1706_vm14 = vcmp.eq.f32.partialorder %v1705_v44, 8.507059e+37 }
 0x275   :  { %v1684_v23 = vmul.f32 %v2890_v7, %v1683_v17  ;;  %v1211_v25 = vadd.f32 %v3612_v32, %v1210_v21  ;;  %737 = vmatmul.bf16.gmra.mxu1 %v509_v24  ;;  %v1043_v51 = vmax.f32 %v923_v37, 0.0 }
 0x276   :  { %v410_v26 = vpop.f32.mrf.mxu0  ;;  %v1708_v59 = vor.u32 1.1754944e-38, %v1707_v45 }
 0x277   :  { %v2892_v27 = vpop.eup %2891  ;;  %v1685_v28 = vadd.f32 %v2890_v7, %v1684_v23  ;;  %v2779_v11 = vmul.f32 -1.442695, %v1211_v25  ;;  %v411_v56 = vadd.f32 %v3605_v22, %v410_v26 }
 0x278   :  { %v2894_v29 = vpop.eup %2893  ;;  %v3711_v33 = vadd.f32 1.0, %v2892_v27 }
 0x279   :  { %v1689_v34 = vsel %vm1688_vm9, %v2890_v7, %v1685_v28  ;;  %v1697_v35 = vmul.f32 %v2894_v29, %v3699_v9  ;;  %2895 = vpow2.f32 %v2779_v11  ;;  %vm1702_vm11 = vweird.f32 %v2894_v29 }
 0x27a   :  { %v1694_v36 = vsel %vm1691_vm10, %v1693_v31, %v1689_v34  ;;  %2897 = vrcp.f32 %v3711_v33  ;;  %v700_v39 = vpop.f32.mrf.mxu1  ;;  %v924_v40 = vpop.f32.mrf.mxu2  ;;  %vm1703_vm13 = vmor %vm1701_vm12, %vm1702_vm11  ;;  %v477_v4 = vmax.f32 %v411_v56, 0.0  ;;  %v1720_v6 = vand.u32 2147483647, %v3711_v33 }
 0x27b   :  { %2572 = vst.msk [vmem:[%s4151_s9 + $0x28] sm:$0xff] %vm2566_vm4, %v1694_v36  ;;  %v1698_v41 = vsub.f32 1.0, %v1697_v35  ;;  %v701_v43 = vadd.f32 %v3658_v0, %v700_v39  ;;  %v925_v46 = vadd.f32 %v3512_v30, %v924_v40  ;;  %v1722_v7 = vand.u32 2147483648, %v3711_v33 }
 0x27c   :  { %v1212_v47 = vpop.f32.mrf.mxu3  ;;  %vm1716_vm0 = vweird.f32 %v3711_v33  ;;  %vm1721_vm2 = vcmp.eq.f32.partialorder %v1720_v6, 8.507059e+37 }
 0x27d   :  { %v1699_v48 = vmul.f32 %v2894_v29, %v1698_v41  ;;  %v770_v49 = vpack.c.bf16 %v701_v43, %v699_v42  ;;  %v1213_v50 = vadd.f32 %v3612_v32, %v1212_v47  ;;  %v1044_v52 = vmax.f32 %v925_v46, 0.0 }
 0x27e   :  { %v412_v53 = vpop.f32.mrf.mxu0  ;;  %v1723_v17 = vor.u32 1.1754944e-38, %v1722_v7 }
 0x27f   :  { %v2896_v54 = vpop.eup %2895  ;;  %v1700_v55 = vadd.f32 %v2894_v29, %v1699_v48  ;;  %v2780_v57 = vmul.f32 -1.442695, %v1213_v50  ;;  %v413_v58 = vadd.f32 %v3605_v22, %v412_v53  ;;  %966 = vmatmul.bf16.gmra.mxu2 %v770_v49  ;;  %v1094_v61 = vpack.c.bf16 %v1044_v52, %v1043_v51 }
 0x280   :  { %v2898_v30 = vpop.eup %2897  ;;  %v3729_v60 = vadd.f32 1.0, %v2896_v54 }
 0x281   :  { %v1704_v62 = vsel %vm1703_vm13, %v2894_v29, %v1700_v55  ;;  %v1712_v63 = vmul.f32 %v2898_v30, %v3711_v33  ;;  %2899 = vpow2.f32 %v2780_v57  ;;  %1254 = vmatmul.bf16.gmra.mxu3 %v1094_v61  ;;  %v478_v5 = vmax.f32 %v413_v58, 0.0 }
 0x282   :  { %v1709_v1 = vsel %vm1706_vm14, %v1708_v59, %v1704_v62  ;;  %2901 = vrcp.f32 %v3729_v60  ;;  %v703_v2 = vpop.f32.mrf.mxu1  ;;  %v927_v3 = vpop.f32.mrf.mxu2  ;;  %vm1717_vm15 = vweird.f32 %v2898_v30  ;;  %v1735_v29 = vand.u32 2147483647, %v3729_v60 }
 0x283   :  { %2573 = vst.msk [vmem:[%s4151_s9 + $0x30] sm:$0xff] %vm2566_vm4, %v1709_v1  ;;  %v1713_v22 = vsub.f32 1.0, %v1712_v63  ;;  %v510_v10 = vpack.c.bf16 %v478_v5, %v477_v4  ;;  %vm1718_vm1 = vmor %vm1716_vm0, %vm1717_vm15  ;;  %v928_v20 = vadd.f32 %v3744_v19, %v927_v3  ;;  %v704_v27 = vadd.f32 %v3658_v0, %v703_v2 }
 0x284   :  { %v1215_v8 = vpop.f32.mrf.mxu3  ;;  %v1737_v31 = vand.u32 2147483648, %v3729_v60  ;;  %vm1731_vm5 = vweird.f32 %v3729_v60  ;;  %vm1736_vm7 = vcmp.eq.f32.partialorder %v1735_v29, 8.507059e+37 }
 0x285   :  { %v1714_v9 = vmul.f32 %v2898_v30, %v1713_v22  ;;  %v1216_v12 = vadd.f32 %v3612_v32, %v1215_v8  ;;  %742 = vmatmul.bf16.gmra.mxu1 %v510_v10  ;;  %v1045_v33 = vmax.f32 %v928_v20, 0.0 }
 0x286   :  { %v1738_v44 = vor.u32 1.1754944e-38, %v1737_v31 }
 0x287   :  { %v2900_v13 = vpop.eup %2899  ;;  %v1715_v14 = vadd.f32 %v2898_v30, %v1714_v9  ;;  %v2781_v15 = vmul.f32 -1.442695, %v1216_v12 }
 0x288   :  { %v2902_v16 = vpop.eup %2901  ;;  %v1551_v18 = vadd.f32 1.0, %v2900_v13 }
 0x289   :  { %v1719_v38 = vsel %vm1718_vm1, %v2898_v30, %v1715_v14  ;;  %v1727_v21 = vmul.f32 %v2902_v16, %v3729_v60  ;;  %2903 = vpow2.f32 %v2781_v15  ;;  %vm1732_vm3 = vweird.f32 %v2902_v16 }
 0x28a   :  { %v1724_v23 = vsel %vm1721_vm2, %v1723_v17, %v1719_v38  ;;  %2905 = vrcp.f32 %v1551_v18  ;;  %v705_v24 = vpop.f32.mrf.mxu1  ;;  %v929_v25 = vpop.f32.mrf.mxu2  ;;  %vm1733_vm6 = vmor %vm1731_vm5, %vm1732_vm3  ;;  %v1752_v53 = vand.u32 2147483648, %v1551_v18  ;;  %v1750_v56 = vand.u32 2147483647, %v1551_v18 }
 0x28b   :  { %2574 = vst.msk [vmem:[%s4151_s9 + $0x38] sm:$0xff] %vm2566_vm4, %v1724_v23  ;;  %v1728_v26 = vsub.f32 1.0, %v1727_v21  ;;  %v706_v28 = vadd.f32 %v3658_v0, %v705_v24  ;;  %v930_v11 = vadd.f32 %v3744_v19, %v929_v25  ;;  %vm1746_vm9 = vweird.f32 %v1551_v18 }
 0x28c   :  { %v1217_v34 = vpop.f32.mrf.mxu3  ;;  %v1753_v60 = vor.u32 1.1754944e-38, %v1752_v53  ;;  %vm1751_vm11 = vcmp.eq.f32.partialorder %v1750_v56, 8.507059e+37 }
 0x28d   :  { %v1729_v35 = vmul.f32 %v2902_v16, %v1728_v26  ;;  %v771_v36 = vpack.c.bf16 %v706_v28, %v704_v27  ;;  %v1046_v37 = vmax.f32 %v930_v11, 0.0  ;;  %v1218_v39 = vadd.f32 %v3612_v32, %v1217_v34 }
 0x28f   :  { %v2904_v40 = vpop.eup %2903  ;;  %v1730_v41 = vadd.f32 %v2902_v16, %v1729_v35  ;;  %971 = vmatmul.bf16.gmra.mxu2 %v771_v36  ;;  %v1095_v42 = vpack.c.bf16 %v1046_v37, %v1045_v33  ;;  %v2782_v46 = vmul.f32 -1.442695, %v1218_v39 }
 0x290   :  { %v2906_v43 = vpop.eup %2905  ;;  %v1552_v45 = vadd.f32 1.0, %v2904_v40 }
 0x291   :  { %v1734_v47 = vsel %vm1733_vm6, %v2902_v16, %v1730_v41  ;;  %v1742_v48 = vmul.f32 %v2906_v43, %v1551_v18  ;;  %1259 = vmatmul.bf16.gmra.mxu3 %v1095_v42  ;;  %vm1747_vm8 = vweird.f32 %v2906_v43 }
 0x292   :  { %v1739_v49 = vsel %vm1736_vm7, %v1738_v44, %v1734_v47  ;;  %2907 = vrcp.f32 %v1552_v45  ;;  %v708_v50 = vpop.f32.mrf.mxu1  ;;  %v932_v51 = vpop.f32.mrf.mxu2  ;;  %vm1748_vm10 = vmor %vm1746_vm9, %vm1747_vm8  ;;  %v1765_v3 = vand.u32 2147483647, %v1552_v45  ;;  %v1767_v10 = vand.u32 2147483648, %v1552_v45 }
 0x293   :  { %2575 = vst.msk [vmem:[%s4151_s9 + $0x40] sm:$0xff] %vm2566_vm4, %v1739_v49  ;;  %v1743_v52 = vsub.f32 1.0, %v1742_v48  ;;  %2909 = vpow2.f32 %v2782_v46  ;;  %v933_v61 = vadd.f32 %v3744_v19, %v932_v51  ;;  %v709_v7 = vadd.f32 %v3658_v0, %v708_v50 }
 0x294   :  { %v1220_v54 = vpop.f32.mrf.mxu3  ;;  %vm1761_vm13 = vweird.f32 %v1552_v45  ;;  %v1768_v23 = vor.u32 1.1754944e-38, %v1767_v10  ;;  %vm1766_vm15 = vcmp.eq.f32.partialorder %v1765_v3, 8.507059e+37 }
 0x295   :  { %v1744_v55 = vmul.f32 %v2906_v43, %v1743_v52  ;;  %v1221_v57 = vadd.f32 %v3612_v32, %v1220_v54  ;;  %v1047_v12 = vmax.f32 %v933_v61, 0.0 }
 0x297   :  { %v1745_v58 = vadd.f32 %v2906_v43, %v1744_v55  ;;  %v2783_v30 = vmul.f32 -1.442695, %v1221_v57 }
 0x298   :  { %v2908_v59 = vpop.eup %2907 }
 0x299   :  { %v2910_v62 = vpop.eup %2909  ;;  %v1749_v63 = vsel %vm1748_vm10, %v2906_v43, %v1745_v58  ;;  %v1757_v1 = vmul.f32 %v2908_v59, %v1552_v45  ;;  %2911 = vpow2.f32 %v2783_v30  ;;  %vm1762_vm12 = vweird.f32 %v2908_v59 }
 0x29a   :  { %v1754_v2 = vsel %vm1751_vm11, %v1753_v60, %v1749_v63  ;;  %v1553_v22 = vadd.f32 1.0, %v2910_v62  ;;  %v710_v4 = vpop.f32.mrf.mxu1  ;;  %v934_v5 = vpop.f32.mrf.mxu2  ;;  %vm1763_vm14 = vmor %vm1761_vm13, %vm1762_vm12 }
 0x29b   :  { %2576 = vst.msk [vmem:[%s4151_s9 + $0x48] sm:$0xff] %vm2566_vm4, %v1754_v2  ;;  %v1758_v6 = vsub.f32 1.0, %v1757_v1  ;;  %v711_v8 = vadd.f32 %v3658_v0, %v710_v4  ;;  %v935_v9 = vadd.f32 %v3744_v19, %v934_v5 }
 0x29c   :  { %2913 = vrcp.f32 %v1553_v22  ;;  %v1222_v13 = vpop.f32.mrf.mxu3  ;;  %v1780_v34 = vand.u32 2147483647, %v1553_v22  ;;  %v1782_v36 = vand.u32 2147483648, %v1553_v22  ;;  %vm1776_vm1 = vweird.f32 %v1553_v22 }
 0x29d   :  { %v1759_v14 = vmul.f32 %v2908_v59, %v1758_v6  ;;  %v772_v15 = vpack.c.bf16 %v711_v8, %v709_v7  ;;  %v1048_v16 = vmax.f32 %v935_v9, 0.0  ;;  %v1223_v17 = vadd.f32 %v3612_v32, %v1222_v13 }
 0x29e   :  { %vm1781_vm2 = vcmp.eq.f32.partialorder %v1780_v34, 8.507059e+37  ;;  %v1783_v46 = vor.u32 1.1754944e-38, %v1782_v36 }
 0x29f   :  { %v2912_v18 = vpop.eup %2911  ;;  %v1760_v20 = vadd.f32 %v2908_v59, %v1759_v14  ;;  %v2784_v38 = vmul.f32 -1.442695, %v1223_v17  ;;  %976 = vmatmul.bf16.gmra.mxu2 %v772_v15  ;;  %v1096_v21 = vpack.c.bf16 %v1048_v16, %v1047_v12 }
 0x2a0   :  { %v1554_v24 = vadd.f32 1.0, %v2912_v18 }
 0x2a1   :  { %v1764_v25 = vsel %vm1763_vm14, %v2908_v59, %v1760_v20  ;;  %2915 = vpow2.f32 %v2784_v38  ;;  %1264 = vmatmul.bf16.gmra.mxu3 %v1096_v21 }
 0x2a2   :  { %v2914_v26 = vpop.eup %2913  ;;  %v1769_v27 = vsel %vm1766_vm15, %v1768_v23, %v1764_v25  ;;  %2917 = vrcp.f32 %v1554_v24  ;;  %v713_v28 = vpop.f32.mrf.mxu1  ;;  %v1795_v47 = vand.u32 2147483647, %v1554_v24  ;;  %v1797_v56 = vand.u32 2147483648, %v1554_v24 }
 0x2a3   :  { %v937_v11 = vpop.f32.mrf.mxu2  ;;  %2577 = vst.msk [vmem:[%s4151_s9 + $0x50] sm:$0xff] %vm2566_vm4, %v1769_v27  ;;  %v1772_v29 = vmul.f32 %v2914_v26, %v1553_v22  ;;  %vm1777_vm0 = vweird.f32 %v2914_v26  ;;  %v714_v48 = vadd.f32 %v3658_v0, %v713_v28  ;;  %vm1791_vm6 = vweird.f32 %v1554_v24 }
 0x2a4   :  { %v1225_v31 = vpop.f32.mrf.mxu3  ;;  %v938_v43 = vadd.f32 %v3744_v19, %v937_v11  ;;  %vm1778_vm3 = vmor %vm1776_vm1, %vm1777_vm0  ;;  %v1798_v22 = vor.u32 1.1754944e-38, %v1797_v56  ;;  %vm1796_vm8 = vcmp.eq.f32.partialorder %v1795_v47, 8.507059e+37 }
 0x2a5   :  { %v1773_v33 = vsub.f32 1.0, %v1772_v29  ;;  %v1226_v35 = vadd.f32 %v3612_v32, %v1225_v31 }
 0x2a6   :  { %v1049_v57 = vmax.f32 %v938_v43, 0.0 }
 0x2a7   :  { %v2916_v37 = vpop.eup %2915  ;;  %v1774_v39 = vmul.f32 %v2914_v26, %v1773_v33  ;;  %v2785_v40 = vmul.f32 -1.442695, %v1226_v35 }
 0x2a8   :  { %v2918_v41 = vpop.eup %2917  ;;  %v3779_v42 = vadd.f32 1.0, %v2916_v37 }
 0x2a9   :  { %v1775_v44 = vadd.f32 %v2914_v26, %v1774_v39  ;;  %v1787_v45 = vmul.f32 %v2918_v41, %v1554_v24  ;;  %2919 = vpow2.f32 %v2785_v40  ;;  %vm1792_vm5 = vweird.f32 %v2918_v41 }
 0x2aa   :  { %2921 = vrcp.f32 %v3779_v42  ;;  %v715_v49 = vpop.f32.mrf.mxu1  ;;  %vm1793_vm7 = vmor %vm1791_vm6, %vm1792_vm5  ;;  %v1812_v12 = vand.u32 2147483648, %v3779_v42  ;;  %v1810_v15 = vand.u32 2147483647, %v3779_v42  ;;  %vm1806_vm10 = vweird.f32 %v3779_v42 }
 0x2ab   :  { %v939_v50 = vpop.f32.mrf.mxu2  ;;  %v1779_v51 = vsel %vm1778_vm3, %v2914_v26, %v1775_v44  ;;  %v1788_v52 = vsub.f32 1.0, %v1787_v45  ;;  %v716_v53 = vadd.f32 %v3658_v0, %v715_v49 }
 0x2ac   :  { %v940_v54 = vadd.f32 %v3744_v19, %v939_v50  ;;  %v1784_v55 = vsel %vm1781_vm2, %v1783_v46, %v1779_v51  ;;  %v1227_v58 = vpop.f32.mrf.mxu3  ;;  %v1813_v21 = vor.u32 1.1754944e-38, %v1812_v12  ;;  %vm1811_vm12 = vcmp.eq.f32.partialorder %v1810_v15, 8.507059e+37 }
 0x2ad   :  { %2578 = vst.msk [vmem:[%s4151_s9 + $0x58] sm:$0xff] %vm2566_vm4, %v1784_v55  ;;  %v1789_v30 = vmul.f32 %v2918_v41, %v1788_v52  ;;  %v773_v59 = vpack.c.bf16 %v716_v53, %v714_v48  ;;  %v1228_v61 = vadd.f32 %v3612_v32, %v1227_v58 }
 0x2ae   :  { %v1050_v60 = vmax.f32 %v940_v54, 0.0 }
 0x2af   :  { %v2920_v62 = vpop.eup %2919  ;;  %v1790_v63 = vadd.f32 %v2918_v41, %v1789_v30  ;;  %v2786_v1 = vmul.f32 -1.442695, %v1228_v61  ;;  %981 = vmatmul.bf16.gmra.mxu2 %v773_v59  ;;  %v3817_v59 = vld [vmem:[%s4150_s8] ss:$0 sm:$0xff] }
 0x2b0   :  { %v1097_v2 = vpack.c.bf16 %v1050_v60, %v1049_v57  ;;  %v2922_v3 = vpop.eup %2921  ;;  %v1556_v4 = vadd.f32 1.0, %v2920_v62 }
 0x2b1   :  { %v1794_v5 = vsel %vm1793_vm7, %v2918_v41, %v1790_v63  ;;  %v1802_v6 = vmul.f32 %v2922_v3, %v3779_v42  ;;  %2923 = vpow2.f32 %v2786_v1  ;;  %vm1807_vm9 = vweird.f32 %v2922_v3 }
 0x2b2   :  { %v1799_v7 = vsel %vm1796_vm8, %v1798_v22, %v1794_v5  ;;  %2925 = vrcp.f32 %v1556_v4  ;;  %1269 = vmatmul.bf16.gmra.mxu3 %v1097_v2  ;;  %v718_v8 = vpop.f32.mrf.mxu1  ;;  %vm1808_vm11 = vmor %vm1806_vm10, %vm1807_vm9  ;;  %v1825_v35 = vand.u32 2147483647, %v1556_v4  ;;  %v1827_v36 = vand.u32 2147483648, %v1556_v4 }
 0x2b3   :  { %v942_v9 = vpop.f32.mrf.mxu2  ;;  %2579 = vst.msk [vmem:[%s4151_s9 + $0x60] sm:$0xff] %vm2566_vm4, %v1799_v7  ;;  %v1803_v10 = vsub.f32 1.0, %v1802_v6  ;;  %v719_v31 = vadd.f32 %v3658_v0, %v718_v8  ;;  %vm1821_vm14 = vweird.f32 %v1556_v4 }
 0x2b4   :  { %v1230_v13 = vpop.f32.mrf.mxu3  ;;  %v943_v24 = vadd.f32 %v3744_v19, %v942_v9  ;;  %v1828_v48 = vor.u32 1.1754944e-38, %v1827_v36  ;;  %vm1826_vm0 = vcmp.eq.f32.partialorder %v1825_v35, 8.507059e+37 }
 0x2b5   :  { %v1804_v14 = vmul.f32 %v2922_v3, %v1803_v10  ;;  %v1231_v16 = vadd.f32 %v3612_v32, %v1230_v13 }
 0x2b6   :  { %v1051_v37 = vmax.f32 %v943_v24, 0.0 }
 0x2b7   :  { %v2924_v17 = vpop.eup %2923  ;;  %v1805_v18 = vadd.f32 %v2922_v3, %v1804_v14  ;;  %v2787_v20 = vmul.f32 -1.442695, %v1231_v16 }
 0x2b8   :  { %v2926_v38 = vpop.eup %2925  ;;  %v1557_v23 = vadd.f32 1.0, %v2924_v17 }
 0x2b9   :  { %v1809_v25 = vsel %vm1808_vm11, %v2922_v3, %v1805_v18  ;;  %v1817_v26 = vmul.f32 %v2926_v38, %v1556_v4  ;;  %2927 = vpow2.f32 %v2787_v20  ;;  %vm1822_vm13 = vweird.f32 %v2926_v38 }
 0x2ba   :  { %v1814_v27 = vsel %vm1811_vm12, %v1813_v21, %v1809_v25  ;;  %2929 = vrcp.f32 %v1557_v23  ;;  %v720_v28 = vpop.f32.mrf.mxu1  ;;  %vm1823_vm15 = vmor %vm1821_vm14, %vm1822_vm13  ;;  %v1842_v56 = vand.u32 2147483648, %v1557_v23  ;;  %v1840_v30 = vand.u32 2147483647, %v1557_v23 }
 0x2bb   :  { %v944_v11 = vpop.f32.mrf.mxu2  ;;  %2580 = vst.msk [vmem:[%s4151_s9 + $0x68] sm:$0xff] %vm2566_vm4, %v1814_v27  ;;  %v1818_v29 = vsub.f32 1.0, %v1817_v26  ;;  %v721_v33 = vadd.f32 %v3658_v0, %v720_v28  ;;  %vm1836_vm2 = vweird.f32 %v1557_v23 }
 0x2bc   :  { %v945_v34 = vadd.f32 %v3744_v19, %v944_v11  ;;  %v1232_v39 = vpop.f32.mrf.mxu3  ;;  %v1843_v1 = vor.u32 1.1754944e-38, %v1842_v56  ;;  %vm1841_vm5 = vcmp.eq.f32.partialorder %v1840_v30, 8.507059e+37 }
 0x2bd   :  { %v1819_v40 = vmul.f32 %v2926_v38, %v1818_v29  ;;  %v774_v41 = vpack.c.bf16 %v721_v33, %v719_v31  ;;  %v1233_v43 = vadd.f32 %v3612_v32, %v1232_v39 }
 0x2be   :  { %v1052_v42 = vmax.f32 %v945_v34, 0.0 }
 0x2bf   :  { %v2928_v44 = vpop.eup %2927  ;;  %v1820_v45 = vadd.f32 %v2926_v38, %v1819_v40  ;;  %986 = vmatmul.bf16.gmra.mxu2 %v774_v41  ;;  %v2788_v50 = vmul.f32 -1.442695, %v1233_v43 }
 0x2c0   :  { %v1098_v46 = vpack.c.bf16 %v1052_v42, %v1051_v37  ;;  %v2930_v47 = vpop.eup %2929  ;;  %v1558_v49 = vadd.f32 1.0, %v2928_v44 }
 0x2c1   :  { %v1824_v51 = vsel %vm1823_vm15, %v2926_v38, %v1820_v45  ;;  %v1832_v52 = vmul.f32 %v2930_v47, %v1557_v23  ;;  %vm1837_vm1 = vweird.f32 %v2930_v47 }
 0x2c2   :  { %v1829_v53 = vsel %vm1826_vm0, %v1828_v48, %v1824_v51  ;;  %2931 = vrcp.f32 %v1558_v49  ;;  %1274 = vmatmul.bf16.gmra.mxu3 %v1098_v46  ;;  %v723_v54 = vpop.f32.mrf.mxu1  ;;  %vm1838_vm3 = vmor %vm1836_vm2, %vm1837_vm1  ;;  %v1855_v6 = vand.u32 2147483647, %v1558_v49  ;;  %v1857_v15 = vand.u32 2147483648, %v1558_v49 }
 0x2c3   :  { %v947_v55 = vpop.f32.mrf.mxu2  ;;  %2581 = vst.msk [vmem:[%s4151_s9 + $0x70] sm:$0xff] %vm2566_vm4, %v1829_v53  ;;  %v1833_v32 = vsub.f32 1.0, %v1832_v52  ;;  %2933 = vpow2.f32 %v2788_v50  ;;  %v724_v12 = vadd.f32 %v3658_v0, %v723_v54  ;;  %vm1851_vm7 = vweird.f32 %v1558_v49 }
 0x2c4   :  { %v1235_v57 = vpop.f32.mrf.mxu3  ;;  %v948_v2 = vadd.f32 %v3744_v19, %v947_v55  ;;  %v1858_v27 = vor.u32 1.1754944e-38, %v1857_v15  ;;  %vm1856_vm9 = vcmp.eq.f32.partialorder %v1855_v6, 8.507059e+37 }
 0x2c5   :  { %v1834_v58 = vmul.f32 %v2930_v47, %v1833_v32  ;;  %v1236_v60 = vadd.f32 %v3817_v59, %v1235_v57 }
 0x2c6   :  { %v1053_v16 = vmax.f32 %v948_v2, 0.0 }
 0x2c7   :  { %v1835_v61 = vadd.f32 %v2930_v47, %v1834_v58  ;;  %v2789_v62 = vmul.f32 -1.442695, %v1236_v60 }
 0x2c8   :  { %v2932_v63 = vpop.eup %2931 }
 0x2c9   :  { %v2934_v3 = vpop.eup %2933  ;;  %v1839_v22 = vsel %vm1838_vm3, %v2930_v47, %v1835_v61  ;;  %v1847_v4 = vmul.f32 %v2932_v63, %v1558_v49  ;;  %2935 = vpow2.f32 %v2789_v62  ;;  %vm1852_vm6 = vweird.f32 %v2932_v63 }
 0x2ca   :  { %v1844_v5 = vsel %vm1841_vm5, %v1843_v1, %v1839_v22  ;;  %v1559_v7 = vadd.f32 1.0, %v2934_v3  ;;  %v725_v8 = vpop.f32.mrf.mxu1  ;;  %vm1853_vm8 = vmor %vm1851_vm7, %vm1852_vm6 }
 0x2cb   :  { %v949_v9 = vpop.f32.mrf.mxu2  ;;  %2582 = vst.msk [vmem:[%s4151_s9 + $0x78] sm:$0xff] %vm2566_vm4, %v1844_v5  ;;  %v1848_v10 = vsub.f32 1.0, %v1847_v4  ;;  %v726_v13 = vadd.f32 %v3658_v0, %v725_v8 }
 0x2cc   :  { %v950_v14 = vadd.f32 %v3744_v19, %v949_v9  ;;  %2937 = vrcp.f32 %v1559_v7  ;;  %v1237_v17 = vpop.f32.mrf.mxu3  ;;  %v1870_v39 = vand.u32 2147483647, %v1559_v7  ;;  %v1872_v40 = vand.u32 2147483648, %v1559_v7 }
 0x2cd   :  { %v1849_v18 = vmul.f32 %v2932_v63, %v1848_v10  ;;  %v775_v20 = vpack.c.bf16 %v726_v13, %v724_v12  ;;  %v1238_v21 = vadd.f32 %v3817_v59, %v1237_v17  ;;  %vm1866_vm11 = vweird.f32 %v1559_v7 }
 0x2ce   :  { %v1054_v38 = vmax.f32 %v950_v14, 0.0  ;;  %vm1871_vm12 = vcmp.eq.f32.partialorder %v1870_v39, 8.507059e+37  ;;  %v1873_v50 = vor.u32 1.1754944e-38, %v1872_v40 }
 0x2cf   :  { %v2936_v23 = vpop.eup %2935  ;;  %v1850_v24 = vadd.f32 %v2932_v63, %v1849_v18  ;;  %v2790_v25 = vmul.f32 -1.442695, %v1238_v21  ;;  %991 = vmatmul.bf16.gmra.mxu2 %v775_v20 }
 0x2d0   :  { %v1099_v26 = vpack.c.bf16 %v1054_v38, %v1053_v16  ;;  %v1560_v28 = vadd.f32 1.0, %v2936_v23 }
 0x2d1   :  { %v1854_v11 = vsel %vm1853_vm8, %v2932_v63, %v1850_v24  ;;  %2939 = vpow2.f32 %v2790_v25 }
 0x2d2   :  { %v2938_v29 = vpop.eup %2937  ;;  %v1859_v31 = vsel %vm1856_vm9, %v1858_v27, %v1854_v11  ;;  %2941 = vrcp.f32 %v1560_v28  ;;  %1279 = vmatmul.bf16.gmra.mxu3 %v1099_v26  ;;  %v728_v35 = vpop.f32.mrf.mxu1  ;;  %v1885_v51 = vand.u32 2147483647, %v1560_v28  ;;  %v1887_v52 = vand.u32 2147483648, %v1560_v28 }
 0x2d3   :  { %v952_v33 = vpop.f32.mrf.mxu2  ;;  %2583 = vst.msk [vmem:[%s4151_s9 + $0x80] sm:$0xff] %vm2566_vm4, %v1859_v31  ;;  %v1862_v34 = vmul.f32 %v2938_v29, %v1559_v7  ;;  %vm1867_vm10 = vweird.f32 %v2938_v29  ;;  %v729_v57 = vadd.f32 %v3658_v0, %v728_v35  ;;  %vm1881_vm15 = vweird.f32 %v1560_v28 }
 0x2d4   :  { %v1240_v36 = vpop.f32.mrf.mxu3  ;;  %v953_v46 = vadd.f32 %v3744_v19, %v952_v33  ;;  %vm1868_vm13 = vmor %vm1866_vm11, %vm1867_vm10  ;;  %v1888_v6 = vor.u32 1.1754944e-38, %v1887_v52  ;;  %vm1886_vm1 = vcmp.eq.f32.partialorder %v1885_v51, 8.507059e+37 }
 0x2d5   :  { %v1863_v37 = vsub.f32 1.0, %v1862_v34  ;;  %v1241_v41 = vadd.f32 %v3817_v59, %v1240_v36  ;;  %v3866_v36 = vld [vmem:[%s4146_s4] ss:$0 sm:$0xff] }
 0x2d6   :  { %v1055_v58 = vmax.f32 %v953_v46, 0.0 }
 0x2d7   :  { %v2940_v42 = vpop.eup %2939  ;;  %v1864_v43 = vmul.f32 %v2938_v29, %v1863_v37  ;;  %v2791_v47 = vmul.f32 -1.442695, %v1241_v41 }
 0x2d8   :  { %v2942_v44 = vpop.eup %2941  ;;  %v3835_v45 = vadd.f32 1.0, %v2940_v42 }
 0x2d9   :  { %v1865_v48 = vadd.f32 %v2938_v29, %v1864_v43  ;;  %v1877_v49 = vmul.f32 %v2942_v44, %v1560_v28  ;;  %vm1882_vm14 = vweird.f32 %v2942_v44 }
 0x2da   :  { %2943 = vrcp.f32 %v3835_v45  ;;  %v730_v30 = vpop.f32.mrf.mxu1  ;;  %vm1883_vm0 = vmor %vm1881_vm15, %vm1882_vm14  ;;  %v1902_v14 = vand.u32 2147483648, %v3835_v45  ;;  %v1900_v17 = vand.u32 2147483647, %v3835_v45  ;;  %vm1896_vm3 = vweird.f32 %v3835_v45 }
 0x2db   :  { %v954_v53 = vpop.f32.mrf.mxu2  ;;  %v1869_v54 = vsel %vm1868_vm13, %v2938_v29, %v1865_v48  ;;  %v1878_v55 = vsub.f32 1.0, %v1877_v49  ;;  %2945 = vpow2.f32 %v2791_v47  ;;  %v731_v62 = vadd.f32 %v3658_v0, %v730_v30 }
 0x2dc   :  { %v955_v32 = vadd.f32 %v3744_v19, %v954_v53  ;;  %v1874_v56 = vsel %vm1871_vm12, %v1873_v50, %v1869_v54  ;;  %v1242_v60 = vpop.f32.mrf.mxu3  ;;  %v1903_v23 = vor.u32 1.1754944e-38, %v1902_v14  ;;  %vm1901_vm6 = vcmp.eq.f32.partialorder %v1900_v17, 8.507059e+37 }
 0x2dd   :  { %2584 = vst.msk [vmem:[%s4151_s9 + $0x88] sm:$0xff] %vm2566_vm4, %v1874_v56  ;;  %v1879_v61 = vmul.f32 %v2942_v44, %v1878_v55  ;;  %v1243_v1 = vadd.f32 %v3817_v59, %v1242_v60  ;;  %v776_v3 = vpack.c.bf16 %v731_v62, %v729_v57 }
 0x2de   :  { %v1056_v63 = vmax.f32 %v955_v32, 0.0 }
 0x2df   :  { %v1880_v2 = vadd.f32 %v2942_v44, %v1879_v61  ;;  %v2792_v22 = vmul.f32 -1.442695, %v1243_v1  ;;  %996 = vmatmul.bf16.gmra.mxu2 %v776_v3 }
 0x2e0   :  { %v1100_v4 = vpack.c.bf16 %v1056_v63, %v1055_v58  ;;  %v2944_v5 = vpop.eup %2943 }
 0x2e1   :  { %v2946_v7 = vpop.eup %2945  ;;  %v1884_v8 = vsel %vm1883_vm0, %v2942_v44, %v1880_v2  ;;  %v1892_v9 = vmul.f32 %v2944_v5, %v3835_v45  ;;  %2947 = vpow2.f32 %v2792_v22  ;;  %vm1897_vm2 = vweird.f32 %v2944_v5 }
 0x2e2   :  { %v1889_v0 = vsel %vm1886_vm1, %v1888_v6, %v1884_v8  ;;  %v1562_v10 = vadd.f32 1.0, %v2946_v7  ;;  %1284 = vmatmul.bf16.gmra.mxu3 %v1100_v4  ;;  %v733_v15 = vpop.f32.mrf.mxu1  ;;  %vm1898_vm5 = vmor %vm1896_vm3, %vm1897_vm2 }
 0x2e3   :  { %v957_v12 = vpop.f32.mrf.mxu2  ;;  %2585 = vst.msk [vmem:[%s4151_s9 + $0x90] sm:$0xff] %vm2566_vm4, %v1889_v0  ;;  %v1893_v13 = vsub.f32 1.0, %v1892_v9  ;;  %v734_v37 = vadd.f32 %v3866_v36, %v733_v15 }
 0x2e4   :  { %2949 = vrcp.f32 %v1562_v10  ;;  %v1245_v18 = vpop.f32.mrf.mxu3  ;;  %v958_v11 = vadd.f32 %v3744_v19, %v957_v12  ;;  %v1917_v41 = vand.u32 2147483648, %v1562_v10  ;;  %v1915_v46 = vand.u32 2147483647, %v1562_v10 }
 0x2e5   :  { %v1894_v16 = vmul.f32 %v2944_v5, %v1893_v13  ;;  %v1246_v20 = vadd.f32 %v3817_v59, %v1245_v18  ;;  %vm1911_vm8 = vweird.f32 %v1562_v10 }
 0x2e6   :  { %v1057_v42 = vmax.f32 %v958_v11, 0.0  ;;  %v1918_v54 = vor.u32 1.1754944e-38, %v1917_v41  ;;  %vm1916_vm10 = vcmp.eq.f32.partialorder %v1915_v46, 8.507059e+37 }
 0x2e7   :  { %v2948_v38 = vpop.eup %2947  ;;  %v1895_v21 = vadd.f32 %v2944_v5, %v1894_v16  ;;  %v2793_v25 = vmul.f32 -1.442695, %v1246_v20 }
 0x2e8   :  { %v1563_v24 = vadd.f32 1.0, %v2948_v38 }
 0x2e9   :  { %v1899_v26 = vsel %vm1898_vm5, %v2944_v5, %v1895_v21 }
 0x2ea   :  { %v2950_v27 = vpop.eup %2949  ;;  %v1904_v28 = vsel %vm1901_vm6, %v1903_v23, %v1899_v26  ;;  %2951 = vrcp.f32 %v1563_v24  ;;  %v735_v33 = vpop.f32.mrf.mxu1  ;;  %v1932_v30 = vand.u32 2147483648, %v1563_v24  ;;  %v1930_v62 = vand.u32 2147483647, %v1563_v24 }
 0x2eb   :  { %v959_v29 = vpop.f32.mrf.mxu2  ;;  %2586 = vst.msk [vmem:[%s4151_s9 + $0x98] sm:$0xff] %vm2566_vm4, %v1904_v28  ;;  %v1907_v31 = vmul.f32 %v2950_v27, %v1562_v10  ;;  %2953 = vpow2.f32 %v2793_v25  ;;  %v736_v39 = vadd.f32 %v3866_v36, %v735_v33  ;;  %vm1912_vm7 = vweird.f32 %v2950_v27 }
 0x2ec   :  { %v960_v34 = vadd.f32 %v3744_v19, %v959_v29  ;;  %v1247_v40 = vpop.f32.mrf.mxu3  ;;  %vm1913_vm9 = vmor %vm1911_vm8, %vm1912_vm7  ;;  %vm1926_vm12 = vweird.f32 %v1563_v24  ;;  %v1933_v22 = vor.u32 1.1754944e-38, %v1932_v30  ;;  %vm1931_vm14 = vcmp.eq.f32.partialorder %v1930_v62, 8.507059e+37 }
 0x2ed   :  { %v1908_v35 = vsub.f32 1.0, %v1907_v31  ;;  %v1248_v44 = vadd.f32 %v3817_v59, %v1247_v40  ;;  %v777_v47 = vpack.c.bf16 %v736_v39, %v734_v37 }
 0x2ee   :  { %v1058_v43 = vmax.f32 %v960_v34, 0.0 }
 0x2ef   :  { %v1909_v45 = vmul.f32 %v2950_v27, %v1908_v35  ;;  %v2794_v50 = vmul.f32 -1.442695, %v1248_v44  ;;  %1001 = vmatmul.bf16.gmra.mxu2 %v777_v47 }
 0x2f0   :  { %v2952_v48 = vpop.eup %2951  ;;  %v1101_v49 = vpack.c.bf16 %v1058_v43, %v1057_v42 }
 0x2f1   :  { %v2954_v51 = vpop.eup %2953  ;;  %v1910_v52 = vadd.f32 %v2950_v27, %v1909_v45  ;;  %v1922_v53 = vmul.f32 %v2952_v48, %v1563_v24  ;;  %2955 = vpow2.f32 %v2794_v50  ;;  %vm1927_vm11 = vweird.f32 %v2952_v48 }
 0x2f2   :  { %v3871_v55 = vadd.f32 1.0, %v2954_v51  ;;  %1289 = vmatmul.bf16.gmra.mxu3 %v1101_v49  ;;  %v738_v60 = vpop.f32.mrf.mxu1  ;;  %vm1928_vm13 = vmor %vm1926_vm12, %vm1927_vm11 }
 0x2f3   :  { %v962_v32 = vpop.f32.mrf.mxu2  ;;  %v1914_v56 = vsel %vm1913_vm9, %v2950_v27, %v1910_v52  ;;  %v1923_v57 = vsub.f32 1.0, %v1922_v53  ;;  %v739_v15 = vadd.f32 %v3866_v36, %v738_v60 }
 0x2f4   :  { %v1919_v58 = vsel %vm1916_vm10, %v1918_v54, %v1914_v56  ;;  %2957 = vrcp.f32 %v3871_v55  ;;  %v1250_v63 = vpop.f32.mrf.mxu3  ;;  %v963_v9 = vadd.f32 %v3744_v19, %v962_v32  ;;  %v1947_v18 = vand.u32 2147483648, %v3871_v55 }
 0x2f5   :  { %2587 = vst.msk [vmem:[%s4151_s9 + $0xa0] sm:$0xff] %vm2566_vm4, %v1919_v58  ;;  %v1924_v61 = vmul.f32 %v2952_v48, %v1923_v57  ;;  %v1251_v1 = vadd.f32 %v3817_v59, %v1250_v63  ;;  %v1945_v24 = vand.u32 2147483647, %v3871_v55  ;;  %vm1941_vm0 = vweird.f32 %v3871_v55 }
 0x2f6   :  { %v1059_v20 = vmax.f32 %v963_v9, 0.0  ;;  %v1948_v33 = vor.u32 1.1754944e-38, %v1947_v18 }
 0x2f7   :  { %v1925_v2 = vadd.f32 %v2952_v48, %v1924_v61  ;;  %v2956_v3 = vpop.eup %2955  ;;  %v2795_v4 = vmul.f32 -1.442695, %v1251_v1  ;;  %vm1946_vm2 = vcmp.eq.f32.partialorder %v1945_v24, 8.507059e+37 }
 0x2f8   :  { %v1565_v6 = vadd.f32 1.0, %v2956_v3 }
 0x2f9   :  { %v1929_v5 = vsel %vm1928_vm13, %v2952_v48, %v1925_v2  ;;  %2959 = vpow2.f32 %v2795_v4 }
 0x2fa   :  { %v2958_v7 = vpop.eup %2957  ;;  %v1934_v8 = vsel %vm1931_vm14, %v1933_v22, %v1929_v5  ;;  %2961 = vrcp.f32 %v1565_v6  ;;  %v740_v12 = vpop.f32.mrf.mxu1  ;;  %v1962_v42 = vand.u32 2147483648, %v1565_v6  ;;  %v1960_v45 = vand.u32 2147483647, %v1565_v6 }
 0x2fb   :  { %v964_v0 = vpop.f32.mrf.mxu2  ;;  %2588 = vst.msk [vmem:[%s4151_s9 + $0xa8] sm:$0xff] %vm2566_vm4, %v1934_v8  ;;  %v1937_v10 = vmul.f32 %v2958_v7, %v3871_v55  ;;  %v741_v16 = vadd.f32 %v3866_v36, %v740_v12  ;;  %vm1942_vm15 = vweird.f32 %v2958_v7  ;;  %vm1956_vm5 = vweird.f32 %v1565_v6 }
 0x2fc   :  { %v965_v13 = vadd.f32 %v3744_v19, %v964_v0  ;;  %v1252_v17 = vpop.f32.mrf.mxu3  ;;  %vm1943_vm1 = vmor %vm1941_vm0, %vm1942_vm15  ;;  %v1963_v51 = vor.u32 1.1754944e-38, %v1962_v42  ;;  %vm1961_vm7 = vcmp.eq.f32.partialorder %v1960_v45, 8.507059e+37 }
 0x2fd   :  { %v1938_v14 = vsub.f32 1.0, %v1937_v10  ;;  %v1253_v21 = vadd.f32 %v3817_v59, %v1252_v17  ;;  %v778_v25 = vpack.c.bf16 %v741_v16, %v739_v15 }
 0x2fe   :  { %v1060_v38 = vmax.f32 %v965_v13, 0.0 }
 0x2ff   :  { %v1939_v23 = vmul.f32 %v2958_v7, %v1938_v14  ;;  %v2960_v26 = vpop.eup %2959  ;;  %v2796_v28 = vmul.f32 -1.442695, %v1253_v21  ;;  %1006 = vmatmul.bf16.gmra.mxu2 %v778_v25 }
 0x300   :  { %v1102_v27 = vpack.c.bf16 %v1060_v38, %v1059_v20  ;;  %v2962_v11 = vpop.eup %2961  ;;  %v3892_v31 = vadd.f32 1.0, %v2960_v26 }
 0x301   :  { %v1940_v29 = vadd.f32 %v2958_v7, %v1939_v23  ;;  %v1952_v34 = vmul.f32 %v2962_v11, %v1565_v6  ;;  %2963 = vpow2.f32 %v2796_v28  ;;  %vm1957_vm3 = vweird.f32 %v2962_v11  ;;  %v3921_v28 = vld [vmem:[%s4148_s6] ss:$0 sm:$0xff] }
 0x302   :  { %1294 = vmatmul.bf16.gmra.mxu3 %v1102_v27  ;;  %2965 = vrcp.f32 %v3892_v31  ;;  %v743_v41 = vpop.f32.mrf.mxu1  ;;  %vm1958_vm6 = vmor %vm1956_vm5, %vm1957_vm3  ;;  %v1975_v58 = vand.u32 2147483647, %v3892_v31  ;;  %v1977_v61 = vand.u32 2147483648, %v3892_v31  ;;  %vm1971_vm9 = vweird.f32 %v3892_v31 }
 0x303   :  { %v967_v35 = vpop.f32.mrf.mxu2  ;;  %v1944_v37 = vsel %vm1943_vm1, %v2958_v7, %v1940_v29  ;;  %v1953_v40 = vsub.f32 1.0, %v1952_v34  ;;  %v744_v62 = vadd.f32 %v3866_v36, %v743_v41 }
 0x304   :  { %v1949_v39 = vsel %vm1946_vm2, %v1948_v33, %v1944_v37  ;;  %v1255_v43 = vpop.f32.mrf.mxu3  ;;  %v968_v53 = vadd.f32 %v3744_v19, %v967_v35  ;;  %v1978_v0 = vor.u32 1.1754944e-38, %v1977_v61  ;;  %vm1976_vm11 = vcmp.eq.f32.partialorder %v1975_v58, 8.507059e+37 }
 0x305   :  { %2589 = vst.msk [vmem:[%s4151_s9 + $0xb0] sm:$0xff] %vm2566_vm4, %v1949_v39  ;;  %v1954_v44 = vmul.f32 %v2962_v11, %v1953_v40  ;;  %v1256_v46 = vadd.f32 %v3817_v59, %v1255_v43 }
 0x306   :  { %v1061_v63 = vmax.f32 %v968_v53, 0.0 }
 0x307   :  { %v2964_v47 = vpop.eup %2963  ;;  %v1955_v48 = vadd.f32 %v2962_v11, %v1954_v44  ;;  %v2797_v49 = vmul.f32 -1.442695, %v1256_v46 }
 0x308   :  { %v2966_v50 = vpop.eup %2965  ;;  %v1567_v52 = vadd.f32 1.0, %v2964_v47 }
 0x309   :  { %v1959_v54 = vsel %vm1958_vm6, %v2962_v11, %v1955_v48  ;;  %v1967_v55 = vmul.f32 %v2966_v50, %v3892_v31  ;;  %2967 = vpow2.f32 %v2797_v49  ;;  %vm1972_vm8 = vweird.f32 %v2966_v50 }
 0x30a   :  { %v1964_v56 = vsel %vm1961_vm7, %v1963_v51, %v1959_v54  ;;  %2969 = vrcp.f32 %v1567_v52  ;;  %v745_v30 = vpop.f32.mrf.mxu1  ;;  %vm1973_vm10 = vmor %vm1971_vm9, %vm1972_vm8  ;;  %v1992_v16 = vand.u32 2147483648, %v1567_v52  ;;  %v1990_v20 = vand.u32 2147483647, %v1567_v52 }
 0x30b   :  { %v969_v32 = vpop.f32.mrf.mxu2  ;;  %2590 = vst.msk [vmem:[%s4151_s9 + $0xb8] sm:$0xff] %vm2566_vm4, %v1964_v56  ;;  %v1968_v57 = vsub.f32 1.0, %v1967_v55  ;;  %v746_v1 = vadd.f32 %v3866_v36, %v745_v30  ;;  %vm1986_vm13 = vweird.f32 %v1567_v52 }
 0x30c   :  { %v970_v60 = vadd.f32 %v3744_v19, %v969_v32  ;;  %v1257_v2 = vpop.f32.mrf.mxu3  ;;  %v1993_v26 = vor.u32 1.1754944e-38, %v1992_v16  ;;  %vm1991_vm15 = vcmp.eq.f32.partialorder %v1990_v20, 8.507059e+37 }
 0x30d   :  { %v1969_v3 = vmul.f32 %v2966_v50, %v1968_v57  ;;  %v1258_v4 = vadd.f32 %v3817_v59, %v1257_v2  ;;  %v779_v5 = vpack.c.bf16 %v746_v1, %v744_v62 }
 0x30e   :  { %v1062_v22 = vmax.f32 %v970_v60, 0.0 }
 0x30f   :  { %v2968_v6 = vpop.eup %2967  ;;  %v1970_v7 = vadd.f32 %v2966_v50, %v1969_v3  ;;  %v2798_v19 = vmul.f32 -1.442695, %v1258_v4  ;;  %1011 = vmatmul.bf16.gmra.mxu2 %v779_v5 }
 0x310   :  { %v1103_v8 = vpack.c.bf16 %v1062_v22, %v1061_v63  ;;  %v2970_v9 = vpop.eup %2969  ;;  %v1568_v10 = vadd.f32 1.0, %v2968_v6 }
 0x311   :  { %v1974_v12 = vsel %vm1973_vm10, %v2966_v50, %v1970_v7  ;;  %v1982_v36 = vmul.f32 %v2970_v9, %v1567_v52  ;;  %2971 = vpow2.f32 %v2798_v19  ;;  %vm1987_vm12 = vweird.f32 %v2970_v9 }
 0x312   :  { %1299 = vmatmul.bf16.gmra.mxu3 %v1103_v8  ;;  %v1979_v14 = vsel %vm1976_vm11, %v1978_v0, %v1974_v12  ;;  %2973 = vrcp.f32 %v1568_v10  ;;  %vm1988_vm14 = vmor %vm1986_vm13, %vm1987_vm12  ;;  %v2005_v39 = vand.u32 2147483647, %v1568_v10  ;;  %v2007_v40 = vand.u32 2147483648, %v1568_v10 }
 0x313   :  { %v972_v13 = vpop.f32.mrf.mxu2  ;;  %2591 = vst.msk [vmem:[%s4151_s9 + $0xc0] sm:$0xff] %vm2566_vm4, %v1979_v14  ;;  %v1983_v15 = vsub.f32 1.0, %v1982_v36  ;;  %vm2001_vm1 = vweird.f32 %v1568_v10 }
 0x314   :  { %v1260_v17 = vpop.f32.mrf.mxu3  ;;  %v973_v11 = vadd.f32 %v3921_v28, %v972_v13  ;;  %v2008_v51 = vor.u32 1.1754944e-38, %v2007_v40  ;;  %vm2006_vm3 = vcmp.eq.f32.partialorder %v2005_v39, 8.507059e+37 }
 0x315   :  { %v1984_v18 = vmul.f32 %v2970_v9, %v1983_v15  ;;  %v1261_v38 = vadd.f32 %v3817_v59, %v1260_v17 }
 0x316   :  { %v1063_v41 = vmax.f32 %v973_v11, 0.0 }
 0x317   :  { %v2972_v21 = vpop.eup %2971  ;;  %v1985_v23 = vadd.f32 %v2970_v9, %v1984_v18  ;;  %v2799_v24 = vmul.f32 -1.442695, %v1261_v38 }
 0x318   :  { %v2974_v25 = vpop.eup %2973  ;;  %v1569_v27 = vadd.f32 1.0, %v2972_v21 }
 0x319   :  { %v1989_v29 = vsel %vm1988_vm14, %v2970_v9, %v1985_v23  ;;  %v1997_v31 = vmul.f32 %v2974_v25, %v1568_v10  ;;  %2975 = vpow2.f32 %v2799_v24  ;;  %vm2002_vm0 = vweird.f32 %v2974_v25 }
 0x31a   :  { %v1994_v34 = vsel %vm1991_vm15, %v1993_v26, %v1989_v29  ;;  %2977 = vrcp.f32 %v1569_v27  ;;  %vm2003_vm2 = vmor %vm2001_vm1, %vm2002_vm0  ;;  %v2022_v57 = vand.u32 2147483648, %v1569_v27  ;;  %v2020_v60 = vand.u32 2147483647, %v1569_v27 }
 0x31b   :  { %v974_v33 = vpop.f32.mrf.mxu2  ;;  %2592 = vst.msk [vmem:[%s4151_s9 + $0xc8] sm:$0xff] %vm2566_vm4, %v1994_v34  ;;  %v1998_v35 = vsub.f32 1.0, %v1997_v31  ;;  %vm2016_vm6 = vweird.f32 %v1569_v27 }
 0x31c   :  { %v975_v37 = vadd.f32 %v3921_v28, %v974_v33  ;;  %v1262_v42 = vpop.f32.mrf.mxu3  ;;  %v2023_v3 = vor.u32 1.1754944e-38, %v2022_v57  ;;  %vm2021_vm8 = vcmp.eq.f32.partialorder %v2020_v60, 8.507059e+37 }
 0x31d   :  { %v1999_v43 = vmul.f32 %v2974_v25, %v1998_v35  ;;  %v1263_v45 = vadd.f32 %v3817_v59, %v1262_v42 }
 0x31e   :  { %v1064_v44 = vmax.f32 %v975_v37, 0.0 }
 0x31f   :  { %v2976_v46 = vpop.eup %2975  ;;  %v2000_v47 = vadd.f32 %v2974_v25, %v1999_v43  ;;  %v2800_v49 = vmul.f32 -1.442695, %v1263_v45 }
 0x320   :  { %v1104_v48 = vpack.c.bf16 %v1064_v44, %v1063_v41  ;;  %v2978_v50 = vpop.eup %2977  ;;  %v1570_v52 = vadd.f32 1.0, %v2976_v46 }
 0x321   :  { %v2004_v53 = vsel %vm2003_vm2, %v2974_v25, %v2000_v47  ;;  %v2012_v54 = vmul.f32 %v2978_v50, %v1569_v27  ;;  %2979 = vpow2.f32 %v2800_v49  ;;  %vm2017_vm5 = vweird.f32 %v2978_v50 }
 0x322   :  { %1304 = vmatmul.bf16.gmra.mxu3 %v1104_v48  ;;  %v2009_v32 = vsel %vm2006_vm3, %v2008_v51, %v2004_v53  ;;  %2981 = vrcp.f32 %v1570_v52  ;;  %vm2018_vm7 = vmor %vm2016_vm6, %vm2017_vm5  ;;  %v2035_v0 = vand.u32 2147483647, %v1570_v52  ;;  %v2037_v10 = vand.u32 2147483648, %v1570_v52 }
 0x323   :  { %v977_v55 = vpop.f32.mrf.mxu2  ;;  %2593 = vst.msk [vmem:[%s4151_s9 + $0xd0] sm:$0xff] %vm2566_vm4, %v2009_v32  ;;  %v2013_v56 = vsub.f32 1.0, %v2012_v54  ;;  %vm2031_vm10 = vweird.f32 %v1570_v52 }
 0x324   :  { %v1265_v58 = vpop.f32.mrf.mxu3  ;;  %v978_v4 = vadd.f32 %v3921_v28, %v977_v55  ;;  %v2038_v21 = vor.u32 1.1754944e-38, %v2037_v10  ;;  %vm2036_vm12 = vcmp.eq.f32.partialorder %v2035_v0, 8.507059e+37 }
 0x325   :  { %v2014_v30 = vmul.f32 %v2978_v50, %v2013_v56  ;;  %v1266_v61 = vadd.f32 %v3817_v59, %v1265_v58 }
 0x326   :  { %v1065_v12 = vmax.f32 %v978_v4, 0.0 }
 0x327   :  { %v2980_v62 = vpop.eup %2979  ;;  %v2015_v63 = vadd.f32 %v2978_v50, %v2014_v30  ;;  %v2801_v1 = vmul.f32 -1.442695, %v1266_v61 }
 0x328   :  { %v2982_v2 = vpop.eup %2981  ;;  %v1571_v22 = vadd.f32 1.0, %v2980_v62 }
 0x329   :  { %v2019_v5 = vsel %vm2018_vm7, %v2978_v50, %v2015_v63  ;;  %v2027_v6 = vmul.f32 %v2982_v2, %v1570_v52  ;;  %2983 = vpow2.f32 %v2801_v1  ;;  %vm2032_vm9 = vweird.f32 %v2982_v2 }
 0x32a   :  { %v2024_v8 = vsel %vm2021_vm8, %v2023_v3, %v2019_v5  ;;  %2985 = vrcp.f32 %v1571_v22  ;;  %vm2033_vm11 = vmor %vm2031_vm10, %vm2032_vm9  ;;  %v2052_v29 = vand.u32 2147483648, %v1571_v22  ;;  %v2050_v34 = vand.u32 2147483647, %v1571_v22 }
 0x32b   :  { %v979_v7 = vpop.f32.mrf.mxu2  ;;  %2594 = vst.msk [vmem:[%s4151_s9 + $0xd8] sm:$0xff] %vm2566_vm4, %v2024_v8  ;;  %v2028_v19 = vsub.f32 1.0, %v2027_v6  ;;  %vm2046_vm14 = vweird.f32 %v1571_v22 }
 0x32c   :  { %v980_v9 = vadd.f32 %v3921_v28, %v979_v7  ;;  %v1267_v36 = vpop.f32.mrf.mxu3  ;;  %v2053_v42 = vor.u32 1.1754944e-38, %v2052_v29  ;;  %vm2051_vm0 = vcmp.eq.f32.partialorder %v2050_v34, 8.507059e+37 }
 0x32d   :  { %v2029_v13 = vmul.f32 %v2982_v2, %v2028_v19  ;;  %v1268_v15 = vadd.f32 %v3817_v59, %v1267_v36 }
 0x32e   :  { %v1066_v14 = vmax.f32 %v980_v9, 0.0 }
 0x32f   :  { %v2984_v16 = vpop.eup %2983  ;;  %v2030_v17 = vadd.f32 %v2982_v2, %v2029_v13  ;;  %v2802_v20 = vmul.f32 -1.442695, %v1268_v15 }
 0x330   :  { %v1105_v18 = vpack.c.bf16 %v1066_v14, %v1065_v12  ;;  %v2986_v38 = vpop.eup %2985  ;;  %v1572_v23 = vadd.f32 1.0, %v2984_v16 }
 0x331   :  { %v2034_v24 = vsel %vm2033_vm11, %v2982_v2, %v2030_v17  ;;  %v2042_v25 = vmul.f32 %v2986_v38, %v1571_v22  ;;  %2987 = vpow2.f32 %v2802_v20  ;;  %vm2047_vm13 = vweird.f32 %v2986_v38 }
 0x332   :  { %1309 = vmatmul.bf16.gmra.mxu3 %v1105_v18  ;;  %v2039_v27 = vsel %vm2036_vm12, %v2038_v21, %v2034_v24  ;;  %2989 = vrcp.f32 %v1572_v23  ;;  %vm2048_vm15 = vmor %vm2046_vm14, %vm2047_vm13  ;;  %v2065_v51 = vand.u32 2147483647, %v1572_v23  ;;  %v2067_v52 = vand.u32 2147483648, %v1572_v23 }
 0x333   :  { %v982_v26 = vpop.f32.mrf.mxu2  ;;  %2595 = vst.msk [vmem:[%s4151_s9 + $0xe0] sm:$0xff] %vm2566_vm4, %v2039_v27  ;;  %v2043_v11 = vsub.f32 1.0, %v2042_v25  ;;  %vm2061_vm2 = vweird.f32 %v1572_v23 }
 0x334   :  { %v983_v44 = vadd.f32 %v3921_v28, %v982_v26  ;;  %v2068_v62 = vor.u32 1.1754944e-38, %v2067_v52  ;;  %vm2066_vm5 = vcmp.eq.f32.partialorder %v2065_v51, 8.507059e+37 }
 0x335   :  { %v1270_v31 = vpop.f32.mrf.mxu3  ;;  %v2044_v33 = vmul.f32 %v2986_v38, %v2043_v11 }
 0x336   :  { %v1271_v35 = vadd.f32 %v3817_v59, %v1270_v31  ;;  %v1067_v53 = vmax.f32 %v983_v44, 0.0 }
 0x337   :  { %v2988_v37 = vpop.eup %2987  ;;  %v2045_v39 = vadd.f32 %v2986_v38, %v2044_v33 }
 0x338   :  { %v2803_v40 = vmul.f32 -1.442695, %v1271_v35  ;;  %v2990_v41 = vpop.eup %2989  ;;  %v1573_v43 = vadd.f32 1.0, %v2988_v37 }
 0x339   :  { %v2049_v45 = vsel %vm2048_vm15, %v2986_v38, %v2045_v39  ;;  %v2057_v46 = vmul.f32 %v2990_v41, %v1572_v23  ;;  %vm2062_vm1 = vweird.f32 %v2990_v41 }
 0x33a   :  { %2991 = vpow2.f32 %v2803_v40  ;;  %v2054_v48 = vsel %vm2051_vm0, %v2053_v42, %v2049_v45  ;;  %vm2063_vm3 = vmor %vm2061_vm2, %vm2062_vm1  ;;  %v2082_v5 = vand.u32 2147483648, %v1573_v43  ;;  %v2080_v8 = vand.u32 2147483647, %v1573_v43 }
 0x33b   :  { %v984_v47 = vpop.f32.mrf.mxu2  ;;  %2993 = vrcp.f32 %v1573_v43  ;;  %2596 = vst.msk [vmem:[%s4151_s9 + $0xe8] sm:$0xff] %vm2566_vm4, %v2054_v48  ;;  %v2058_v49 = vsub.f32 1.0, %v2057_v46  ;;  %vm2076_vm7 = vweird.f32 %v1573_v43 }
 0x33c   :  { %v985_v50 = vadd.f32 %v3921_v28, %v984_v47  ;;  %v2083_v36 = vor.u32 1.1754944e-38, %v2082_v5  ;;  %vm2081_vm9 = vcmp.eq.f32.partialorder %v2080_v8, 8.507059e+37 }
 0x33d   :  { %v1272_v54 = vpop.f32.mrf.mxu3  ;;  %v2059_v55 = vmul.f32 %v2990_v41, %v2058_v49 }
 0x33e   :  { %v1068_v32 = vmax.f32 %v985_v50, 0.0  ;;  %v1273_v56 = vadd.f32 %v3817_v59, %v1272_v54 }
 0x33f   :  { %v2060_v58 = vadd.f32 %v2990_v41, %v2059_v55 }
 0x340   :  { %v2992_v57 = vpop.eup %2991  ;;  %v1106_v30 = vpack.c.bf16 %v1068_v32, %v1067_v53  ;;  %v2804_v60 = vmul.f32 -1.442695, %v1273_v56 }
 0x341   :  { %v2994_v61 = vpop.eup %2993  ;;  %v1574_v63 = vadd.f32 1.0, %v2992_v57  ;;  %v2064_v1 = vsel %vm2063_vm3, %v2990_v41, %v2060_v58 }
 0x342   :  { %v2072_v2 = vmul.f32 %v2994_v61, %v1573_v43  ;;  %2995 = vpow2.f32 %v2804_v60  ;;  %1314 = vmatmul.bf16.gmra.mxu3 %v1106_v30  ;;  %v2069_v22 = vsel %vm2066_vm5, %v2068_v62, %v2064_v1  ;;  %vm2077_vm6 = vweird.f32 %v2994_v61 }
 0x343   :  { %v987_v3 = vpop.f32.mrf.mxu2  ;;  %2997 = vrcp.f32 %v1574_v63  ;;  %2597 = vst.msk [vmem:[%s4151_s9 + $0xf0] sm:$0xff] %vm2566_vm4, %v2069_v22  ;;  %vm2078_vm8 = vmor %vm2076_vm7, %vm2077_vm6  ;;  %v2095_v21 = vand.u32 2147483647, %v1574_v63  ;;  %v2097_v23 = vand.u32 2147483648, %v1574_v63  ;;  %vm2091_vm11 = vweird.f32 %v1574_v63  ;;  %v3980_v22 = vld [vmem:[%s4150_s8] ss:$0 sm:$0xff] }
 0x344   :  { %v2073_v4 = vsub.f32 1.0, %v2072_v2  ;;  %v988_v14 = vadd.f32 %v3921_v28, %v987_v3 }
 0x345   :  { %v1275_v6 = vpop.f32.mrf.mxu3  ;;  %v2098_v37 = vor.u32 1.1754944e-38, %v2097_v23  ;;  %vm2096_vm13 = vcmp.eq.f32.partialorder %v2095_v21, 8.507059e+37 }
 0x346   :  { %v2074_v7 = vmul.f32 %v2994_v61, %v2073_v4  ;;  %v1276_v19 = vadd.f32 %v3817_v59, %v1275_v6  ;;  %v1069_v24 = vmax.f32 %v988_v14, 0.0 }
 0x348   :  { %v2996_v9 = vpop.eup %2995  ;;  %v2075_v0 = vadd.f32 %v2994_v61, %v2074_v7  ;;  %v2805_v10 = vmul.f32 -1.442695, %v1276_v19 }
 0x349   :  { %v2998_v12 = vpop.eup %2997  ;;  %v1575_v13 = vadd.f32 1.0, %v2996_v9 }
 0x34a   :  { %v2079_v15 = vsel %vm2078_vm8, %v2994_v61, %v2075_v0  ;;  %v2087_v16 = vmul.f32 %v2998_v12, %v1574_v63  ;;  %2999 = vpow2.f32 %v2805_v10  ;;  %vm2092_vm10 = vweird.f32 %v2998_v12 }
 0x34b   :  { %v989_v17 = vpop.f32.mrf.mxu2  ;;  %v2084_v18 = vsel %vm2081_vm9, %v2083_v36, %v2079_v15  ;;  %3001 = vrcp.f32 %v1575_v13  ;;  %vm2093_vm12 = vmor %vm2091_vm11, %vm2092_vm10  ;;  %v2112_v45 = vand.u32 2147483648, %v1575_v13  ;;  %v2110_v48 = vand.u32 2147483647, %v1575_v13 }
 0x34c   :  { %2598 = vst.msk [vmem:[%s4151_s9 + $0xf8] sm:$0xff] %vm2566_vm4, %v2084_v18  ;;  %v2088_v20 = vsub.f32 1.0, %v2087_v16  ;;  %v990_v38 = vadd.f32 %v3921_v28, %v989_v17  ;;  %vm2106_vm15 = vweird.f32 %v1575_v13 }
 0x34d   :  { %v1277_v25 = vpop.f32.mrf.mxu3  ;;  %v2113_v54 = vor.u32 1.1754944e-38, %v2112_v45  ;;  %vm2111_vm1 = vcmp.eq.f32.partialorder %v2110_v48, 8.507059e+37 }
 0x34e   :  { %v2089_v26 = vmul.f32 %v2998_v12, %v2088_v20  ;;  %v1070_v27 = vmax.f32 %v990_v38, 0.0  ;;  %v1278_v11 = vadd.f32 %v3817_v59, %v1277_v25 }
 0x350   :  { %v3000_v29 = vpop.eup %2999  ;;  %v2090_v31 = vadd.f32 %v2998_v12, %v2089_v26  ;;  %v1107_v33 = vpack.c.bf16 %v1070_v27, %v1069_v24  ;;  %v2806_v34 = vmul.f32 -1.442695, %v1278_v11 }
 0x351   :  { %v3002_v35 = vpop.eup %3001  ;;  %v1576_v39 = vadd.f32 1.0, %v3000_v29 }
 0x352   :  { %v2094_v40 = vsel %vm2093_vm12, %v2998_v12, %v2090_v31  ;;  %v2102_v41 = vmul.f32 %v3002_v35, %v1575_v13  ;;  %3003 = vpow2.f32 %v2806_v34  ;;  %1319 = vmatmul.bf16.gmra.mxu3 %v1107_v33  ;;  %vm2107_vm14 = vweird.f32 %v3002_v35 }
 0x353   :  { %v992_v42 = vpop.f32.mrf.mxu2  ;;  %v2099_v43 = vsel %vm2096_vm13, %v2098_v37, %v2094_v40  ;;  %3005 = vrcp.f32 %v1576_v39  ;;  %vm2108_vm0 = vmor %vm2106_vm15, %vm2107_vm14  ;;  %v2125_v61 = vand.u32 2147483647, %v1576_v39  ;;  %v2127_v62 = vand.u32 2147483648, %v1576_v39 }
 0x354   :  { %2599 = vst.msk [vmem:[%s4151_s9 + $0x100] sm:$0xff] %vm2566_vm4, %v2099_v43  ;;  %v2103_v44 = vsub.f32 1.0, %v2102_v41  ;;  %v993_v32 = vadd.f32 %v3921_v28, %v992_v42  ;;  %vm2121_vm3 = vweird.f32 %v1576_v39 }
 0x355   :  { %v1280_v46 = vpop.f32.mrf.mxu3  ;;  %v2128_v9 = vor.u32 1.1754944e-38, %v2127_v62  ;;  %vm2126_vm6 = vcmp.eq.f32.partialorder %v2125_v61, 8.507059e+37 }
 0x356   :  { %v2104_v47 = vmul.f32 %v3002_v35, %v2103_v44  ;;  %v1281_v49 = vadd.f32 %v3817_v59, %v1280_v46  ;;  %v1071_v63 = vmax.f32 %v993_v32, 0.0 }
 0x358   :  { %v3004_v50 = vpop.eup %3003  ;;  %v2105_v51 = vadd.f32 %v3002_v35, %v2104_v47  ;;  %v2807_v52 = vmul.f32 -1.442695, %v1281_v49 }
 0x359   :  { %v3006_v53 = vpop.eup %3005  ;;  %v1577_v55 = vadd.f32 1.0, %v3004_v50 }
 0x35a   :  { %v2109_v56 = vsel %vm2108_vm0, %v3002_v35, %v2105_v51  ;;  %v2117_v57 = vmul.f32 %v3006_v53, %v1576_v39  ;;  %3007 = vpow2.f32 %v2807_v52  ;;  %vm2122_vm2 = vweird.f32 %v3006_v53 }
 0x35b   :  { %v994_v58 = vpop.f32.mrf.mxu2  ;;  %v2114_v30 = vsel %vm2111_vm1, %v2113_v54, %v2109_v56  ;;  %3009 = vrcp.f32 %v1577_v55  ;;  %vm2123_vm5 = vmor %vm2121_vm3, %vm2122_vm2  ;;  %v2142_v15 = vand.u32 2147483648, %v1577_v55  ;;  %v2140_v18 = vand.u32 2147483647, %v1577_v55 }
 0x35c   :  { %2600 = vst.msk [vmem:[%s4151_s9 + $0x108] sm:$0xff] %vm2566_vm4, %v2114_v30  ;;  %v2118_v59 = vsub.f32 1.0, %v2117_v57  ;;  %v995_v60 = vadd.f32 %v3921_v28, %v994_v58  ;;  %vm2136_vm8 = vweird.f32 %v1577_v55 }
 0x35d   :  { %v1282_v1 = vpop.f32.mrf.mxu3  ;;  %v2143_v25 = vor.u32 1.1754944e-38, %v2142_v15  ;;  %vm2141_vm10 = vcmp.eq.f32.partialorder %v2140_v18, 8.507059e+37 }
 0x35e   :  { %v2119_v2 = vmul.f32 %v3006_v53, %v2118_v59  ;;  %v1072_v3 = vmax.f32 %v995_v60, 0.0  ;;  %v1283_v4 = vadd.f32 %v3980_v22, %v1282_v1 }
 0x360   :  { %v3008_v5 = vpop.eup %3007  ;;  %v2120_v6 = vadd.f32 %v3006_v53, %v2119_v2  ;;  %v1108_v7 = vpack.c.bf16 %v1072_v3, %v1071_v63  ;;  %v2808_v8 = vmul.f32 -1.442695, %v1283_v4 }
 0x361   :  { %v3010_v19 = vpop.eup %3009  ;;  %v1578_v0 = vadd.f32 1.0, %v3008_v5 }
 0x362   :  { %v2124_v10 = vsel %vm2123_vm5, %v3006_v53, %v2120_v6  ;;  %v2132_v12 = vmul.f32 %v3010_v19, %v1577_v55  ;;  %3011 = vpow2.f32 %v2808_v8  ;;  %1324 = vmatmul.bf16.gmra.mxu3 %v1108_v7  ;;  %vm2137_vm7 = vweird.f32 %v3010_v19 }
 0x363   :  { %v2129_v36 = vsel %vm2126_vm6, %v2128_v9, %v2124_v10  ;;  %3013 = vrcp.f32 %v1578_v0  ;;  %v997_v14 = vpop.f32.mrf.mxu2  ;;  %vm2138_vm9 = vmor %vm2136_vm8, %vm2137_vm7  ;;  %v2157_v35 = vand.u32 2147483648, %v1578_v0  ;;  %v2155_v41 = vand.u32 2147483647, %v1578_v0 }
 0x364   :  { %2601 = vst.msk [vmem:[%s4151_s9 + $0x110] sm:$0xff] %vm2566_vm4, %v2129_v36  ;;  %v2133_v13 = vsub.f32 1.0, %v2132_v12  ;;  %v998_v31 = vadd.f32 %v3921_v28, %v997_v14  ;;  %vm2151_vm12 = vweird.f32 %v1578_v0 }
 0x365   :  { %v1285_v16 = vpop.f32.mrf.mxu3  ;;  %v2158_v49 = vor.u32 1.1754944e-38, %v2157_v35  ;;  %vm2156_vm14 = vcmp.eq.f32.partialorder %v2155_v41, 8.507059e+37 }
 0x366   :  { %v2134_v17 = vmul.f32 %v3010_v19, %v2133_v13  ;;  %v1286_v20 = vadd.f32 %v3980_v22, %v1285_v16  ;;  %v1073_v43 = vmax.f32 %v998_v31, 0.0 }
 0x368   :  { %v3012_v38 = vpop.eup %3011  ;;  %v2135_v21 = vadd.f32 %v3010_v19, %v2134_v17  ;;  %v2809_v23 = vmul.f32 -1.442695, %v1286_v20 }
 0x369   :  { %v3014_v24 = vpop.eup %3013  ;;  %v1579_v26 = vadd.f32 1.0, %v3012_v38 }
 0x36a   :  { %v2139_v27 = vsel %vm2138_vm9, %v3010_v19, %v2135_v21  ;;  %v2147_v11 = vmul.f32 %v3014_v24, %v1578_v0  ;;  %3015 = vpow2.f32 %v2809_v23  ;;  %vm2152_vm11 = vweird.f32 %v3014_v24 }
 0x36b   :  { %v2144_v29 = vsel %vm2141_vm10, %v2143_v25, %v2139_v27  ;;  %3017 = vrcp.f32 %v1579_v26  ;;  %v999_v34 = vpop.f32.mrf.mxu2  ;;  %vm2153_vm13 = vmor %vm2151_vm12, %vm2152_vm11  ;;  %v2172_v56 = vand.u32 2147483648, %v1579_v26  ;;  %v2170_v30 = vand.u32 2147483647, %v1579_v26 }
 0x36c   :  { %2602 = vst.msk [vmem:[%s4151_s9 + $0x118] sm:$0xff] %vm2566_vm4, %v2144_v29  ;;  %v2148_v33 = vsub.f32 1.0, %v2147_v11  ;;  %v1000_v37 = vadd.f32 %v3921_v28, %v999_v34  ;;  %vm2166_vm0 = vweird.f32 %v1579_v26 }
 0x36d   :  { %v1287_v39 = vpop.f32.mrf.mxu3  ;;  %v2173_v1 = vor.u32 1.1754944e-38, %v2172_v56  ;;  %vm2171_vm2 = vcmp.eq.f32.partialorder %v2170_v30, 8.507059e+37 }
 0x36e   :  { %v2149_v40 = vmul.f32 %v3014_v24, %v2148_v33  ;;  %v1288_v42 = vadd.f32 %v3980_v22, %v1287_v39  ;;  %v1074_v44 = vmax.f32 %v1000_v37, 0.0 }
 0x370   :  { %v3016_v45 = vpop.eup %3015  ;;  %v2150_v46 = vadd.f32 %v3014_v24, %v2149_v40  ;;  %v2810_v47 = vmul.f32 -1.442695, %v1288_v42  ;;  %v1109_v51 = vpack.c.bf16 %v1074_v44, %v1073_v43 }
 0x371   :  { %v3018_v48 = vpop.eup %3017  ;;  %v1580_v50 = vadd.f32 1.0, %v3016_v45 }
 0x372   :  { %v2154_v52 = vsel %vm2153_vm13, %v3014_v24, %v2150_v46  ;;  %v2162_v53 = vmul.f32 %v3018_v48, %v1579_v26  ;;  %3019 = vpow2.f32 %v2810_v47  ;;  %1329 = vmatmul.bf16.gmra.mxu3 %v1109_v51  ;;  %vm2167_vm15 = vweird.f32 %v3018_v48 }
 0x373   :  { %v2159_v54 = vsel %vm2156_vm14, %v2158_v49, %v2154_v52  ;;  %3021 = vrcp.f32 %v1580_v50  ;;  %v1002_v32 = vpop.f32.mrf.mxu2  ;;  %vm2168_vm1 = vmor %vm2166_vm0, %vm2167_vm15  ;;  %v2187_v19 = vand.u32 2147483648, %v1580_v50  ;;  %v2185_v12 = vand.u32 2147483647, %v1580_v50 }
 0x374   :  { %2603 = vst.msk [vmem:[%s4151_s9 + $0x120] sm:$0xff] %vm2566_vm4, %v2159_v54  ;;  %v2163_v55 = vsub.f32 1.0, %v2162_v53  ;;  %v1003_v6 = vadd.f32 %v3921_v28, %v1002_v32  ;;  %vm2181_vm5 = vweird.f32 %v1580_v50 }
 0x375   :  { %v1290_v57 = vpop.f32.mrf.mxu3  ;;  %v2188_v20 = vor.u32 1.1754944e-38, %v2187_v19  ;;  %vm2186_vm7 = vcmp.eq.f32.partialorder %v2185_v12, 8.507059e+37 }
 0x376   :  { %v2164_v58 = vmul.f32 %v3018_v48, %v2163_v55  ;;  %v1291_v59 = vadd.f32 %v3980_v22, %v1290_v57  ;;  %v1075_v13 = vmax.f32 %v1003_v6, 0.0 }
 0x378   :  { %v3020_v60 = vpop.eup %3019  ;;  %v2165_v61 = vadd.f32 %v3018_v48, %v2164_v58  ;;  %v2811_v62 = vmul.f32 -1.442695, %v1291_v59 }
 0x379   :  { %v3022_v63 = vpop.eup %3021  ;;  %v1581_v2 = vadd.f32 1.0, %v3020_v60 }
 0x37a   :  { %v2169_v3 = vsel %vm2168_vm1, %v3018_v48, %v2165_v61  ;;  %v2177_v4 = vmul.f32 %v3022_v63, %v1580_v50  ;;  %3023 = vpow2.f32 %v2811_v62  ;;  %vm2182_vm3 = vweird.f32 %v3022_v63 }
 0x37b   :  { %v2174_v5 = vsel %vm2171_vm2, %v2173_v1, %v2169_v3  ;;  %3025 = vrcp.f32 %v1581_v2  ;;  %v1004_v8 = vpop.f32.mrf.mxu2  ;;  %vm2183_vm6 = vmor %vm2181_vm5, %vm2182_vm3  ;;  %v2202_v11 = vand.u32 2147483648, %v1581_v2  ;;  %v2200_v33 = vand.u32 2147483647, %v1581_v2 }
 0x37c   :  { %2604 = vst.msk [vmem:[%s4151_s9 + $0x128] sm:$0xff] %vm2566_vm4, %v2174_v5  ;;  %v2178_v7 = vsub.f32 1.0, %v2177_v4  ;;  %v1005_v9 = vadd.f32 %v3921_v28, %v1004_v8  ;;  %vm2196_vm9 = vweird.f32 %v1581_v2 }
 0x37d   :  { %v1292_v0 = vpop.f32.mrf.mxu3  ;;  %v2203_v41 = vor.u32 1.1754944e-38, %v2202_v11  ;;  %vm2201_vm11 = vcmp.eq.f32.partialorder %v2200_v33, 8.507059e+37 }
 0x37e   :  { %v2179_v10 = vmul.f32 %v3022_v63, %v2178_v7  ;;  %v1293_v36 = vadd.f32 %v3980_v22, %v1292_v0  ;;  %v1076_v14 = vmax.f32 %v1005_v9, 0.0 }
 0x380   :  { %v3024_v15 = vpop.eup %3023  ;;  %v2180_v16 = vadd.f32 %v3022_v63, %v2179_v10  ;;  %v2812_v17 = vmul.f32 -1.442695, %v1293_v36  ;;  %v1110_v21 = vpack.c.bf16 %v1076_v14, %v1075_v13 }
 0x381   :  { %v3026_v18 = vpop.eup %3025  ;;  %v1582_v38 = vadd.f32 1.0, %v3024_v15 }
 0x382   :  { %v2184_v23 = vsel %vm2183_vm6, %v3022_v63, %v2180_v16  ;;  %v2192_v24 = vmul.f32 %v3026_v18, %v1581_v2  ;;  %3027 = vpow2.f32 %v2812_v17  ;;  %1334 = vmatmul.bf16.gmra.mxu3 %v1110_v21  ;;  %vm2197_vm8 = vweird.f32 %v3026_v18 }
 0x383   :  { %v2189_v25 = vsel %vm2186_vm7, %v2188_v20, %v2184_v23  ;;  %3029 = vrcp.f32 %v1582_v38  ;;  %v1007_v27 = vpop.f32.mrf.mxu2  ;;  %vm2198_vm10 = vmor %vm2196_vm9, %vm2197_vm8  ;;  %v2217_v49 = vand.u32 2147483648, %v1582_v38  ;;  %v2215_v53 = vand.u32 2147483647, %v1582_v38 }
 0x384   :  { %2605 = vst.msk [vmem:[%s4151_s9 + $0x130] sm:$0xff] %vm2566_vm4, %v2189_v25  ;;  %v2193_v26 = vsub.f32 1.0, %v2192_v24  ;;  %v1008_v46 = vadd.f32 %v3921_v28, %v1007_v27  ;;  %vm2211_vm13 = vweird.f32 %v1582_v38 }
 0x385   :  { %v1295_v29 = vpop.f32.mrf.mxu3  ;;  %v2218_v59 = vor.u32 1.1754944e-38, %v2217_v49  ;;  %vm2216_vm15 = vcmp.eq.f32.partialorder %v2215_v53, 8.507059e+37 }
 0x386   :  { %v2194_v31 = vmul.f32 %v3026_v18, %v2193_v26  ;;  %v1296_v34 = vadd.f32 %v3980_v22, %v1295_v29  ;;  %v1077_v55 = vmax.f32 %v1008_v46, 0.0 }
 0x388   :  { %v3028_v35 = vpop.eup %3027  ;;  %v2195_v37 = vadd.f32 %v3026_v18, %v2194_v31  ;;  %v2813_v39 = vmul.f32 -1.442695, %v1296_v34 }
 0x389   :  { %v3030_v40 = vpop.eup %3029  ;;  %v1583_v42 = vadd.f32 1.0, %v3028_v35 }
 0x38a   :  { %v2199_v43 = vsel %vm2198_vm10, %v3026_v18, %v2195_v37  ;;  %v2207_v44 = vmul.f32 %v3030_v40, %v1582_v38  ;;  %3031 = vpow2.f32 %v2813_v39  ;;  %vm2212_vm12 = vweird.f32 %v3030_v40 }
 0x38b   :  { %v2204_v45 = vsel %vm2201_vm11, %v2203_v41, %v2199_v43  ;;  %3033 = vrcp.f32 %v1583_v42  ;;  %v1009_v48 = vpop.f32.mrf.mxu2  ;;  %vm2213_vm14 = vmor %vm2211_vm13, %vm2212_vm12  ;;  %v2232_v4 = vand.u32 2147483648, %v1583_v42  ;;  %v2230_v7 = vand.u32 2147483647, %v1583_v42 }
 0x38c   :  { %2606 = vst.msk [vmem:[%s4151_s9 + $0x138] sm:$0xff] %vm2566_vm4, %v2204_v45  ;;  %v2208_v47 = vsub.f32 1.0, %v2207_v44  ;;  %v1010_v50 = vadd.f32 %v3921_v28, %v1009_v48  ;;  %vm2226_vm1 = vweird.f32 %v1583_v42 }
 0x38d   :  { %v1297_v51 = vpop.f32.mrf.mxu3  ;;  %v2233_v12 = vor.u32 1.1754944e-38, %v2232_v4  ;;  %vm2231_vm3 = vcmp.eq.f32.partialorder %v2230_v7, 8.507059e+37 }
 0x38e   :  { %v2209_v52 = vmul.f32 %v3030_v40, %v2208_v47  ;;  %v1298_v54 = vadd.f32 %v3980_v22, %v1297_v51  ;;  %v1078_v32 = vmax.f32 %v1010_v50, 0.0 }
 0x390   :  { %v3032_v56 = vpop.eup %3031  ;;  %v2210_v57 = vadd.f32 %v3030_v40, %v2209_v52  ;;  %v2814_v58 = vmul.f32 -1.442695, %v1298_v54  ;;  %v1111_v61 = vpack.c.bf16 %v1078_v32, %v1077_v55 }
 0x391   :  { %v3034_v30 = vpop.eup %3033  ;;  %v1584_v60 = vadd.f32 1.0, %v3032_v56 }
 0x392   :  { %v2214_v62 = vsel %vm2213_vm14, %v3030_v40, %v2210_v57  ;;  %v2222_v63 = vmul.f32 %v3034_v30, %v1583_v42  ;;  %3035 = vpow2.f32 %v2814_v58  ;;  %1339 = vmatmul.bf16.gmra.mxu3 %v1111_v61  ;;  %vm2227_vm0 = vweird.f32 %v3034_v30 }
 0x393   :  { %v2219_v1 = vsel %vm2216_vm15, %v2218_v59, %v2214_v62  ;;  %3037 = vrcp.f32 %v1584_v60  ;;  %v1012_v3 = vpop.f32.mrf.mxu2  ;;  %vm2228_vm2 = vmor %vm2226_vm1, %vm2227_vm0  ;;  %v2247_v20 = vand.u32 2147483648, %v1584_v60  ;;  %v2245_v24 = vand.u32 2147483647, %v1584_v60 }
 0x394   :  { %2607 = vst.msk [vmem:[%s4151_s9 + $0x140] sm:$0xff] %vm2566_vm4, %v2219_v1  ;;  %v2223_v2 = vsub.f32 1.0, %v2222_v63  ;;  %v1013_v16 = vadd.f32 %v3921_v28, %v1012_v3  ;;  %vm2241_vm6 = vweird.f32 %v1584_v60 }
 0x395   :  { %v1300_v5 = vpop.f32.mrf.mxu3  ;;  %v2248_v34 = vor.u32 1.1754944e-38, %v2247_v20  ;;  %vm2246_vm8 = vcmp.eq.f32.partialorder %v2245_v24, 8.507059e+37 }
 0x396   :  { %v2224_v6 = vmul.f32 %v3034_v30, %v2223_v2  ;;  %v1301_v8 = vadd.f32 %v3980_v22, %v1300_v5  ;;  %v1079_v26 = vmax.f32 %v1013_v16, 0.0 }
 0x398   :  { %v3036_v19 = vpop.eup %3035  ;;  %v2225_v9 = vadd.f32 %v3034_v30, %v2224_v6  ;;  %v2815_v0 = vmul.f32 -1.442695, %v1301_v8 }
 0x399   :  { %v3038_v10 = vpop.eup %3037  ;;  %v1585_v36 = vadd.f32 1.0, %v3036_v19 }
 0x39a   :  { %v2229_v13 = vsel %vm2228_vm2, %v3034_v30, %v2225_v9  ;;  %v2237_v14 = vmul.f32 %v3038_v10, %v1584_v60  ;;  %3039 = vpow2.f32 %v2815_v0  ;;  %vm2242_vm5 = vweird.f32 %v3038_v10 }
 0x39b   :  { %v2234_v15 = vsel %vm2231_vm3, %v2233_v12, %v2229_v13  ;;  %3041 = vrcp.f32 %v1585_v36  ;;  %v1014_v18 = vpop.f32.mrf.mxu2  ;;  %vm2243_vm7 = vmor %vm2241_vm6, %vm2242_vm5  ;;  %v2262_v42 = vand.u32 2147483648, %v1585_v36  ;;  %v2260_v45 = vand.u32 2147483647, %v1585_v36 }
 0x39c   :  { %2608 = vst.msk [vmem:[%s4151_s9 + $0x148] sm:$0xff] %vm2566_vm4, %v2234_v15  ;;  %v2238_v17 = vsub.f32 1.0, %v2237_v14  ;;  %v1015_v38 = vadd.f32 %v3921_v28, %v1014_v18  ;;  %vm2256_vm10 = vweird.f32 %v1585_v36 }
 0x39d   :  { %v1302_v21 = vpop.f32.mrf.mxu3  ;;  %v2263_v51 = vor.u32 1.1754944e-38, %v2262_v42  ;;  %vm2261_vm12 = vcmp.eq.f32.partialorder %v2260_v45, 8.507059e+37 }
 0x39e   :  { %v2239_v23 = vmul.f32 %v3038_v10, %v2238_v17  ;;  %v1303_v25 = vadd.f32 %v3980_v22, %v1302_v21  ;;  %v1080_v27 = vmax.f32 %v1015_v38, 0.0 }
 0x3a0   :  { %v3040_v11 = vpop.eup %3039  ;;  %v2240_v29 = vadd.f32 %v3038_v10, %v2239_v23  ;;  %v2816_v31 = vmul.f32 -1.442695, %v1303_v25  ;;  %v1112_v37 = vpack.c.bf16 %v1080_v27, %v1079_v26 }
 0x3a1   :  { %v3042_v33 = vpop.eup %3041  ;;  %v1586_v35 = vadd.f32 1.0, %v3040_v11 }
 0x3a2   :  { %v2244_v39 = vsel %vm2243_vm7, %v3038_v10, %v2240_v29  ;;  %v2252_v28 = vmul.f32 %v3042_v33, %v1585_v36  ;;  %3043 = vpow2.f32 %v2816_v31  ;;  %1344 = vmatmul.bf16.gmra.mxu3 %v1112_v37  ;;  %vm2257_vm9 = vweird.f32 %v3042_v33 }
 0x3a3   :  { %v2249_v40 = vsel %vm2246_vm8, %v2248_v34, %v2244_v39  ;;  %3045 = vrcp.f32 %v1586_v35  ;;  %vm2258_vm11 = vmor %vm2256_vm10, %vm2257_vm9  ;;  %v2277_v56 = vand.u32 2147483648, %v1586_v35  ;;  %v2275_v30 = vand.u32 2147483647, %v1586_v35 }
 0x3a4   :  { %2609 = vst.msk [vmem:[%s4151_s9 + $0x150] sm:$0xff] %vm2566_vm4, %v2249_v40  ;;  %v2253_v41 = vsub.f32 1.0, %v2252_v28  ;;  %vm2271_vm14 = vweird.f32 %v1586_v35 }
 0x3a5   :  { %v1305_v43 = vpop.f32.mrf.mxu3  ;;  %v2278_v1 = vor.u32 1.1754944e-38, %v2277_v56  ;;  %vm2276_vm0 = vcmp.eq.f32.partialorder %v2275_v30, 8.507059e+37 }
 0x3a6   :  { %v2254_v44 = vmul.f32 %v3042_v33, %v2253_v41  ;;  %v1306_v46 = vadd.f32 %v3980_v22, %v1305_v43 }
 0x3a8   :  { %v3044_v47 = vpop.eup %3043  ;;  %v2255_v48 = vadd.f32 %v3042_v33, %v2254_v44  ;;  %v2817_v49 = vmul.f32 -1.442695, %v1306_v46 }
 0x3a9   :  { %v3046_v50 = vpop.eup %3045  ;;  %v1587_v52 = vadd.f32 1.0, %v3044_v47 }
 0x3aa   :  { %v2259_v53 = vsel %vm2258_vm11, %v3042_v33, %v2255_v48  ;;  %v2267_v54 = vmul.f32 %v3046_v50, %v1586_v35  ;;  %3047 = vpow2.f32 %v2817_v49  ;;  %vm2272_vm13 = vweird.f32 %v3046_v50 }
 0x3ab   :  { %v2264_v55 = vsel %vm2261_vm12, %v2263_v51, %v2259_v53  ;;  %3049 = vrcp.f32 %v1587_v52  ;;  %vm2273_vm15 = vmor %vm2271_vm14, %vm2272_vm13  ;;  %v2292_v7 = vand.u32 2147483648, %v1587_v52  ;;  %v2290_v9 = vand.u32 2147483647, %v1587_v52 }
 0x3ac   :  { %2610 = vst.msk [vmem:[%s4151_s9 + $0x158] sm:$0xff] %vm2566_vm4, %v2264_v55  ;;  %v2268_v32 = vsub.f32 1.0, %v2267_v54  ;;  %vm2286_vm2 = vweird.f32 %v1587_v52 }
 0x3ad   :  { %v1307_v57 = vpop.f32.mrf.mxu3  ;;  %v2293_v14 = vor.u32 1.1754944e-38, %v2292_v7  ;;  %vm2291_vm5 = vcmp.eq.f32.partialorder %v2290_v9, 8.507059e+37 }
 0x3ae   :  { %v2269_v58 = vmul.f32 %v3046_v50, %v2268_v32  ;;  %v1308_v59 = vadd.f32 %v3980_v22, %v1307_v57 }
 0x3b0   :  { %v3048_v60 = vpop.eup %3047  ;;  %v2270_v61 = vadd.f32 %v3046_v50, %v2269_v58  ;;  %v2818_v62 = vmul.f32 -1.442695, %v1308_v59 }
 0x3b1   :  { %v3050_v63 = vpop.eup %3049  ;;  %v1588_v2 = vadd.f32 1.0, %v3048_v60 }
 0x3b2   :  { %v2274_v3 = vsel %vm2273_vm15, %v3046_v50, %v2270_v61  ;;  %v2282_v4 = vmul.f32 %v3050_v63, %v1587_v52  ;;  %3051 = vpow2.f32 %v2818_v62  ;;  %vm2287_vm1 = vweird.f32 %v3050_v63 }
 0x3b3   :  { %v2279_v5 = vsel %vm2276_vm0, %v2278_v1, %v2274_v3  ;;  %3053 = vrcp.f32 %v1588_v2  ;;  %vm2288_vm3 = vmor %vm2286_vm2, %vm2287_vm1  ;;  %v2307_v38 = vand.u32 2147483648, %v1588_v2  ;;  %v2305_v24 = vand.u32 2147483647, %v1588_v2 }
 0x3b4   :  { %2611 = vst.msk [vmem:[%s4151_s9 + $0x160] sm:$0xff] %vm2566_vm4, %v2279_v5  ;;  %v2283_v6 = vsub.f32 1.0, %v2282_v4  ;;  %vm2301_vm7 = vweird.f32 %v1588_v2 }
 0x3b5   :  { %v1310_v8 = vpop.f32.mrf.mxu3  ;;  %v2308_v31 = vor.u32 1.1754944e-38, %v2307_v38  ;;  %vm2306_vm9 = vcmp.eq.f32.partialorder %v2305_v24, 8.507059e+37 }
 0x3b6   :  { %v2284_v19 = vmul.f32 %v3050_v63, %v2283_v6  ;;  %v1311_v0 = vadd.f32 %v3980_v22, %v1310_v8 }
 0x3b8   :  { %v3052_v10 = vpop.eup %3051  ;;  %v2285_v12 = vadd.f32 %v3050_v63, %v2284_v19  ;;  %v2819_v36 = vmul.f32 -1.442695, %v1311_v0 }
 0x3b9   :  { %v3054_v13 = vpop.eup %3053  ;;  %v1589_v15 = vadd.f32 1.0, %v3052_v10 }
 0x3ba   :  { %v2289_v16 = vsel %vm2288_vm3, %v3050_v63, %v2285_v12  ;;  %v2297_v17 = vmul.f32 %v3054_v13, %v1588_v2  ;;  %3055 = vpow2.f32 %v2819_v36  ;;  %vm2302_vm6 = vweird.f32 %v3054_v13 }
 0x3bb   :  { %v2294_v18 = vsel %vm2291_vm5, %v2293_v14, %v2289_v16  ;;  %3057 = vrcp.f32 %v1589_v15  ;;  %vm2303_vm8 = vmor %vm2301_vm7, %vm2302_vm6  ;;  %v2322_v28 = vand.u32 2147483648, %v1589_v15  ;;  %v2320_v42 = vand.u32 2147483647, %v1589_v15 }
 0x3bc   :  { %2612 = vst.msk [vmem:[%s4151_s9 + $0x168] sm:$0xff] %vm2566_vm4, %v2294_v18  ;;  %v2298_v20 = vsub.f32 1.0, %v2297_v17  ;;  %vm2316_vm11 = vweird.f32 %v1589_v15 }
 0x3bd   :  { %v1312_v21 = vpop.f32.mrf.mxu3  ;;  %v2323_v48 = vor.u32 1.1754944e-38, %v2322_v28  ;;  %vm2321_vm13 = vcmp.eq.f32.partialorder %v2320_v42, 8.507059e+37 }
 0x3be   :  { %v2299_v23 = vmul.f32 %v3054_v13, %v2298_v20  ;;  %v1313_v25 = vadd.f32 %v3980_v22, %v1312_v21 }
 0x3c0   :  { %v3056_v26 = vpop.eup %3055  ;;  %v2300_v27 = vadd.f32 %v3054_v13, %v2299_v23  ;;  %v2820_v11 = vmul.f32 -1.442695, %v1313_v25 }
 0x3c1   :  { %v3058_v29 = vpop.eup %3057  ;;  %v1590_v33 = vadd.f32 1.0, %v3056_v26 }
 0x3c2   :  { %v2304_v34 = vsel %vm2303_vm8, %v3054_v13, %v2300_v27  ;;  %v2312_v35 = vmul.f32 %v3058_v29, %v1589_v15  ;;  %3059 = vpow2.f32 %v2820_v11  ;;  %vm2317_vm10 = vweird.f32 %v3058_v29 }
 0x3c3   :  { %v2309_v37 = vsel %vm2306_vm9, %v2308_v31, %v2304_v34  ;;  %3061 = vrcp.f32 %v1590_v33  ;;  %vm2318_vm12 = vmor %vm2316_vm11, %vm2317_vm10  ;;  %v2337_v54 = vand.u32 2147483648, %v1590_v33  ;;  %v2335_v56 = vand.u32 2147483647, %v1590_v33 }
 0x3c4   :  { %2613 = vst.msk [vmem:[%s4151_s9 + $0x170] sm:$0xff] %vm2566_vm4, %v2309_v37  ;;  %v2313_v39 = vsub.f32 1.0, %v2312_v35  ;;  %vm2331_vm15 = vweird.f32 %v1590_v33 }
 0x3c5   :  { %v1315_v40 = vpop.f32.mrf.mxu3  ;;  %v2338_v61 = vor.u32 1.1754944e-38, %v2337_v54  ;;  %vm2336_vm1 = vcmp.eq.f32.partialorder %v2335_v56, 8.507059e+37 }
 0x3c6   :  { %v2314_v41 = vmul.f32 %v3058_v29, %v2313_v39  ;;  %v1316_v43 = vadd.f32 %v3980_v22, %v1315_v40 }
 0x3c8   :  { %v3060_v44 = vpop.eup %3059  ;;  %v2315_v45 = vadd.f32 %v3058_v29, %v2314_v41  ;;  %v2821_v46 = vmul.f32 -1.442695, %v1316_v43 }
 0x3c9   :  { %v3062_v47 = vpop.eup %3061  ;;  %v1591_v49 = vadd.f32 1.0, %v3060_v44 }
 0x3ca   :  { %v2319_v50 = vsel %vm2318_vm12, %v3058_v29, %v2315_v45  ;;  %v2327_v51 = vmul.f32 %v3062_v47, %v1590_v33  ;;  %3063 = vpow2.f32 %v2821_v46  ;;  %vm2332_vm14 = vweird.f32 %v3062_v47 }
 0x3cb   :  { %v2324_v52 = vsel %vm2321_vm13, %v2323_v48, %v2319_v50  ;;  %3065 = vrcp.f32 %v1591_v49  ;;  %vm2333_vm0 = vmor %vm2331_vm15, %vm2332_vm14  ;;  %v2352_v4 = vand.u32 2147483648, %v1591_v49  ;;  %v2350_v7 = vand.u32 2147483647, %v1591_v49 }
 0x3cc   :  { %2614 = vst.msk [vmem:[%s4151_s9 + $0x178] sm:$0xff] %vm2566_vm4, %v2324_v52  ;;  %v2328_v53 = vsub.f32 1.0, %v2327_v51  ;;  %vm2346_vm3 = vweird.f32 %v1591_v49 }
 0x3cd   :  { %v1317_v55 = vpop.f32.mrf.mxu3  ;;  %v2353_v12 = vor.u32 1.1754944e-38, %v2352_v4  ;;  %vm2351_vm6 = vcmp.eq.f32.partialorder %v2350_v7, 8.507059e+37 }
 0x3ce   :  { %v2329_v32 = vmul.f32 %v3062_v47, %v2328_v53  ;;  %v1318_v57 = vadd.f32 %v3980_v22, %v1317_v55 }
 0x3d0   :  { %v3064_v58 = vpop.eup %3063  ;;  %v2330_v30 = vadd.f32 %v3062_v47, %v2329_v32  ;;  %v2822_v59 = vmul.f32 -1.442695, %v1318_v57 }
 0x3d1   :  { %v3066_v60 = vpop.eup %3065  ;;  %v1592_v62 = vadd.f32 1.0, %v3064_v58 }
 0x3d2   :  { %v2334_v63 = vsel %vm2333_vm0, %v3062_v47, %v2330_v30  ;;  %v2342_v1 = vmul.f32 %v3066_v60, %v1591_v49  ;;  %3067 = vpow2.f32 %v2822_v59  ;;  %vm2347_vm2 = vweird.f32 %v3066_v60 }
 0x3d3   :  { %v2339_v2 = vsel %vm2336_vm1, %v2338_v61, %v2334_v63  ;;  %3069 = vrcp.f32 %v1592_v62  ;;  %vm2348_vm5 = vmor %vm2346_vm3, %vm2347_vm2  ;;  %v2367_v17 = vand.u32 2147483648, %v1592_v62  ;;  %v2365_v38 = vand.u32 2147483647, %v1592_v62 }
 0x3d4   :  { %2615 = vst.msk [vmem:[%s4151_s9 + $0x180] sm:$0xff] %vm2566_vm4, %v2339_v2  ;;  %v2343_v3 = vsub.f32 1.0, %v2342_v1  ;;  %vm2361_vm8 = vweird.f32 %v1592_v62 }
 0x3d5   :  { %v1320_v5 = vpop.f32.mrf.mxu3  ;;  %v2368_v27 = vor.u32 1.1754944e-38, %v2367_v17  ;;  %vm2366_vm10 = vcmp.eq.f32.partialorder %v2365_v38, 8.507059e+37 }
 0x3d6   :  { %v2344_v6 = vmul.f32 %v3066_v60, %v2343_v3  ;;  %v1321_v8 = vadd.f32 %v3980_v22, %v1320_v5 }
 0x3d8   :  { %v3068_v19 = vpop.eup %3067  ;;  %v2345_v9 = vadd.f32 %v3066_v60, %v2344_v6  ;;  %v2823_v0 = vmul.f32 -1.442695, %v1321_v8 }
 0x3d9   :  { %v3070_v10 = vpop.eup %3069  ;;  %v1593_v36 = vadd.f32 1.0, %v3068_v19 }
 0x3da   :  { %v2349_v13 = vsel %vm2348_vm5, %v3066_v60, %v2345_v9  ;;  %v2357_v14 = vmul.f32 %v3070_v10, %v1592_v62  ;;  %3071 = vpow2.f32 %v2823_v0  ;;  %vm2362_vm7 = vweird.f32 %v3070_v10 }
 0x3db   :  { %v2354_v15 = vsel %vm2351_vm6, %v2353_v12, %v2349_v13  ;;  %3073 = vrcp.f32 %v1593_v36  ;;  %vm2363_vm9 = vmor %vm2361_vm8, %vm2362_vm7  ;;  %v2382_v35 = vand.u32 2147483648, %v1593_v36  ;;  %v2380_v28 = vand.u32 2147483647, %v1593_v36 }
 0x3dc   :  { %2616 = vst.msk [vmem:[%s4151_s9 + $0x188] sm:$0xff] %vm2566_vm4, %v2354_v15  ;;  %v2358_v16 = vsub.f32 1.0, %v2357_v14  ;;  %vm2376_vm12 = vweird.f32 %v1593_v36 }
 0x3dd   :  { %v1322_v18 = vpop.f32.mrf.mxu3  ;;  %v2383_v45 = vor.u32 1.1754944e-38, %v2382_v35  ;;  %vm2381_vm14 = vcmp.eq.f32.partialorder %v2380_v28, 8.507059e+37 }
 0x3de   :  { %v2359_v20 = vmul.f32 %v3070_v10, %v2358_v16  ;;  %v1323_v21 = vadd.f32 %v3980_v22, %v1322_v18 }
 0x3e0   :  { %v3072_v23 = vpop.eup %3071  ;;  %v2360_v24 = vadd.f32 %v3070_v10, %v2359_v20  ;;  %v2824_v25 = vmul.f32 -1.442695, %v1323_v21 }
 0x3e1   :  { %v3074_v26 = vpop.eup %3073  ;;  %v1594_v11 = vadd.f32 1.0, %v3072_v23 }
 0x3e2   :  { %v2364_v29 = vsel %vm2363_vm9, %v3070_v10, %v2360_v24  ;;  %v2372_v31 = vmul.f32 %v3074_v26, %v1593_v36  ;;  %3075 = vpow2.f32 %v2824_v25  ;;  %vm2377_vm11 = vweird.f32 %v3074_v26 }
 0x3e3   :  { %v2369_v33 = vsel %vm2366_vm10, %v2368_v27, %v2364_v29  ;;  %3077 = vrcp.f32 %v1594_v11  ;;  %vm2378_vm13 = vmor %vm2376_vm12, %vm2377_vm11  ;;  %v2397_v51 = vand.u32 2147483648, %v1594_v11  ;;  %v2395_v54 = vand.u32 2147483647, %v1594_v11 }
 0x3e4   :  { %2617 = vst.msk [vmem:[%s4151_s9 + $0x190] sm:$0xff] %vm2566_vm4, %v2369_v33  ;;  %v2373_v34 = vsub.f32 1.0, %v2372_v31  ;;  %vm2391_vm0 = vweird.f32 %v1594_v11 }
 0x3e5   :  { %v1325_v37 = vpop.f32.mrf.mxu3  ;;  %v2398_v30 = vor.u32 1.1754944e-38, %v2397_v51  ;;  %vm2396_vm2 = vcmp.eq.f32.partialorder %v2395_v54, 8.507059e+37 }
 0x3e6   :  { %v2374_v39 = vmul.f32 %v3074_v26, %v2373_v34  ;;  %v1326_v40 = vadd.f32 %v3980_v22, %v1325_v37 }
 0x3e8   :  { %v3076_v41 = vpop.eup %3075  ;;  %v2375_v42 = vadd.f32 %v3074_v26, %v2374_v39  ;;  %v2825_v43 = vmul.f32 -1.442695, %v1326_v40 }
 0x3e9   :  { %v3078_v44 = vpop.eup %3077  ;;  %v1595_v46 = vadd.f32 1.0, %v3076_v41 }
 0x3ea   :  { %v2379_v47 = vsel %vm2378_vm13, %v3074_v26, %v2375_v42  ;;  %v2387_v48 = vmul.f32 %v3078_v44, %v1594_v11  ;;  %3079 = vpow2.f32 %v2825_v43  ;;  %vm2392_vm15 = vweird.f32 %v3078_v44 }
 0x3eb   :  { %v2384_v49 = vsel %vm2381_vm14, %v2383_v45, %v2379_v47  ;;  %3081 = vrcp.f32 %v1595_v46  ;;  %vm2393_vm1 = vmor %vm2391_vm0, %vm2392_vm15  ;;  %v2412_v1 = vand.u32 2147483648, %v1595_v46  ;;  %v2410_v3 = vand.u32 2147483647, %v1595_v46 }
 0x3ec   :  { %2618 = vst.msk [vmem:[%s4151_s9 + $0x198] sm:$0xff] %vm2566_vm4, %v2384_v49  ;;  %v2388_v50 = vsub.f32 1.0, %v2387_v48  ;;  %vm2406_vm5 = vweird.f32 %v1595_v46  ;;  %v4103_v49 = vld [vmem:[%s4150_s8] ss:$0 sm:$0xff] }
 0x3ed   :  { %v1327_v52 = vpop.f32.mrf.mxu3  ;;  %v2413_v19 = vor.u32 1.1754944e-38, %v2412_v1  ;;  %vm2411_vm7 = vcmp.eq.f32.partialorder %v2410_v3, 8.507059e+37 }
 0x3ee   :  { %v2389_v53 = vmul.f32 %v3078_v44, %v2388_v50  ;;  %v1328_v55 = vadd.f32 %v3980_v22, %v1327_v52 }
 0x3f0   :  { %v3080_v32 = vpop.eup %3079  ;;  %v2390_v56 = vadd.f32 %v3078_v44, %v2389_v53  ;;  %v2826_v57 = vmul.f32 -1.442695, %v1328_v55 }
 0x3f1   :  { %v3082_v58 = vpop.eup %3081  ;;  %v1596_v59 = vadd.f32 1.0, %v3080_v32 }
 0x3f2   :  { %v2394_v60 = vsel %vm2393_vm1, %v3078_v44, %v2390_v56  ;;  %v2402_v61 = vmul.f32 %v3082_v58, %v1595_v46  ;;  %3083 = vpow2.f32 %v2826_v57  ;;  %vm2407_vm3 = vweird.f32 %v3082_v58 }
 0x3f3   :  { %v2399_v62 = vsel %vm2396_vm2, %v2398_v30, %v2394_v60  ;;  %3085 = vrcp.f32 %v1596_v59  ;;  %vm2408_vm6 = vmor %vm2406_vm5, %vm2407_vm3  ;;  %v2427_v14 = vand.u32 2147483648, %v1596_v59  ;;  %v2425_v16 = vand.u32 2147483647, %v1596_v59 }
 0x3f4   :  { %2619 = vst.msk [vmem:[%s4151_s9 + $0x1a0] sm:$0xff] %vm2566_vm4, %v2399_v62  ;;  %v2403_v63 = vsub.f32 1.0, %v2402_v61  ;;  %vm2421_vm9 = vweird.f32 %v1596_v59 }
 0x3f5   :  { %v1330_v4 = vpop.f32.mrf.mxu3  ;;  %v2428_v21 = vor.u32 1.1754944e-38, %v2427_v14  ;;  %vm2426_vm11 = vcmp.eq.f32.partialorder %v2425_v16, 8.507059e+37 }
 0x3f6   :  { %v2404_v2 = vmul.f32 %v3082_v58, %v2403_v63  ;;  %v1331_v5 = vadd.f32 %v3980_v22, %v1330_v4 }
 0x3f8   :  { %v3084_v6 = vpop.eup %3083  ;;  %v2405_v7 = vadd.f32 %v3082_v58, %v2404_v2  ;;  %v2827_v0 = vmul.f32 -1.442695, %v1331_v5 }
 0x3f9   :  { %v3086_v8 = vpop.eup %3085  ;;  %v1597_v9 = vadd.f32 1.0, %v3084_v6 }
 0x3fa   :  { %v2409_v10 = vsel %vm2408_vm6, %v3082_v58, %v2405_v7  ;;  %v2417_v12 = vmul.f32 %v3086_v8, %v1596_v59  ;;  %vm2422_vm8 = vweird.f32 %v3086_v8 }
 0x3fb   :  { %v2414_v36 = vsel %vm2411_vm7, %v2413_v19, %v2409_v10  ;;  %3087 = vrcp.f32 %v1597_v9  ;;  %vm2423_vm10 = vmor %vm2421_vm9, %vm2422_vm8  ;;  %v2442_v31 = vand.u32 2147483648, %v1597_v9  ;;  %v2440_v34 = vand.u32 2147483647, %v1597_v9 }
 0x3fc   :  { %2620 = vst.msk [vmem:[%s4151_s9 + $0x1a8] sm:$0xff] %vm2566_vm4, %v2414_v36  ;;  %v2418_v13 = vsub.f32 1.0, %v2417_v12  ;;  %3089 = vpow2.f32 %v2827_v0  ;;  %vm2436_vm13 = vweird.f32 %v1597_v9 }
 0x3fd   :  { %v1332_v17 = vpop.f32.mrf.mxu3  ;;  %v2443_v40 = vor.u32 1.1754944e-38, %v2442_v31  ;;  %vm2441_vm15 = vcmp.eq.f32.partialorder %v2440_v34, 8.507059e+37 }
 0x3fe   :  { %v2419_v15 = vmul.f32 %v3086_v8, %v2418_v13  ;;  %v1333_v18 = vadd.f32 %v3980_v22, %v1332_v17 }
 0x400   :  { %v2420_v20 = vadd.f32 %v3086_v8, %v2419_v15  ;;  %v2828_v23 = vmul.f32 -1.442695, %v1333_v18 }
 0x401   :  { %v3088_v38 = vpop.eup %3087 }
 0x402   :  { %v3090_v24 = vpop.eup %3089  ;;  %v2424_v25 = vsel %vm2423_vm10, %v3086_v8, %v2420_v20  ;;  %v2432_v26 = vmul.f32 %v3088_v38, %v1597_v9  ;;  %3091 = vpow2.f32 %v2828_v23  ;;  %vm2437_vm12 = vweird.f32 %v3088_v38 }
 0x403   :  { %v2429_v27 = vsel %vm2426_vm11, %v2428_v21, %v2424_v25  ;;  %v1598_v11 = vadd.f32 1.0, %v3090_v24  ;;  %vm2438_vm14 = vmor %vm2436_vm13, %vm2437_vm12 }
 0x404   :  { %2621 = vst.msk [vmem:[%s4151_s9 + $0x1b0] sm:$0xff] %vm2566_vm4, %v2429_v27  ;;  %v2433_v29 = vsub.f32 1.0, %v2432_v26 }
 0x405   :  { %3093 = vrcp.f32 %v1598_v11  ;;  %v1335_v35 = vpop.f32.mrf.mxu3  ;;  %v2457_v48 = vand.u32 2147483648, %v1598_v11  ;;  %v2455_v52 = vand.u32 2147483647, %v1598_v11  ;;  %vm2451_vm1 = vweird.f32 %v1598_v11 }
 0x406   :  { %v2434_v33 = vmul.f32 %v3088_v38, %v2433_v29  ;;  %v1336_v37 = vadd.f32 %v3980_v22, %v1335_v35 }
 0x407   :  { %v2458_v57 = vor.u32 1.1754944e-38, %v2457_v48  ;;  %vm2456_vm3 = vcmp.eq.f32.partialorder %v2455_v52, 8.507059e+37 }
 0x408   :  { %v2435_v39 = vadd.f32 %v3088_v38, %v2434_v33  ;;  %v3092_v28 = vpop.eup %3091  ;;  %v2829_v41 = vmul.f32 -1.442695, %v1336_v37 }
 0x409   :  { %v1599_v43 = vadd.f32 1.0, %v3092_v28 }
 0x40a   :  { %v2439_v42 = vsel %vm2438_vm14, %v3088_v38, %v2435_v39  ;;  %3095 = vpow2.f32 %v2829_v41 }
 0x40b   :  { %v3094_v44 = vpop.eup %3093  ;;  %v2444_v45 = vsel %vm2441_vm15, %v2443_v40, %v2439_v42  ;;  %3097 = vrcp.f32 %v1599_v43  ;;  %v2472_v61 = vand.u32 2147483648, %v1599_v43  ;;  %v2470_v1 = vand.u32 2147483647, %v1599_v43 }
 0x40c   :  { %2622 = vst.msk [vmem:[%s4151_s9 + $0x1b8] sm:$0xff] %vm2566_vm4, %v2444_v45  ;;  %v2447_v46 = vmul.f32 %v3094_v44, %v1598_v11  ;;  %vm2452_vm0 = vweird.f32 %v3094_v44  ;;  %vm2466_vm6 = vweird.f32 %v1599_v43 }
 0x40d   :  { %v1337_v47 = vpop.f32.mrf.mxu3  ;;  %vm2453_vm2 = vmor %vm2451_vm1, %vm2452_vm0  ;;  %v2473_v7 = vor.u32 1.1754944e-38, %v2472_v61  ;;  %vm2471_vm8 = vcmp.eq.f32.partialorder %v2470_v1, 8.507059e+37 }
 0x40e   :  { %v2448_v22 = vsub.f32 1.0, %v2447_v46  ;;  %v1338_v50 = vadd.f32 %v4103_v49, %v1337_v47 }
 0x410   :  { %v2449_v51 = vmul.f32 %v3094_v44, %v2448_v22  ;;  %v3096_v53 = vpop.eup %3095  ;;  %v2830_v54 = vmul.f32 -1.442695, %v1338_v50 }
 0x411   :  { %v3098_v55 = vpop.eup %3097  ;;  %v1600_v56 = vadd.f32 1.0, %v3096_v53 }
 0x412   :  { %v2450_v32 = vadd.f32 %v3094_v44, %v2449_v51  ;;  %v2462_v58 = vmul.f32 %v3098_v55, %v1599_v43  ;;  %3099 = vpow2.f32 %v2830_v54  ;;  %vm2467_vm5 = vweird.f32 %v3098_v55 }
 0x413   :  { %3101 = vrcp.f32 %v1600_v56  ;;  %vm2468_vm7 = vmor %vm2466_vm6, %vm2467_vm5  ;;  %v2487_v12 = vand.u32 2147483648, %v1600_v56  ;;  %v2485_v14 = vand.u32 2147483647, %v1600_v56  ;;  %vm2481_vm10 = vweird.f32 %v1600_v56 }
 0x414   :  { %v2454_v30 = vsel %vm2453_vm2, %v3094_v44, %v2450_v32  ;;  %v2463_v60 = vsub.f32 1.0, %v2462_v58 }
 0x415   :  { %v2459_v59 = vsel %vm2456_vm3, %v2458_v57, %v2454_v30  ;;  %v1340_v62 = vpop.f32.mrf.mxu3  ;;  %v2488_v38 = vor.u32 1.1754944e-38, %v2487_v12  ;;  %vm2486_vm12 = vcmp.eq.f32.partialorder %v2485_v14, 8.507059e+37 }
 0x416   :  { %2623 = vst.msk [vmem:[%s4151_s9 + $0x1c0] sm:$0xff] %vm2566_vm4, %v2459_v59  ;;  %v2464_v63 = vmul.f32 %v3098_v55, %v2463_v60  ;;  %v1341_v2 = vadd.f32 %v4103_v49, %v1340_v62 }
 0x418   :  { %v3100_v3 = vpop.eup %3099  ;;  %v2465_v4 = vadd.f32 %v3098_v55, %v2464_v63  ;;  %v2831_v5 = vmul.f32 -1.442695, %v1341_v2 }
 0x419   :  { %v3102_v6 = vpop.eup %3101  ;;  %v1601_v8 = vadd.f32 1.0, %v3100_v3 }
 0x41a   :  { %v2469_v19 = vsel %vm2468_vm7, %v3098_v55, %v2465_v4  ;;  %v2477_v9 = vmul.f32 %v3102_v6, %v1600_v56  ;;  %3103 = vpow2.f32 %v2831_v5  ;;  %vm2482_vm9 = vweird.f32 %v3102_v6 }
 0x41b   :  { %v2474_v0 = vsel %vm2471_vm8, %v2473_v7, %v2469_v19  ;;  %3105 = vrcp.f32 %v1601_v8  ;;  %vm2483_vm11 = vmor %vm2481_vm10, %vm2482_vm9  ;;  %v2502_v27 = vand.u32 2147483648, %v1601_v8  ;;  %v2500_v31 = vand.u32 2147483647, %v1601_v8 }
 0x41c   :  { %2624 = vst.msk [vmem:[%s4151_s9 + $0x1c8] sm:$0xff] %vm2566_vm4, %v2474_v0  ;;  %v2478_v10 = vsub.f32 1.0, %v2477_v9  ;;  %vm2496_vm14 = vweird.f32 %v1601_v8 }
 0x41d   :  { %v1342_v36 = vpop.f32.mrf.mxu3  ;;  %v2503_v28 = vor.u32 1.1754944e-38, %v2502_v27  ;;  %vm2501_vm0 = vcmp.eq.f32.partialorder %v2500_v31, 8.507059e+37 }
 0x41e   :  { %v2479_v13 = vmul.f32 %v3102_v6, %v2478_v10  ;;  %v1343_v15 = vadd.f32 %v4103_v49, %v1342_v36 }
 0x420   :  { %v3104_v16 = vpop.eup %3103  ;;  %v2480_v17 = vadd.f32 %v3102_v6, %v2479_v13  ;;  %v2832_v18 = vmul.f32 -1.442695, %v1343_v15 }
 0x421   :  { %v3106_v20 = vpop.eup %3105  ;;  %v1602_v21 = vadd.f32 1.0, %v3104_v16 }
 0x422   :  { %v2484_v23 = vsel %vm2483_vm11, %v3102_v6, %v2480_v17  ;;  %v2492_v24 = vmul.f32 %v3106_v20, %v1601_v8  ;;  %3107 = vpow2.f32 %v2832_v18  ;;  %vm2497_vm13 = vweird.f32 %v3106_v20 }
 0x423   :  { %v2489_v25 = vsel %vm2486_vm12, %v2488_v38, %v2484_v23  ;;  %3109 = vrcp.f32 %v1602_v21  ;;  %vm2498_vm15 = vmor %vm2496_vm14, %vm2497_vm13  ;;  %v2517_v45 = vand.u32 2147483648, %v1602_v21  ;;  %v2515_v47 = vand.u32 2147483647, %v1602_v21 }
 0x424   :  { %2625 = vst.msk [vmem:[%s4151_s9 + $0x1d0] sm:$0xff] %vm2566_vm4, %v2489_v25  ;;  %v2493_v26 = vsub.f32 1.0, %v2492_v24  ;;  %vm2511_vm2 = vweird.f32 %v1602_v21 }
 0x425   :  { %v1345_v11 = vpop.f32.mrf.mxu3  ;;  %v2518_v54 = vor.u32 1.1754944e-38, %v2517_v45  ;;  %vm2516_vm5 = vcmp.eq.f32.partialorder %v2515_v47, 8.507059e+37 }
 0x426   :  { %v2494_v29 = vmul.f32 %v3106_v20, %v2493_v26  ;;  %v1346_v33 = vadd.f32 %v4103_v49, %v1345_v11 }
 0x428   :  { %v3108_v34 = vpop.eup %3107  ;;  %v2495_v35 = vadd.f32 %v3106_v20, %v2494_v29  ;;  %v2833_v37 = vmul.f32 -1.442695, %v1346_v33 }
 0x429   :  { %v3110_v39 = vpop.eup %3109  ;;  %v1603_v40 = vadd.f32 1.0, %v3108_v34 }
 0x42a   :  { %v2499_v41 = vsel %vm2498_vm15, %v3106_v20, %v2495_v35  ;;  %v2507_v42 = vmul.f32 %v3110_v39, %v1602_v21  ;;  %3111 = vpow2.f32 %v2833_v37  ;;  %vm2512_vm1 = vweird.f32 %v3110_v39 }
 0x42b   :  { %v2504_v43 = vsel %vm2501_vm0, %v2503_v28, %v2499_v41  ;;  %3113 = vrcp.f32 %v1603_v40  ;;  %vm2513_vm3 = vmor %vm2511_vm2, %vm2512_vm1  ;;  %v2532_v58 = vand.u32 2147483648, %v1603_v40  ;;  %v2530_v59 = vand.u32 2147483647, %v1603_v40 }
 0x42c   :  { %2626 = vst.msk [vmem:[%s4151_s9 + $0x1d8] sm:$0xff] %vm2566_vm4, %v2504_v43  ;;  %v2508_v44 = vsub.f32 1.0, %v2507_v42  ;;  %vm2526_vm7 = vweird.f32 %v1603_v40 }
 0x42d   :  { %v1347_v46 = vpop.f32.mrf.mxu3  ;;  %v2533_v63 = vor.u32 1.1754944e-38, %v2532_v58  ;;  %vm2531_vm9 = vcmp.eq.f32.partialorder %v2530_v59, 8.507059e+37 }
 0x42e   :  { %v2509_v22 = vmul.f32 %v3110_v39, %v2508_v44  ;;  %v1348_v48 = vadd.f32 %v4103_v49, %v1347_v46 }
 0x430   :  { %v3112_v50 = vpop.eup %3111  ;;  %v2510_v51 = vadd.f32 %v3110_v39, %v2509_v22  ;;  %v2834_v52 = vmul.f32 -1.442695, %v1348_v48 }
 0x431   :  { %v3114_v53 = vpop.eup %3113  ;;  %v1604_v55 = vadd.f32 1.0, %v3112_v50 }
 0x432   :  { %v2514_v32 = vsel %vm2513_vm3, %v3110_v39, %v2510_v51  ;;  %v2522_v56 = vmul.f32 %v3114_v53, %v1603_v40  ;;  %3115 = vpow2.f32 %v2834_v52  ;;  %vm2527_vm6 = vweird.f32 %v3114_v53 }
 0x433   :  { %v2519_v57 = vsel %vm2516_vm5, %v2518_v54, %v2514_v32  ;;  %3117 = vrcp.f32 %v1604_v55  ;;  %vm2528_vm8 = vmor %vm2526_vm7, %vm2527_vm6  ;;  %v2547_v6 = vand.u32 2147483648, %v1604_v55  ;;  %v2545_v8 = vand.u32 2147483647, %v1604_v55 }
 0x434   :  { %2627 = vst.msk [vmem:[%s4151_s9 + $0x1e0] sm:$0xff] %vm2566_vm4, %v2519_v57  ;;  %v2523_v49 = vsub.f32 1.0, %v2522_v56  ;;  %vm2541_vm11 = vweird.f32 %v1604_v55 }
 0x435   :  { %v2548_v0 = vor.u32 1.1754944e-38, %v2547_v6  ;;  %vm2546_vm13 = vcmp.eq.f32.partialorder %v2545_v8, 8.507059e+37 }
 0x436   :  { %v2524_v30 = vmul.f32 %v3114_v53, %v2523_v49 }
 0x438   :  { %v3116_v60 = vpop.eup %3115  ;;  %v2525_v61 = vadd.f32 %v3114_v53, %v2524_v30 }
 0x439   :  { %v3118_v62 = vpop.eup %3117  ;;  %v1605_v1 = vadd.f32 1.0, %v3116_v60 }
 0x43a   :  { %v2529_v2 = vsel %vm2528_vm8, %v3114_v53, %v2525_v61  ;;  %v2537_v3 = vmul.f32 %v3118_v62, %v1604_v55  ;;  %vm2542_vm10 = vweird.f32 %v3118_v62 }
 0x43b   :  { %v2534_v4 = vsel %vm2531_vm9, %v2533_v63, %v2529_v2  ;;  %3119 = vrcp.f32 %v1605_v1  ;;  %vm2543_vm12 = vmor %vm2541_vm11, %vm2542_vm10  ;;  %v2562_v14 = vand.u32 2147483648, %v1605_v1  ;;  %v2560_v16 = vand.u32 2147483647, %v1605_v1 }
 0x43c   :  { %2628 = vst.msk [vmem:[%s4151_s9 + $0x1e8] sm:$0xff] %vm2566_vm4, %v2534_v4  ;;  %v2538_v5 = vsub.f32 1.0, %v2537_v3  ;;  %vm2556_vm15 = vweird.f32 %v1605_v1 }
 0x43d   :  { %v2563_v18 = vor.u32 1.1754944e-38, %v2562_v14  ;;  %vm2561_vm1 = vcmp.eq.f32.partialorder %v2560_v16, 8.507059e+37 }
 0x43e   :  { %v2539_v7 = vmul.f32 %v3118_v62, %v2538_v5 }
 0x440   :  { %v2540_v19 = vadd.f32 %v3118_v62, %v2539_v7 }
 0x441   :  { %v3120_v9 = vpop.eup %3119 }
 0x442   :  { %v2544_v10 = vsel %vm2543_vm12, %v3118_v62, %v2540_v19  ;;  %v2552_v12 = vmul.f32 %v3120_v9, %v1605_v1  ;;  %vm2557_vm14 = vweird.f32 %v3120_v9 }
 0x443   :  { %v2549_v36 = vsel %vm2546_vm13, %v2548_v0, %v2544_v10  ;;  %vm2558_vm0 = vmor %vm2556_vm15, %vm2557_vm14 }
 0x444   :  { %2629 = vst.msk [vmem:[%s4151_s9 + $0x1f0] sm:$0xff] %vm2566_vm4, %v2549_v36  ;;  %v2553_v13 = vsub.f32 1.0, %v2552_v12 }
 0x446   :  { %v2554_v15 = vmul.f32 %v3120_v9, %v2553_v13 }
 0x448   :  { %v2555_v17 = vadd.f32 %v3120_v9, %v2554_v15 }
 0x44a   :  { %v2559_v20 = vsel %vm2558_vm0, %v3120_v9, %v2555_v17 }
 0x44b   :  { %v2564_v38 = vsel %vm2561_vm1, %v2563_v18, %v2559_v20 }
 0x44c   :  { %2630 = vst.msk [vmem:[%s4151_s9 + $0x1f8] sm:$0xff] %vm2566_vm4, %v2564_v38 }

</bundles_post_ra>
